<compile_context>
chip_gen: v5e
topology: v5e:2x2
jax: 0.10.0
libtpu: 0.0.40
codegen_flags: <defaults>
</compile_context>

<pallas_src>
import math
import functools

import jax
import jax.numpy as jnp
from jax import lax
from jax.experimental import pallas as pl
from jax.experimental.pallas import tpu as pltpu

LN_EPS = 1e-5  # torch.nn.LayerNorm default eps


# ----------------------------- fused Pallas kernel ------------------------------

def _encoder_kernel(x_ref, pos_ref,
                    wqkv_ref, bqkv_ref, wout_ref, bout_ref,
                    wfc1_ref, bfc1_ref, wfc2_ref, bfc2_ref,
                    ln0g_ref, ln0b_ref, ln1g_ref, ln1b_ref,
                    fing_ref, finb_ref,
                    o_ref,
                    *, num_heads, embed_scale):
    S, B, E = x_ref.shape
    L = wqkv_ref.shape[0]
    H = num_heads
    Dh = E // H
    N = B * S                                  # flattened rows, batch-major

    def layer_norm(t, g, b):
        mu = jnp.mean(t, axis=-1, keepdims=True)
        tc = t - mu
        var = jnp.mean(tc * tc, axis=-1, keepdims=True)
        return tc * lax.rsqrt(var + LN_EPS) * g + b

    # x = embed_scale * x_in + positional_embedding; gather the batch rows into
    # one batch-major (B*S, E) slab (sublane-aligned concat) so every linear
    # below is a single MXU matmul over all tokens.
    pos = pos_ref[...]                                                # (S, E)
    x = jnp.concatenate(
        [embed_scale * x_ref[:, b, :] + pos for b in range(B)], axis=0)  # (N, E)

    for l in range(L):   # TODO(synk): lax.fori_loop / layer grid axis for large L
        # ---------------- self-attention block (pre-norm) ----------------
        h = layer_norm(x, ln0g_ref[l], ln0b_ref[l])
        # Fused QKV projection; 1/sqrt(Dh) pre-folded into the Q columns.
        qkv = (jnp.dot(h, wqkv_ref[l], preferred_element_type=jnp.float32)
               + bqkv_ref[l])                                         # (N, 3E)
        qkv = qkv.reshape(B, S, 3 * E)       # split of leading dim: layout-free

        def split_heads(base, qkv=qkv):
            # (B, S, E) lane chunks -> (B*H, S, Dh) via major-axis stack (no
            # minor-dim reshape / relayout).
            parts = [qkv[:, :, base + hd * Dh: base + (hd + 1) * Dh]
                     .reshape(B, 1, S, Dh) for hd in range(H)]
            return jnp.concatenate(parts, axis=1).reshape(B * H, S, Dh)

        q = split_heads(0)
        k = split_heads(E)
        v = split_heads(2 * E)

        # One batched contraction over all (batch, head) pairs.
        s = lax.dot_general(q, k, (((2,), (2,)), ((0,), (0,))),
                            preferred_element_type=jnp.float32)       # (B*H, S, S)
        s = s - jnp.max(s, axis=-1, keepdims=True)
        p = jnp.exp(s)
        p = p * pl.reciprocal(jnp.sum(p, axis=-1, keepdims=True), approx=True)
        attn = lax.dot_general(p, v, (((2,), (1,)), ((0,), (0,))),
                               preferred_element_type=jnp.float32)    # (B*H, S, Dh)

        # Merge heads back with a single lane concatenate (values stay in vregs).
        attn = attn.reshape(B, H, S, Dh)
        attn = jnp.concatenate([attn[:, hd] for hd in range(H)], axis=-1)  # (B, S, E)
        attn = attn.reshape(N, E)

        # output projection + residual (fused)
        x = (jnp.dot(attn, wout_ref[l], preferred_element_type=jnp.float32)
             + bout_ref[l] + x)

        # ---------------- feed-forward block (pre-norm) ----------------
        h = layer_norm(x, ln1g_ref[l], ln1b_ref[l])
        h = jnp.maximum(jnp.dot(h, wfc1_ref[l],
                                preferred_element_type=jnp.float32)
                        + bfc1_ref[l], 0.0)
        x = (jnp.dot(h, wfc2_ref[l], preferred_element_type=jnp.float32)
             + bfc2_ref[l] + x)

    # final LayerNorm (encoder.normalize = True); write back in (S, B, E) layout.
    y = layer_norm(x, fing_ref[...], finb_ref[...]).astype(o_ref.dtype)
    for b in range(B):
        o_ref[:, b, :] = y[b * S:(b + 1) * S, :]


# ----------------------------- kernel wrapper ------------------------------

_WEIGHT_ORDER = ("wqkv", "bqkv", "wout", "bout", "wfc1", "bfc1", "wfc2", "bfc2",
                 "ln0g", "ln0b", "ln1g", "ln1b", "fing", "finb")


@functools.partial(jax.jit, static_argnames=("num_heads",))
def transformer_encoder(x_in, packed, *, num_heads):
    S, B, E = x_in.shape
    L = packed["wqkv"].shape[0]
    H, Dh, N = num_heads, E // num_heads, S * B
    pos = sinusoidal_pos_emb(S, E).astype(x_in.dtype)                  # (S, E)

    weights = [packed[k] for k in _WEIGHT_ORDER]
    kernel = functools.partial(_encoder_kernel, num_heads=num_heads,
                               embed_scale=math.sqrt(E))

    # Advisory cost hint for XLA scheduling around the fused custom call.
    matmul_flops = L * 2 * N * E * (3 * E + E + 4 * E + 4 * E)
    attn_flops = L * 2 * (B * H) * S * S * Dh * 2
    transcendentals = L * (B * H * S * S + B * H * S + 2 * N) + N
    bytes_accessed = 4 * (2 * x_in.size + pos.size
                          + sum(int(w.size) for w in weights))

    vmem = pl.BlockSpec(memory_space=pltpu.MemorySpace.VMEM)
    return pl.pallas_call(
        kernel,
        out_shape=jax.ShapeDtypeStruct((S, B, E), x_in.dtype),
        in_specs=[vmem] * (2 + len(weights)),
        out_specs=vmem,
        cost_estimate=pl.CostEstimate(flops=int(matmul_flops + attn_flops),
                                      transcendentals=int(transcendentals),
                                      bytes_accessed=int(bytes_accessed)),
    )(x_in, pos, *weights)


# ----------------------------- model glue ------------------------------

def sinusoidal_pos_emb(seq_len, embed_dim, padding_idx=0):
    """fairseq SinusoidalPositionalEmbedding at positions padding_idx+1 .. +seq_len."""
    half = embed_dim // 2
    log_timescale = math.log(10000.0) / (half - 1)
    freqs = jnp.exp(jnp.arange(half, dtype=jnp.float32) * -log_timescale)
    positions = jnp.arange(padding_idx + 1, padding_idx + 1 + seq_len, dtype=jnp.float32)
    args = positions[:, None] * freqs[None, :]
    pe = jnp.concatenate([jnp.sin(args), jnp.cos(args)], axis=1)
    if embed_dim % 2 == 1:
        pe = jnp.concatenate([pe, jnp.zeros((seq_len, 1), jnp.float32)], axis=1)
    return pe  # (S, E)


def pack_params(params):
    """Stack per-layer weights and fold the attention scaling into W_qkv / b_qkv."""
    layers = params["layers"]
    E = layers[0]["ln0_g"].shape[0]
    H = layers[0]["attn"]["num_heads"]
    scaling = (E // H) ** -0.5

    def stack(fn):
        return jnp.stack([fn(lp) for lp in layers], axis=0)

    return {
        "wqkv": stack(lambda lp: lp["attn"]["in_proj_w_t"].at[:, :E].multiply(scaling)),
        "bqkv": stack(lambda lp: lp["attn"]["in_proj_b"].at[:E].multiply(scaling)[None, :]),
        "wout": stack(lambda lp: lp["attn"]["out_proj_w_t"]),
        "bout": stack(lambda lp: lp["attn"]["out_proj_b"][None, :]),
        "wfc1": stack(lambda lp: lp["fc1_w_t"]),
        "bfc1": stack(lambda lp: lp["fc1_b"][None, :]),
        "wfc2": stack(lambda lp: lp["fc2_w_t"]),
        "bfc2": stack(lambda lp: lp["fc2_b"][None, :]),
        "ln0g": stack(lambda lp: lp["ln0_g"][None, :]),
        "ln0b": stack(lambda lp: lp["ln0_b"][None, :]),
        "ln1g": stack(lambda lp: lp["ln1_g"][None, :]),
        "ln1b": stack(lambda lp: lp["ln1_b"][None, :]),
        "fing": params["final_ln_g"][None, :],
        "finb": params["final_ln_b"][None, :],
    }


# ----------------------------- parameter init ------------------------------

def _xavier_uniform(key, shape):
    fan_out, fan_in = shape  # PyTorch Linear weight layout (out, in)
    bound = math.sqrt(6.0 / (fan_in + fan_out))
    return jax.random.uniform(key, shape, jnp.float32, -bound, bound)


def init_params(key, embed_dim, num_layers):
    num_heads = 10  # TransformerEncoderLayer hard-codes self.num_heads = 10
    assert embed_dim % num_heads == 0
    E = embed_dim
    params = {
        "final_ln_g": jnp.ones((E,), jnp.float32),
        "final_ln_b": jnp.zeros((E,), jnp.float32),
        "layers": [],
    }
    for _ in range(num_layers):
        key, k1, k2, k3, k4 = jax.random.split(key, 5)
        in_proj_w = _xavier_uniform(k1, (3 * E, E))
        out_proj_w = _xavier_uniform(k2, (E, E))
        fc1_w = _xavier_uniform(k3, (4 * E, E))
        fc2_w = _xavier_uniform(k4, (E, 4 * E))
        params["layers"].append({
            "ln0_g": jnp.ones((E,), jnp.float32), "ln0_b": jnp.zeros((E,), jnp.float32),
            "ln1_g": jnp.ones((E,), jnp.float32), "ln1_b": jnp.zeros((E,), jnp.float32),
            "attn": {
                "num_heads": num_heads,
                "in_proj_w_t": in_proj_w.T, "in_proj_b": jnp.zeros((3 * E,), jnp.float32),
                "out_proj_w_t": out_proj_w.T, "out_proj_b": jnp.zeros((E,), jnp.float32),
            },
            "fc1_w_t": fc1_w.T, "fc1_b": jnp.zeros((4 * E,), jnp.float32),
            "fc2_w_t": fc2_w.T, "fc2_b": jnp.zeros((E,), jnp.float32),
        })
    return params


# ----------------------------- pure-JAX reference ------------------------------

def reference_forward(x_in, params):
    S, B, E = x_in.shape
    x = math.sqrt(E) * x_in + sinusoidal_pos_emb(S, E)[:, None, :]

    def ln(t, g, b):
        mu = jnp.mean(t, -1, keepdims=True)
        var = jnp.mean((t - mu) ** 2, -1, keepdims=True)
        return (t - mu) / jnp.sqrt(var + LN_EPS) * g + b

    for lp in params["layers"]:
        H = lp["attn"]["num_heads"]
        Dh = E // H
        res = x
        h = ln(x, lp["ln0_g"], lp["ln0_b"])
        qkv = h @ lp["attn"]["in_proj_w_t"] + lp["attn"]["in_proj_b"]
        q, k, v = jnp.split(qkv, 3, axis=-1)
        heads = lambda t: t.reshape(S, B, H, Dh).transpose(1, 2, 0, 3)
        sc = jnp.einsum('bhqd,bhkd->bhqk', heads(q) * Dh ** -0.5, heads(k))
        p = jax.nn.softmax(sc, axis=-1)
        oh = jnp.einsum('bhqk,bhkd->bhqd', p, heads(v))
        o = oh.transpose(2, 0, 1, 3).reshape(S, B, E)
        o = o @ lp["attn"]["out_proj_w_t"] + lp["attn"]["out_proj_b"]
        x = res + o
        res = x
        h = ln(x, lp["ln1_g"], lp["ln1_b"])
        h = jnp.maximum(h @ lp["fc1_w_t"] + lp["fc1_b"], 0.0)
        h = h @ lp["fc2_w_t"] + lp["fc2_b"]
        x = res + h
    return ln(x, params["final_ln_g"], params["final_ln_b"])


# ----------------------------- main ------------------------------

if __name__ == "__main__":
    S, B, E = 8, 2, 40          # seq_len, batch, embed_dim (divisible by 10 heads)
    num_layers = 2

    key = jax.random.PRNGKey(0)
    kx, kp = jax.random.split(key)
    x_in = jax.random.normal(kx, (S, B, E), dtype=jnp.float32)   # (src_len, batch, embed_dim)
    params = init_params(kp, E, num_layers)
    packed = pack_params(params)
    num_heads = params["layers"][0]["attn"]["num_heads"]

    # TODO(synk): dropout (embed/attn/relu/res) is identity in inference mode;
    # the attn_mask=True (future mask) and cross-modal (x_in_k/x_in_v) branches
    # of the original module are not implemented (defaults used).
    out = transformer_encoder(x_in, packed, num_heads=num_heads)
    out = jax.block_until_ready(out)
    assert out.shape == (S, B, E)

    ref = jax.block_until_ready(reference_forward(x_in, params))
    assert jnp.allclose(out, ref, rtol=5e-3, atol=5e-3), "mismatch vs pure-JAX reference"

    print("KERNEL_OK")
</pallas_src>

<mosaic_0001>
module attributes {stable_mosaic.version = 11 : i64} {
  func.func @_encoder_kernel(%arg0: memref<8x2x40xf32, #tpu.memory_space<vmem>>, %arg1: memref<8x40xf32, #tpu.memory_space<vmem>>, %arg2: memref<2x40x120xf32, #tpu.memory_space<vmem>>, %arg3: memref<2x1x120xf32, #tpu.memory_space<vmem>>, %arg4: memref<2x40x40xf32, #tpu.memory_space<vmem>>, %arg5: memref<2x1x40xf32, #tpu.memory_space<vmem>>, %arg6: memref<2x40x160xf32, #tpu.memory_space<vmem>>, %arg7: memref<2x1x160xf32, #tpu.memory_space<vmem>>, %arg8: memref<2x160x40xf32, #tpu.memory_space<vmem>>, %arg9: memref<2x1x40xf32, #tpu.memory_space<vmem>>, %arg10: memref<2x1x40xf32, #tpu.memory_space<vmem>>, %arg11: memref<2x1x40xf32, #tpu.memory_space<vmem>>, %arg12: memref<2x1x40xf32, #tpu.memory_space<vmem>>, %arg13: memref<2x1x40xf32, #tpu.memory_space<vmem>>, %arg14: memref<1x40xf32, #tpu.memory_space<vmem>>, %arg15: memref<1x40xf32, #tpu.memory_space<vmem>>, %arg16: memref<8x2x40xf32, #tpu.memory_space<vmem>>) attributes {dimension_semantics = [], scalar_prefetch = 0 : i64, scratch_operands = 0 : i64, tpu.core_type = #tpu.core_type<tc>} {
    %c0 = arith.constant 0 : index
    %c0_0 = arith.constant 0 : index
    %0 = vector.load %arg1[%c0, %c0_0] : memref<8x40xf32, #tpu.memory_space<vmem>>, vector<8x40xf32>
    %c0_1 = arith.constant 0 : index
    %c0_2 = arith.constant 0 : index
    %c0_3 = arith.constant 0 : index
    %1 = vector.load %arg0[%c0_1, %c0_2, %c0_3] : memref<8x2x40xf32, #tpu.memory_space<vmem>>, vector<8x1x40xf32>
    %2 = vector.shape_cast %1 : vector<8x1x40xf32> to vector<8x40xf32>
    %cst = arith.constant 6.32455539 : f32
    %3 = vector.broadcast %cst : f32 to vector<8x40xf32>
    %4 = arith.mulf %3, %2 : vector<8x40xf32>
    %5 = arith.addf %4, %0 : vector<8x40xf32>
    %c0_4 = arith.constant 0 : index
    %c1 = arith.constant 1 : index
    %c0_5 = arith.constant 0 : index
    %6 = vector.load %arg0[%c0_4, %c1, %c0_5] : memref<8x2x40xf32, #tpu.memory_space<vmem>>, vector<8x1x40xf32>
    %7 = vector.shape_cast %6 : vector<8x1x40xf32> to vector<8x40xf32>
    %cst_6 = arith.constant 6.32455539 : f32
    %8 = vector.broadcast %cst_6 : f32 to vector<8x40xf32>
    %9 = arith.mulf %8, %7 : vector<8x40xf32>
    %10 = arith.addf %9, %0 : vector<8x40xf32>
    %11 = tpu.concatenate %5, %10 in 0 : vector<8x40xf32>, vector<8x40xf32> -> vector<16x40xf32>
    %c0_7 = arith.constant 0 : index
    %c0_8 = arith.constant 0 : index
    %c0_9 = arith.constant 0 : index
    %12 = vector.load %arg10[%c0_7, %c0_8, %c0_9] : memref<2x1x40xf32, #tpu.memory_space<vmem>>, vector<1x1x40xf32>
    %13 = vector.shape_cast %12 : vector<1x1x40xf32> to vector<1x40xf32>
    %c0_10 = arith.constant 0 : index
    %c0_11 = arith.constant 0 : index
    %c0_12 = arith.constant 0 : index
    %14 = vector.load %arg11[%c0_10, %c0_11, %c0_12] : memref<2x1x40xf32, #tpu.memory_space<vmem>>, vector<1x1x40xf32>
    %15 = vector.shape_cast %14 : vector<1x1x40xf32> to vector<1x40xf32>
    %cst_13 = arith.constant dense<0.000000e+00> : vector<16xf32>
    %16 = vector.multi_reduction <add>, %11, %cst_13 [1] : vector<16x40xf32> to vector<16xf32>
    %17 = vector.shape_cast %16 : vector<16xf32> to vector<16x1xf32>
    %cst_14 = arith.constant 4.000000e+01 : f32
    %18 = vector.broadcast %cst_14 : f32 to vector<16x1xf32>
    %19 = arith.divf %17, %18 : vector<16x1xf32>
    %20 = vector.broadcast %19 : vector<16x1xf32> to vector<16x40xf32>
    %21 = arith.subf %11, %20 : vector<16x40xf32>
    %22 = arith.mulf %21, %21 : vector<16x40xf32>
    %cst_15 = arith.constant dense<0.000000e+00> : vector<16xf32>
    %23 = vector.multi_reduction <add>, %22, %cst_15 [1] : vector<16x40xf32> to vector<16xf32>
    %24 = vector.shape_cast %23 : vector<16xf32> to vector<16x1xf32>
    %cst_16 = arith.constant 4.000000e+01 : f32
    %25 = vector.broadcast %cst_16 : f32 to vector<16x1xf32>
    %26 = arith.divf %24, %25 : vector<16x1xf32>
    %cst_17 = arith.constant 9.99999974E-6 : f32
    %27 = vector.broadcast %cst_17 : f32 to vector<16x1xf32>
    %28 = arith.addf %26, %27 : vector<16x1xf32>
    %29 = math.rsqrt %28 : vector<16x1xf32>
    %30 = vector.broadcast %29 : vector<16x1xf32> to vector<16x40xf32>
    %31 = arith.mulf %21, %30 : vector<16x40xf32>
    %32 = vector.broadcast %13 : vector<1x40xf32> to vector<16x40xf32>
    %33 = arith.mulf %31, %32 : vector<16x40xf32>
    %34 = vector.broadcast %15 : vector<1x40xf32> to vector<16x40xf32>
    %35 = arith.addf %33, %34 : vector<16x40xf32>
    %c0_18 = arith.constant 0 : index
    %c0_19 = arith.constant 0 : index
    %c0_20 = arith.constant 0 : index
    %36 = vector.load %arg2[%c0_18, %c0_19, %c0_20] : memref<2x40x120xf32, #tpu.memory_space<vmem>>, vector<1x40x120xf32>
    %37 = vector.shape_cast %36 : vector<1x40x120xf32> to vector<40x120xf32>
    %cst_21 = arith.constant dense<0.000000e+00> : vector<16x120xf32>
    %38 = tpu.matmul %35, %37, %cst_21 {dimension_numbers = #tpu.dot_dimension_numbers<[1], [0], [0], [1], [0, 0, 1, 1], [], []>} : vector<16x40xf32>, vector<40x120xf32>, vector<16x120xf32> -> vector<16x120xf32>
    %c0_22 = arith.constant 0 : index
    %c0_23 = arith.constant 0 : index
    %c0_24 = arith.constant 0 : index
    %39 = vector.load %arg3[%c0_22, %c0_23, %c0_24] : memref<2x1x120xf32, #tpu.memory_space<vmem>>, vector<1x1x120xf32>
    %40 = vector.shape_cast %39 : vector<1x1x120xf32> to vector<1x120xf32>
    %41 = vector.broadcast %40 : vector<1x120xf32> to vector<16x120xf32>
    %42 = arith.addf %38, %41 : vector<16x120xf32>
    %43 = vector.shape_cast %42 : vector<16x120xf32> to vector<2x8x120xf32>
    %44 = vector.extract_strided_slice %43 {offsets = [0, 0, 0], sizes = [2, 8, 4], strides = [1, 1, 1]} : vector<2x8x120xf32> to vector<2x8x4xf32>
    %45 = vector.shape_cast %44 : vector<2x8x4xf32> to vector<2x1x8x4xf32>
    %46 = vector.extract_strided_slice %43 {offsets = [0, 0, 4], sizes = [2, 8, 4], strides = [1, 1, 1]} : vector<2x8x120xf32> to vector<2x8x4xf32>
    %47 = vector.shape_cast %46 : vector<2x8x4xf32> to vector<2x1x8x4xf32>
    %48 = vector.extract_strided_slice %43 {offsets = [0, 0, 8], sizes = [2, 8, 4], strides = [1, 1, 1]} : vector<2x8x120xf32> to vector<2x8x4xf32>
    %49 = vector.shape_cast %48 : vector<2x8x4xf32> to vector<2x1x8x4xf32>
    %50 = vector.extract_strided_slice %43 {offsets = [0, 0, 12], sizes = [2, 8, 4], strides = [1, 1, 1]} : vector<2x8x120xf32> to vector<2x8x4xf32>
    %51 = vector.shape_cast %50 : vector<2x8x4xf32> to vector<2x1x8x4xf32>
    %52 = vector.extract_strided_slice %43 {offsets = [0, 0, 16], sizes = [2, 8, 4], strides = [1, 1, 1]} : vector<2x8x120xf32> to vector<2x8x4xf32>
    %53 = vector.shape_cast %52 : vector<2x8x4xf32> to vector<2x1x8x4xf32>
    %54 = vector.extract_strided_slice %43 {offsets = [0, 0, 20], sizes = [2, 8, 4], strides = [1, 1, 1]} : vector<2x8x120xf32> to vector<2x8x4xf32>
    %55 = vector.shape_cast %54 : vector<2x8x4xf32> to vector<2x1x8x4xf32>
    %56 = vector.extract_strided_slice %43 {offsets = [0, 0, 24], sizes = [2, 8, 4], strides = [1, 1, 1]} : vector<2x8x120xf32> to vector<2x8x4xf32>
    %57 = vector.shape_cast %56 : vector<2x8x4xf32> to vector<2x1x8x4xf32>
    %58 = vector.extract_strided_slice %43 {offsets = [0, 0, 28], sizes = [2, 8, 4], strides = [1, 1, 1]} : vector<2x8x120xf32> to vector<2x8x4xf32>
    %59 = vector.shape_cast %58 : vector<2x8x4xf32> to vector<2x1x8x4xf32>
    %60 = vector.extract_strided_slice %43 {offsets = [0, 0, 32], sizes = [2, 8, 4], strides = [1, 1, 1]} : vector<2x8x120xf32> to vector<2x8x4xf32>
    %61 = vector.shape_cast %60 : vector<2x8x4xf32> to vector<2x1x8x4xf32>
    %62 = vector.extract_strided_slice %43 {offsets = [0, 0, 36], sizes = [2, 8, 4], strides = [1, 1, 1]} : vector<2x8x120xf32> to vector<2x8x4xf32>
    %63 = vector.shape_cast %62 : vector<2x8x4xf32> to vector<2x1x8x4xf32>
    %64 = tpu.concatenate %45, %47, %49, %51, %53, %55, %57, %59, %61, %63 in 1 : vector<2x1x8x4xf32>, vector<2x1x8x4xf32>, vector<2x1x8x4xf32>, vector<2x1x8x4xf32>, vector<2x1x8x4xf32>, vector<2x1x8x4xf32>, vector<2x1x8x4xf32>, vector<2x1x8x4xf32>, vector<2x1x8x4xf32>, vector<2x1x8x4xf32> -> vector<2x10x8x4xf32>
    %65 = vector.shape_cast %64 : vector<2x10x8x4xf32> to vector<20x8x4xf32>
    %66 = vector.extract_strided_slice %43 {offsets = [0, 0, 40], sizes = [2, 8, 4], strides = [1, 1, 1]} : vector<2x8x120xf32> to vector<2x8x4xf32>
    %67 = vector.shape_cast %66 : vector<2x8x4xf32> to vector<2x1x8x4xf32>
    %68 = vector.extract_strided_slice %43 {offsets = [0, 0, 44], sizes = [2, 8, 4], strides = [1, 1, 1]} : vector<2x8x120xf32> to vector<2x8x4xf32>
    %69 = vector.shape_cast %68 : vector<2x8x4xf32> to vector<2x1x8x4xf32>
    %70 = vector.extract_strided_slice %43 {offsets = [0, 0, 48], sizes = [2, 8, 4], strides = [1, 1, 1]} : vector<2x8x120xf32> to vector<2x8x4xf32>
    %71 = vector.shape_cast %70 : vector<2x8x4xf32> to vector<2x1x8x4xf32>
    %72 = vector.extract_strided_slice %43 {offsets = [0, 0, 52], sizes = [2, 8, 4], strides = [1, 1, 1]} : vector<2x8x120xf32> to vector<2x8x4xf32>
    %73 = vector.shape_cast %72 : vector<2x8x4xf32> to vector<2x1x8x4xf32>
    %74 = vector.extract_strided_slice %43 {offsets = [0, 0, 56], sizes = [2, 8, 4], strides = [1, 1, 1]} : vector<2x8x120xf32> to vector<2x8x4xf32>
    %75 = vector.shape_cast %74 : vector<2x8x4xf32> to vector<2x1x8x4xf32>
    %76 = vector.extract_strided_slice %43 {offsets = [0, 0, 60], sizes = [2, 8, 4], strides = [1, 1, 1]} : vector<2x8x120xf32> to vector<2x8x4xf32>
    %77 = vector.shape_cast %76 : vector<2x8x4xf32> to vector<2x1x8x4xf32>
    %78 = vector.extract_strided_slice %43 {offsets = [0, 0, 64], sizes = [2, 8, 4], strides = [1, 1, 1]} : vector<2x8x120xf32> to vector<2x8x4xf32>
    %79 = vector.shape_cast %78 : vector<2x8x4xf32> to vector<2x1x8x4xf32>
    %80 = vector.extract_strided_slice %43 {offsets = [0, 0, 68], sizes = [2, 8, 4], strides = [1, 1, 1]} : vector<2x8x120xf32> to vector<2x8x4xf32>
    %81 = vector.shape_cast %80 : vector<2x8x4xf32> to vector<2x1x8x4xf32>
    %82 = vector.extract_strided_slice %43 {offsets = [0, 0, 72], sizes = [2, 8, 4], strides = [1, 1, 1]} : vector<2x8x120xf32> to vector<2x8x4xf32>
    %83 = vector.shape_cast %82 : vector<2x8x4xf32> to vector<2x1x8x4xf32>
    %84 = vector.extract_strided_slice %43 {offsets = [0, 0, 76], sizes = [2, 8, 4], strides = [1, 1, 1]} : vector<2x8x120xf32> to vector<2x8x4xf32>
    %85 = vector.shape_cast %84 : vector<2x8x4xf32> to vector<2x1x8x4xf32>
    %86 = tpu.concatenate %67, %69, %71, %73, %75, %77, %79, %81, %83, %85 in 1 : vector<2x1x8x4xf32>, vector<2x1x8x4xf32>, vector<2x1x8x4xf32>, vector<2x1x8x4xf32>, vector<2x1x8x4xf32>, vector<2x1x8x4xf32>, vector<2x1x8x4xf32>, vector<2x1x8x4xf32>, vector<2x1x8x4xf32>, vector<2x1x8x4xf32> -> vector<2x10x8x4xf32>
    %87 = vector.shape_cast %86 : vector<2x10x8x4xf32> to vector<20x8x4xf32>
    %88 = vector.extract_strided_slice %43 {offsets = [0, 0, 80], sizes = [2, 8, 4], strides = [1, 1, 1]} : vector<2x8x120xf32> to vector<2x8x4xf32>
    %89 = vector.shape_cast %88 : vector<2x8x4xf32> to vector<2x1x8x4xf32>
    %90 = vector.extract_strided_slice %43 {offsets = [0, 0, 84], sizes = [2, 8, 4], strides = [1, 1, 1]} : vector<2x8x120xf32> to vector<2x8x4xf32>
    %91 = vector.shape_cast %90 : vector<2x8x4xf32> to vector<2x1x8x4xf32>
    %92 = vector.extract_strided_slice %43 {offsets = [0, 0, 88], sizes = [2, 8, 4], strides = [1, 1, 1]} : vector<2x8x120xf32> to vector<2x8x4xf32>
    %93 = vector.shape_cast %92 : vector<2x8x4xf32> to vector<2x1x8x4xf32>
    %94 = vector.extract_strided_slice %43 {offsets = [0, 0, 92], sizes = [2, 8, 4], strides = [1, 1, 1]} : vector<2x8x120xf32> to vector<2x8x4xf32>
    %95 = vector.shape_cast %94 : vector<2x8x4xf32> to vector<2x1x8x4xf32>
    %96 = vector.extract_strided_slice %43 {offsets = [0, 0, 96], sizes = [2, 8, 4], strides = [1, 1, 1]} : vector<2x8x120xf32> to vector<2x8x4xf32>
    %97 = vector.shape_cast %96 : vector<2x8x4xf32> to vector<2x1x8x4xf32>
    %98 = vector.extract_strided_slice %43 {offsets = [0, 0, 100], sizes = [2, 8, 4], strides = [1, 1, 1]} : vector<2x8x120xf32> to vector<2x8x4xf32>
    %99 = vector.shape_cast %98 : vector<2x8x4xf32> to vector<2x1x8x4xf32>
    %100 = vector.extract_strided_slice %43 {offsets = [0, 0, 104], sizes = [2, 8, 4], strides = [1, 1, 1]} : vector<2x8x120xf32> to vector<2x8x4xf32>
    %101 = vector.shape_cast %100 : vector<2x8x4xf32> to vector<2x1x8x4xf32>
    %102 = vector.extract_strided_slice %43 {offsets = [0, 0, 108], sizes = [2, 8, 4], strides = [1, 1, 1]} : vector<2x8x120xf32> to vector<2x8x4xf32>
    %103 = vector.shape_cast %102 : vector<2x8x4xf32> to vector<2x1x8x4xf32>
    %104 = vector.extract_strided_slice %43 {offsets = [0, 0, 112], sizes = [2, 8, 4], strides = [1, 1, 1]} : vector<2x8x120xf32> to vector<2x8x4xf32>
    %105 = vector.shape_cast %104 : vector<2x8x4xf32> to vector<2x1x8x4xf32>
    %106 = vector.extract_strided_slice %43 {offsets = [0, 0, 116], sizes = [2, 8, 4], strides = [1, 1, 1]} : vector<2x8x120xf32> to vector<2x8x4xf32>
    %107 = vector.shape_cast %106 : vector<2x8x4xf32> to vector<2x1x8x4xf32>
    %108 = tpu.concatenate %89, %91, %93, %95, %97, %99, %101, %103, %105, %107 in 1 : vector<2x1x8x4xf32>, vector<2x1x8x4xf32>, vector<2x1x8x4xf32>, vector<2x1x8x4xf32>, vector<2x1x8x4xf32>, vector<2x1x8x4xf32>, vector<2x1x8x4xf32>, vector<2x1x8x4xf32>, vector<2x1x8x4xf32>, vector<2x1x8x4xf32> -> vector<2x10x8x4xf32>
    %109 = vector.shape_cast %108 : vector<2x10x8x4xf32> to vector<20x8x4xf32>
    %cst_25 = arith.constant dense<0.000000e+00> : vector<20x8x8xf32>
    %110 = tpu.matmul %65, %87, %cst_25 {dimension_numbers = #tpu.dot_dimension_numbers<[2], [2], [1], [1], [0, 0, 0, 1, 1, 1], [0], [0]>} : vector<20x8x4xf32>, vector<20x8x4xf32>, vector<20x8x8xf32> -> vector<20x8x8xf32>
    %cst_26 = arith.constant dense<0xFF800000> : vector<20x8xf32>
    %111 = vector.multi_reduction <maximumf>, %110, %cst_26 [2] : vector<20x8x8xf32> to vector<20x8xf32>
    %112 = vector.shape_cast %111 : vector<20x8xf32> to vector<20x8x1xf32>
    %113 = vector.broadcast %112 : vector<20x8x1xf32> to vector<20x8x8xf32>
    %114 = arith.subf %110, %113 : vector<20x8x8xf32>
    %115 = math.exp %114 : vector<20x8x8xf32>
    %cst_27 = arith.constant dense<0.000000e+00> : vector<20x8xf32>
    %116 = vector.multi_reduction <add>, %115, %cst_27 [2] : vector<20x8x8xf32> to vector<20x8xf32>
    %117 = vector.shape_cast %116 : vector<20x8xf32> to vector<20x8x1xf32>
    %118 = tpu.reciprocal %117 {approx = true} : vector<20x8x1xf32> -> vector<20x8x1xf32>
    %119 = vector.broadcast %118 : vector<20x8x1xf32> to vector<20x8x8xf32>
    %120 = arith.mulf %115, %119 : vector<20x8x8xf32>
    %cst_28 = arith.constant dense<0.000000e+00> : vector<20x8x4xf32>
    %121 = tpu.matmul %120, %109, %cst_28 {dimension_numbers = #tpu.dot_dimension_numbers<[2], [1], [1], [2], [0, 0, 0, 1, 1, 2], [0], [0]>} : vector<20x8x8xf32>, vector<20x8x4xf32>, vector<20x8x4xf32> -> vector<20x8x4xf32>
    %122 = vector.shape_cast %121 : vector<20x8x4xf32> to vector<2x10x8x4xf32>
    %123 = vector.extract_strided_slice %122 {offsets = [0, 0, 0, 0], sizes = [2, 1, 8, 4], strides = [1, 1, 1, 1]} : vector<2x10x8x4xf32> to vector<2x1x8x4xf32>
    %124 = vector.shape_cast %123 : vector<2x1x8x4xf32> to vector<2x8x4xf32>
    %125 = vector.extract_strided_slice %122 {offsets = [0, 1, 0, 0], sizes = [2, 1, 8, 4], strides = [1, 1, 1, 1]} : vector<2x10x8x4xf32> to vector<2x1x8x4xf32>
    %126 = vector.shape_cast %125 : vector<2x1x8x4xf32> to vector<2x8x4xf32>
    %127 = vector.extract_strided_slice %122 {offsets = [0, 2, 0, 0], sizes = [2, 1, 8, 4], strides = [1, 1, 1, 1]} : vector<2x10x8x4xf32> to vector<2x1x8x4xf32>
    %128 = vector.shape_cast %127 : vector<2x1x8x4xf32> to vector<2x8x4xf32>
    %129 = vector.extract_strided_slice %122 {offsets = [0, 3, 0, 0], sizes = [2, 1, 8, 4], strides = [1, 1, 1, 1]} : vector<2x10x8x4xf32> to vector<2x1x8x4xf32>
    %130 = vector.shape_cast %129 : vector<2x1x8x4xf32> to vector<2x8x4xf32>
    %131 = vector.extract_strided_slice %122 {offsets = [0, 4, 0, 0], sizes = [2, 1, 8, 4], strides = [1, 1, 1, 1]} : vector<2x10x8x4xf32> to vector<2x1x8x4xf32>
    %132 = vector.shape_cast %131 : vector<2x1x8x4xf32> to vector<2x8x4xf32>
    %133 = vector.extract_strided_slice %122 {offsets = [0, 5, 0, 0], sizes = [2, 1, 8, 4], strides = [1, 1, 1, 1]} : vector<2x10x8x4xf32> to vector<2x1x8x4xf32>
    %134 = vector.shape_cast %133 : vector<2x1x8x4xf32> to vector<2x8x4xf32>
    %135 = vector.extract_strided_slice %122 {offsets = [0, 6, 0, 0], sizes = [2, 1, 8, 4], strides = [1, 1, 1, 1]} : vector<2x10x8x4xf32> to vector<2x1x8x4xf32>
    %136 = vector.shape_cast %135 : vector<2x1x8x4xf32> to vector<2x8x4xf32>
    %137 = vector.extract_strided_slice %122 {offsets = [0, 7, 0, 0], sizes = [2, 1, 8, 4], strides = [1, 1, 1, 1]} : vector<2x10x8x4xf32> to vector<2x1x8x4xf32>
    %138 = vector.shape_cast %137 : vector<2x1x8x4xf32> to vector<2x8x4xf32>
    %139 = vector.extract_strided_slice %122 {offsets = [0, 8, 0, 0], sizes = [2, 1, 8, 4], strides = [1, 1, 1, 1]} : vector<2x10x8x4xf32> to vector<2x1x8x4xf32>
    %140 = vector.shape_cast %139 : vector<2x1x8x4xf32> to vector<2x8x4xf32>
    %141 = vector.extract_strided_slice %122 {offsets = [0, 9, 0, 0], sizes = [2, 1, 8, 4], strides = [1, 1, 1, 1]} : vector<2x10x8x4xf32> to vector<2x1x8x4xf32>
    %142 = vector.shape_cast %141 : vector<2x1x8x4xf32> to vector<2x8x4xf32>
    %143 = tpu.concatenate %124, %126, %128, %130, %132, %134, %136, %138, %140, %142 in 2 : vector<2x8x4xf32>, vector<2x8x4xf32>, vector<2x8x4xf32>, vector<2x8x4xf32>, vector<2x8x4xf32>, vector<2x8x4xf32>, vector<2x8x4xf32>, vector<2x8x4xf32>, vector<2x8x4xf32>, vector<2x8x4xf32> -> vector<2x8x40xf32>
    %144 = vector.shape_cast %143 : vector<2x8x40xf32> to vector<16x40xf32>
    %c0_29 = arith.constant 0 : index
    %c0_30 = arith.constant 0 : index
    %c0_31 = arith.constant 0 : index
    %145 = vector.load %arg4[%c0_29, %c0_30, %c0_31] : memref<2x40x40xf32, #tpu.memory_space<vmem>>, vector<1x40x40xf32>
    %146 = vector.shape_cast %145 : vector<1x40x40xf32> to vector<40x40xf32>
    %cst_32 = arith.constant dense<0.000000e+00> : vector<16x40xf32>
    %147 = tpu.matmul %144, %146, %cst_32 {dimension_numbers = #tpu.dot_dimension_numbers<[1], [0], [0], [1], [0, 0, 1, 1], [], []>} : vector<16x40xf32>, vector<40x40xf32>, vector<16x40xf32> -> vector<16x40xf32>
    %c0_33 = arith.constant 0 : index
    %c0_34 = arith.constant 0 : index
    %c0_35 = arith.constant 0 : index
    %148 = vector.load %arg5[%c0_33, %c0_34, %c0_35] : memref<2x1x40xf32, #tpu.memory_space<vmem>>, vector<1x1x40xf32>
    %149 = vector.shape_cast %148 : vector<1x1x40xf32> to vector<1x40xf32>
    %150 = vector.broadcast %149 : vector<1x40xf32> to vector<16x40xf32>
    %151 = arith.addf %147, %150 : vector<16x40xf32>
    %152 = arith.addf %151, %11 : vector<16x40xf32>
    %c0_36 = arith.constant 0 : index
    %c0_37 = arith.constant 0 : index
    %c0_38 = arith.constant 0 : index
    %153 = vector.load %arg12[%c0_36, %c0_37, %c0_38] : memref<2x1x40xf32, #tpu.memory_space<vmem>>, vector<1x1x40xf32>
    %154 = vector.shape_cast %153 : vector<1x1x40xf32> to vector<1x40xf32>
    %c0_39 = arith.constant 0 : index
    %c0_40 = arith.constant 0 : index
    %c0_41 = arith.constant 0 : index
    %155 = vector.load %arg13[%c0_39, %c0_40, %c0_41] : memref<2x1x40xf32, #tpu.memory_space<vmem>>, vector<1x1x40xf32>
    %156 = vector.shape_cast %155 : vector<1x1x40xf32> to vector<1x40xf32>
    %cst_42 = arith.constant dense<0.000000e+00> : vector<16xf32>
    %157 = vector.multi_reduction <add>, %152, %cst_42 [1] : vector<16x40xf32> to vector<16xf32>
    %158 = vector.shape_cast %157 : vector<16xf32> to vector<16x1xf32>
    %cst_43 = arith.constant 4.000000e+01 : f32
    %159 = vector.broadcast %cst_43 : f32 to vector<16x1xf32>
    %160 = arith.divf %158, %159 : vector<16x1xf32>
    %161 = vector.broadcast %160 : vector<16x1xf32> to vector<16x40xf32>
    %162 = arith.subf %152, %161 : vector<16x40xf32>
    %163 = arith.mulf %162, %162 : vector<16x40xf32>
    %cst_44 = arith.constant dense<0.000000e+00> : vector<16xf32>
    %164 = vector.multi_reduction <add>, %163, %cst_44 [1] : vector<16x40xf32> to vector<16xf32>
    %165 = vector.shape_cast %164 : vector<16xf32> to vector<16x1xf32>
    %cst_45 = arith.constant 4.000000e+01 : f32
    %166 = vector.broadcast %cst_45 : f32 to vector<16x1xf32>
    %167 = arith.divf %165, %166 : vector<16x1xf32>
    %cst_46 = arith.constant 9.99999974E-6 : f32
    %168 = vector.broadcast %cst_46 : f32 to vector<16x1xf32>
    %169 = arith.addf %167, %168 : vector<16x1xf32>
    %170 = math.rsqrt %169 : vector<16x1xf32>
    %171 = vector.broadcast %170 : vector<16x1xf32> to vector<16x40xf32>
    %172 = arith.mulf %162, %171 : vector<16x40xf32>
    %173 = vector.broadcast %154 : vector<1x40xf32> to vector<16x40xf32>
    %174 = arith.mulf %172, %173 : vector<16x40xf32>
    %175 = vector.broadcast %156 : vector<1x40xf32> to vector<16x40xf32>
    %176 = arith.addf %174, %175 : vector<16x40xf32>
    %c0_47 = arith.constant 0 : index
    %c0_48 = arith.constant 0 : index
    %c0_49 = arith.constant 0 : index
    %177 = vector.load %arg6[%c0_47, %c0_48, %c0_49] : memref<2x40x160xf32, #tpu.memory_space<vmem>>, vector<1x40x160xf32>
    %178 = vector.shape_cast %177 : vector<1x40x160xf32> to vector<40x160xf32>
    %cst_50 = arith.constant dense<0.000000e+00> : vector<16x160xf32>
    %179 = tpu.matmul %176, %178, %cst_50 {dimension_numbers = #tpu.dot_dimension_numbers<[1], [0], [0], [1], [0, 0, 1, 1], [], []>} : vector<16x40xf32>, vector<40x160xf32>, vector<16x160xf32> -> vector<16x160xf32>
    %c0_51 = arith.constant 0 : index
    %c0_52 = arith.constant 0 : index
    %c0_53 = arith.constant 0 : index
    %180 = vector.load %arg7[%c0_51, %c0_52, %c0_53] : memref<2x1x160xf32, #tpu.memory_space<vmem>>, vector<1x1x160xf32>
    %181 = vector.shape_cast %180 : vector<1x1x160xf32> to vector<1x160xf32>
    %182 = vector.broadcast %181 : vector<1x160xf32> to vector<16x160xf32>
    %183 = arith.addf %179, %182 : vector<16x160xf32>
    %cst_54 = arith.constant 0.000000e+00 : f32
    %184 = vector.broadcast %cst_54 : f32 to vector<16x160xf32>
    %185 = arith.maximumf %183, %184 : vector<16x160xf32>
    %c0_55 = arith.constant 0 : index
    %c0_56 = arith.constant 0 : index
    %c0_57 = arith.constant 0 : index
    %186 = vector.load %arg8[%c0_55, %c0_56, %c0_57] : memref<2x160x40xf32, #tpu.memory_space<vmem>>, vector<1x160x40xf32>
    %187 = vector.shape_cast %186 : vector<1x160x40xf32> to vector<160x40xf32>
    %cst_58 = arith.constant dense<0.000000e+00> : vector<16x40xf32>
    %188 = tpu.matmul %185, %187, %cst_58 {dimension_numbers = #tpu.dot_dimension_numbers<[1], [0], [0], [1], [0, 0, 1, 1], [], []>} : vector<16x160xf32>, vector<160x40xf32>, vector<16x40xf32> -> vector<16x40xf32>
    %c0_59 = arith.constant 0 : index
    %c0_60 = arith.constant 0 : index
    %c0_61 = arith.constant 0 : index
    %189 = vector.load %arg9[%c0_59, %c0_60, %c0_61] : memref<2x1x40xf32, #tpu.memory_space<vmem>>, vector<1x1x40xf32>
    %190 = vector.shape_cast %189 : vector<1x1x40xf32> to vector<1x40xf32>
    %191 = vector.broadcast %190 : vector<1x40xf32> to vector<16x40xf32>
    %192 = arith.addf %188, %191 : vector<16x40xf32>
    %193 = arith.addf %192, %152 : vector<16x40xf32>
    %c1_62 = arith.constant 1 : index
    %c0_63 = arith.constant 0 : index
    %c0_64 = arith.constant 0 : index
    %194 = vector.load %arg10[%c1_62, %c0_63, %c0_64] : memref<2x1x40xf32, #tpu.memory_space<vmem>>, vector<1x1x40xf32>
    %195 = vector.shape_cast %194 : vector<1x1x40xf32> to vector<1x40xf32>
    %c1_65 = arith.constant 1 : index
    %c0_66 = arith.constant 0 : index
    %c0_67 = arith.constant 0 : index
    %196 = vector.load %arg11[%c1_65, %c0_66, %c0_67] : memref<2x1x40xf32, #tpu.memory_space<vmem>>, vector<1x1x40xf32>
    %197 = vector.shape_cast %196 : vector<1x1x40xf32> to vector<1x40xf32>
    %cst_68 = arith.constant dense<0.000000e+00> : vector<16xf32>
    %198 = vector.multi_reduction <add>, %193, %cst_68 [1] : vector<16x40xf32> to vector<16xf32>
    %199 = vector.shape_cast %198 : vector<16xf32> to vector<16x1xf32>
    %cst_69 = arith.constant 4.000000e+01 : f32
    %200 = vector.broadcast %cst_69 : f32 to vector<16x1xf32>
    %201 = arith.divf %199, %200 : vector<16x1xf32>
    %202 = vector.broadcast %201 : vector<16x1xf32> to vector<16x40xf32>
    %203 = arith.subf %193, %202 : vector<16x40xf32>
    %204 = arith.mulf %203, %203 : vector<16x40xf32>
    %cst_70 = arith.constant dense<0.000000e+00> : vector<16xf32>
    %205 = vector.multi_reduction <add>, %204, %cst_70 [1] : vector<16x40xf32> to vector<16xf32>
    %206 = vector.shape_cast %205 : vector<16xf32> to vector<16x1xf32>
    %cst_71 = arith.constant 4.000000e+01 : f32
    %207 = vector.broadcast %cst_71 : f32 to vector<16x1xf32>
    %208 = arith.divf %206, %207 : vector<16x1xf32>
    %cst_72 = arith.constant 9.99999974E-6 : f32
    %209 = vector.broadcast %cst_72 : f32 to vector<16x1xf32>
    %210 = arith.addf %208, %209 : vector<16x1xf32>
    %211 = math.rsqrt %210 : vector<16x1xf32>
    %212 = vector.broadcast %211 : vector<16x1xf32> to vector<16x40xf32>
    %213 = arith.mulf %203, %212 : vector<16x40xf32>
    %214 = vector.broadcast %195 : vector<1x40xf32> to vector<16x40xf32>
    %215 = arith.mulf %213, %214 : vector<16x40xf32>
    %216 = vector.broadcast %197 : vector<1x40xf32> to vector<16x40xf32>
    %217 = arith.addf %215, %216 : vector<16x40xf32>
    %c1_73 = arith.constant 1 : index
    %c0_74 = arith.constant 0 : index
    %c0_75 = arith.constant 0 : index
    %218 = vector.load %arg2[%c1_73, %c0_74, %c0_75] : memref<2x40x120xf32, #tpu.memory_space<vmem>>, vector<1x40x120xf32>
    %219 = vector.shape_cast %218 : vector<1x40x120xf32> to vector<40x120xf32>
    %cst_76 = arith.constant dense<0.000000e+00> : vector<16x120xf32>
    %220 = tpu.matmul %217, %219, %cst_76 {dimension_numbers = #tpu.dot_dimension_numbers<[1], [0], [0], [1], [0, 0, 1, 1], [], []>} : vector<16x40xf32>, vector<40x120xf32>, vector<16x120xf32> -> vector<16x120xf32>
    %c1_77 = arith.constant 1 : index
    %c0_78 = arith.constant 0 : index
    %c0_79 = arith.constant 0 : index
    %221 = vector.load %arg3[%c1_77, %c0_78, %c0_79] : memref<2x1x120xf32, #tpu.memory_space<vmem>>, vector<1x1x120xf32>
    %222 = vector.shape_cast %221 : vector<1x1x120xf32> to vector<1x120xf32>
    %223 = vector.broadcast %222 : vector<1x120xf32> to vector<16x120xf32>
    %224 = arith.addf %220, %223 : vector<16x120xf32>
    %225 = vector.shape_cast %224 : vector<16x120xf32> to vector<2x8x120xf32>
    %226 = vector.extract_strided_slice %225 {offsets = [0, 0, 0], sizes = [2, 8, 4], strides = [1, 1, 1]} : vector<2x8x120xf32> to vector<2x8x4xf32>
    %227 = vector.shape_cast %226 : vector<2x8x4xf32> to vector<2x1x8x4xf32>
    %228 = vector.extract_strided_slice %225 {offsets = [0, 0, 4], sizes = [2, 8, 4], strides = [1, 1, 1]} : vector<2x8x120xf32> to vector<2x8x4xf32>
    %229 = vector.shape_cast %228 : vector<2x8x4xf32> to vector<2x1x8x4xf32>
    %230 = vector.extract_strided_slice %225 {offsets = [0, 0, 8], sizes = [2, 8, 4], strides = [1, 1, 1]} : vector<2x8x120xf32> to vector<2x8x4xf32>
    %231 = vector.shape_cast %230 : vector<2x8x4xf32> to vector<2x1x8x4xf32>
    %232 = vector.extract_strided_slice %225 {offsets = [0, 0, 12], sizes = [2, 8, 4], strides = [1, 1, 1]} : vector<2x8x120xf32> to vector<2x8x4xf32>
    %233 = vector.shape_cast %232 : vector<2x8x4xf32> to vector<2x1x8x4xf32>
    %234 = vector.extract_strided_slice %225 {offsets = [0, 0, 16], sizes = [2, 8, 4], strides = [1, 1, 1]} : vector<2x8x120xf32> to vector<2x8x4xf32>
    %235 = vector.shape_cast %234 : vector<2x8x4xf32> to vector<2x1x8x4xf32>
    %236 = vector.extract_strided_slice %225 {offsets = [0, 0, 20], sizes = [2, 8, 4], strides = [1, 1, 1]} : vector<2x8x120xf32> to vector<2x8x4xf32>
    %237 = vector.shape_cast %236 : vector<2x8x4xf32> to vector<2x1x8x4xf32>
    %238 = vector.extract_strided_slice %225 {offsets = [0, 0, 24], sizes = [2, 8, 4], strides = [1, 1, 1]} : vector<2x8x120xf32> to vector<2x8x4xf32>
    %239 = vector.shape_cast %238 : vector<2x8x4xf32> to vector<2x1x8x4xf32>
    %240 = vector.extract_strided_slice %225 {offsets = [0, 0, 28], sizes = [2, 8, 4], strides = [1, 1, 1]} : vector<2x8x120xf32> to vector<2x8x4xf32>
    %241 = vector.shape_cast %240 : vector<2x8x4xf32> to vector<2x1x8x4xf32>
    %242 = vector.extract_strided_slice %225 {offsets = [0, 0, 32], sizes = [2, 8, 4], strides = [1, 1, 1]} : vector<2x8x120xf32> to vector<2x8x4xf32>
    %243 = vector.shape_cast %242 : vector<2x8x4xf32> to vector<2x1x8x4xf32>
    %244 = vector.extract_strided_slice %225 {offsets = [0, 0, 36], sizes = [2, 8, 4], strides = [1, 1, 1]} : vector<2x8x120xf32> to vector<2x8x4xf32>
    %245 = vector.shape_cast %244 : vector<2x8x4xf32> to vector<2x1x8x4xf32>
    %246 = tpu.concatenate %227, %229, %231, %233, %235, %237, %239, %241, %243, %245 in 1 : vector<2x1x8x4xf32>, vector<2x1x8x4xf32>, vector<2x1x8x4xf32>, vector<2x1x8x4xf32>, vector<2x1x8x4xf32>, vector<2x1x8x4xf32>, vector<2x1x8x4xf32>, vector<2x1x8x4xf32>, vector<2x1x8x4xf32>, vector<2x1x8x4xf32> -> vector<2x10x8x4xf32>
    %247 = vector.shape_cast %246 : vector<2x10x8x4xf32> to vector<20x8x4xf32>
    %248 = vector.extract_strided_slice %225 {offsets = [0, 0, 40], sizes = [2, 8, 4], strides = [1, 1, 1]} : vector<2x8x120xf32> to vector<2x8x4xf32>
    %249 = vector.shape_cast %248 : vector<2x8x4xf32> to vector<2x1x8x4xf32>
    %250 = vector.extract_strided_slice %225 {offsets = [0, 0, 44], sizes = [2, 8, 4], strides = [1, 1, 1]} : vector<2x8x120xf32> to vector<2x8x4xf32>
    %251 = vector.shape_cast %250 : vector<2x8x4xf32> to vector<2x1x8x4xf32>
    %252 = vector.extract_strided_slice %225 {offsets = [0, 0, 48], sizes = [2, 8, 4], strides = [1, 1, 1]} : vector<2x8x120xf32> to vector<2x8x4xf32>
    %253 = vector.shape_cast %252 : vector<2x8x4xf32> to vector<2x1x8x4xf32>
    %254 = vector.extract_strided_slice %225 {offsets = [0, 0, 52], sizes = [2, 8, 4], strides = [1, 1, 1]} : vector<2x8x120xf32> to vector<2x8x4xf32>
    %255 = vector.shape_cast %254 : vector<2x8x4xf32> to vector<2x1x8x4xf32>
    %256 = vector.extract_strided_slice %225 {offsets = [0, 0, 56], sizes = [2, 8, 4], strides = [1, 1, 1]} : vector<2x8x120xf32> to vector<2x8x4xf32>
    %257 = vector.shape_cast %256 : vector<2x8x4xf32> to vector<2x1x8x4xf32>
    %258 = vector.extract_strided_slice %225 {offsets = [0, 0, 60], sizes = [2, 8, 4], strides = [1, 1, 1]} : vector<2x8x120xf32> to vector<2x8x4xf32>
    %259 = vector.shape_cast %258 : vector<2x8x4xf32> to vector<2x1x8x4xf32>
    %260 = vector.extract_strided_slice %225 {offsets = [0, 0, 64], sizes = [2, 8, 4], strides = [1, 1, 1]} : vector<2x8x120xf32> to vector<2x8x4xf32>
    %261 = vector.shape_cast %260 : vector<2x8x4xf32> to vector<2x1x8x4xf32>
    %262 = vector.extract_strided_slice %225 {offsets = [0, 0, 68], sizes = [2, 8, 4], strides = [1, 1, 1]} : vector<2x8x120xf32> to vector<2x8x4xf32>
    %263 = vector.shape_cast %262 : vector<2x8x4xf32> to vector<2x1x8x4xf32>
    %264 = vector.extract_strided_slice %225 {offsets = [0, 0, 72], sizes = [2, 8, 4], strides = [1, 1, 1]} : vector<2x8x120xf32> to vector<2x8x4xf32>
    %265 = vector.shape_cast %264 : vector<2x8x4xf32> to vector<2x1x8x4xf32>
    %266 = vector.extract_strided_slice %225 {offsets = [0, 0, 76], sizes = [2, 8, 4], strides = [1, 1, 1]} : vector<2x8x120xf32> to vector<2x8x4xf32>
    %267 = vector.shape_cast %266 : vector<2x8x4xf32> to vector<2x1x8x4xf32>
    %268 = tpu.concatenate %249, %251, %253, %255, %257, %259, %261, %263, %265, %267 in 1 : vector<2x1x8x4xf32>, vector<2x1x8x4xf32>, vector<2x1x8x4xf32>, vector<2x1x8x4xf32>, vector<2x1x8x4xf32>, vector<2x1x8x4xf32>, vector<2x1x8x4xf32>, vector<2x1x8x4xf32>, vector<2x1x8x4xf32>, vector<2x1x8x4xf32> -> vector<2x10x8x4xf32>
    %269 = vector.shape_cast %268 : vector<2x10x8x4xf32> to vector<20x8x4xf32>
    %270 = vector.extract_strided_slice %225 {offsets = [0, 0, 80], sizes = [2, 8, 4], strides = [1, 1, 1]} : vector<2x8x120xf32> to vector<2x8x4xf32>
    %271 = vector.shape_cast %270 : vector<2x8x4xf32> to vector<2x1x8x4xf32>
    %272 = vector.extract_strided_slice %225 {offsets = [0, 0, 84], sizes = [2, 8, 4], strides = [1, 1, 1]} : vector<2x8x120xf32> to vector<2x8x4xf32>
    %273 = vector.shape_cast %272 : vector<2x8x4xf32> to vector<2x1x8x4xf32>
    %274 = vector.extract_strided_slice %225 {offsets = [0, 0, 88], sizes = [2, 8, 4], strides = [1, 1, 1]} : vector<2x8x120xf32> to vector<2x8x4xf32>
    %275 = vector.shape_cast %274 : vector<2x8x4xf32> to vector<2x1x8x4xf32>
    %276 = vector.extract_strided_slice %225 {offsets = [0, 0, 92], sizes = [2, 8, 4], strides = [1, 1, 1]} : vector<2x8x120xf32> to vector<2x8x4xf32>
    %277 = vector.shape_cast %276 : vector<2x8x4xf32> to vector<2x1x8x4xf32>
    %278 = vector.extract_strided_slice %225 {offsets = [0, 0, 96], sizes = [2, 8, 4], strides = [1, 1, 1]} : vector<2x8x120xf32> to vector<2x8x4xf32>
    %279 = vector.shape_cast %278 : vector<2x8x4xf32> to vector<2x1x8x4xf32>
    %280 = vector.extract_strided_slice %225 {offsets = [0, 0, 100], sizes = [2, 8, 4], strides = [1, 1, 1]} : vector<2x8x120xf32> to vector<2x8x4xf32>
    %281 = vector.shape_cast %280 : vector<2x8x4xf32> to vector<2x1x8x4xf32>
    %282 = vector.extract_strided_slice %225 {offsets = [0, 0, 104], sizes = [2, 8, 4], strides = [1, 1, 1]} : vector<2x8x120xf32> to vector<2x8x4xf32>
    %283 = vector.shape_cast %282 : vector<2x8x4xf32> to vector<2x1x8x4xf32>
    %284 = vector.extract_strided_slice %225 {offsets = [0, 0, 108], sizes = [2, 8, 4], strides = [1, 1, 1]} : vector<2x8x120xf32> to vector<2x8x4xf32>
    %285 = vector.shape_cast %284 : vector<2x8x4xf32> to vector<2x1x8x4xf32>
    %286 = vector.extract_strided_slice %225 {offsets = [0, 0, 112], sizes = [2, 8, 4], strides = [1, 1, 1]} : vector<2x8x120xf32> to vector<2x8x4xf32>
    %287 = vector.shape_cast %286 : vector<2x8x4xf32> to vector<2x1x8x4xf32>
    %288 = vector.extract_strided_slice %225 {offsets = [0, 0, 116], sizes = [2, 8, 4], strides = [1, 1, 1]} : vector<2x8x120xf32> to vector<2x8x4xf32>
    %289 = vector.shape_cast %288 : vector<2x8x4xf32> to vector<2x1x8x4xf32>
    %290 = tpu.concatenate %271, %273, %275, %277, %279, %281, %283, %285, %287, %289 in 1 : vector<2x1x8x4xf32>, vector<2x1x8x4xf32>, vector<2x1x8x4xf32>, vector<2x1x8x4xf32>, vector<2x1x8x4xf32>, vector<2x1x8x4xf32>, vector<2x1x8x4xf32>, vector<2x1x8x4xf32>, vector<2x1x8x4xf32>, vector<2x1x8x4xf32> -> vector<2x10x8x4xf32>
    %291 = vector.shape_cast %290 : vector<2x10x8x4xf32> to vector<20x8x4xf32>
    %cst_80 = arith.constant dense<0.000000e+00> : vector<20x8x8xf32>
    %292 = tpu.matmul %247, %269, %cst_80 {dimension_numbers = #tpu.dot_dimension_numbers<[2], [2], [1], [1], [0, 0, 0, 1, 1, 1], [0], [0]>} : vector<20x8x4xf32>, vector<20x8x4xf32>, vector<20x8x8xf32> -> vector<20x8x8xf32>
    %cst_81 = arith.constant dense<0xFF800000> : vector<20x8xf32>
    %293 = vector.multi_reduction <maximumf>, %292, %cst_81 [2] : vector<20x8x8xf32> to vector<20x8xf32>
    %294 = vector.shape_cast %293 : vector<20x8xf32> to vector<20x8x1xf32>
    %295 = vector.broadcast %294 : vector<20x8x1xf32> to vector<20x8x8xf32>
    %296 = arith.subf %292, %295 : vector<20x8x8xf32>
    %297 = math.exp %296 : vector<20x8x8xf32>
    %cst_82 = arith.constant dense<0.000000e+00> : vector<20x8xf32>
    %298 = vector.multi_reduction <add>, %297, %cst_82 [2] : vector<20x8x8xf32> to vector<20x8xf32>
    %299 = vector.shape_cast %298 : vector<20x8xf32> to vector<20x8x1xf32>
    %300 = tpu.reciprocal %299 {approx = true} : vector<20x8x1xf32> -> vector<20x8x1xf32>
    %301 = vector.broadcast %300 : vector<20x8x1xf32> to vector<20x8x8xf32>
    %302 = arith.mulf %297, %301 : vector<20x8x8xf32>
    %cst_83 = arith.constant dense<0.000000e+00> : vector<20x8x4xf32>
    %303 = tpu.matmul %302, %291, %cst_83 {dimension_numbers = #tpu.dot_dimension_numbers<[2], [1], [1], [2], [0, 0, 0, 1, 1, 2], [0], [0]>} : vector<20x8x8xf32>, vector<20x8x4xf32>, vector<20x8x4xf32> -> vector<20x8x4xf32>
    %304 = vector.shape_cast %303 : vector<20x8x4xf32> to vector<2x10x8x4xf32>
    %305 = vector.extract_strided_slice %304 {offsets = [0, 0, 0, 0], sizes = [2, 1, 8, 4], strides = [1, 1, 1, 1]} : vector<2x10x8x4xf32> to vector<2x1x8x4xf32>
    %306 = vector.shape_cast %305 : vector<2x1x8x4xf32> to vector<2x8x4xf32>
    %307 = vector.extract_strided_slice %304 {offsets = [0, 1, 0, 0], sizes = [2, 1, 8, 4], strides = [1, 1, 1, 1]} : vector<2x10x8x4xf32> to vector<2x1x8x4xf32>
    %308 = vector.shape_cast %307 : vector<2x1x8x4xf32> to vector<2x8x4xf32>
    %309 = vector.extract_strided_slice %304 {offsets = [0, 2, 0, 0], sizes = [2, 1, 8, 4], strides = [1, 1, 1, 1]} : vector<2x10x8x4xf32> to vector<2x1x8x4xf32>
    %310 = vector.shape_cast %309 : vector<2x1x8x4xf32> to vector<2x8x4xf32>
    %311 = vector.extract_strided_slice %304 {offsets = [0, 3, 0, 0], sizes = [2, 1, 8, 4], strides = [1, 1, 1, 1]} : vector<2x10x8x4xf32> to vector<2x1x8x4xf32>
    %312 = vector.shape_cast %311 : vector<2x1x8x4xf32> to vector<2x8x4xf32>
    %313 = vector.extract_strided_slice %304 {offsets = [0, 4, 0, 0], sizes = [2, 1, 8, 4], strides = [1, 1, 1, 1]} : vector<2x10x8x4xf32> to vector<2x1x8x4xf32>
    %314 = vector.shape_cast %313 : vector<2x1x8x4xf32> to vector<2x8x4xf32>
    %315 = vector.extract_strided_slice %304 {offsets = [0, 5, 0, 0], sizes = [2, 1, 8, 4], strides = [1, 1, 1, 1]} : vector<2x10x8x4xf32> to vector<2x1x8x4xf32>
    %316 = vector.shape_cast %315 : vector<2x1x8x4xf32> to vector<2x8x4xf32>
    %317 = vector.extract_strided_slice %304 {offsets = [0, 6, 0, 0], sizes = [2, 1, 8, 4], strides = [1, 1, 1, 1]} : vector<2x10x8x4xf32> to vector<2x1x8x4xf32>
    %318 = vector.shape_cast %317 : vector<2x1x8x4xf32> to vector<2x8x4xf32>
    %319 = vector.extract_strided_slice %304 {offsets = [0, 7, 0, 0], sizes = [2, 1, 8, 4], strides = [1, 1, 1, 1]} : vector<2x10x8x4xf32> to vector<2x1x8x4xf32>
    %320 = vector.shape_cast %319 : vector<2x1x8x4xf32> to vector<2x8x4xf32>
    %321 = vector.extract_strided_slice %304 {offsets = [0, 8, 0, 0], sizes = [2, 1, 8, 4], strides = [1, 1, 1, 1]} : vector<2x10x8x4xf32> to vector<2x1x8x4xf32>
    %322 = vector.shape_cast %321 : vector<2x1x8x4xf32> to vector<2x8x4xf32>
    %323 = vector.extract_strided_slice %304 {offsets = [0, 9, 0, 0], sizes = [2, 1, 8, 4], strides = [1, 1, 1, 1]} : vector<2x10x8x4xf32> to vector<2x1x8x4xf32>
    %324 = vector.shape_cast %323 : vector<2x1x8x4xf32> to vector<2x8x4xf32>
    %325 = tpu.concatenate %306, %308, %310, %312, %314, %316, %318, %320, %322, %324 in 2 : vector<2x8x4xf32>, vector<2x8x4xf32>, vector<2x8x4xf32>, vector<2x8x4xf32>, vector<2x8x4xf32>, vector<2x8x4xf32>, vector<2x8x4xf32>, vector<2x8x4xf32>, vector<2x8x4xf32>, vector<2x8x4xf32> -> vector<2x8x40xf32>
    %326 = vector.shape_cast %325 : vector<2x8x40xf32> to vector<16x40xf32>
    %c1_84 = arith.constant 1 : index
    %c0_85 = arith.constant 0 : index
    %c0_86 = arith.constant 0 : index
    %327 = vector.load %arg4[%c1_84, %c0_85, %c0_86] : memref<2x40x40xf32, #tpu.memory_space<vmem>>, vector<1x40x40xf32>
    %328 = vector.shape_cast %327 : vector<1x40x40xf32> to vector<40x40xf32>
    %cst_87 = arith.constant dense<0.000000e+00> : vector<16x40xf32>
    %329 = tpu.matmul %326, %328, %cst_87 {dimension_numbers = #tpu.dot_dimension_numbers<[1], [0], [0], [1], [0, 0, 1, 1], [], []>} : vector<16x40xf32>, vector<40x40xf32>, vector<16x40xf32> -> vector<16x40xf32>
    %c1_88 = arith.constant 1 : index
    %c0_89 = arith.constant 0 : index
    %c0_90 = arith.constant 0 : index
    %330 = vector.load %arg5[%c1_88, %c0_89, %c0_90] : memref<2x1x40xf32, #tpu.memory_space<vmem>>, vector<1x1x40xf32>
    %331 = vector.shape_cast %330 : vector<1x1x40xf32> to vector<1x40xf32>
    %332 = vector.broadcast %331 : vector<1x40xf32> to vector<16x40xf32>
    %333 = arith.addf %329, %332 : vector<16x40xf32>
    %334 = arith.addf %333, %193 : vector<16x40xf32>
    %c1_91 = arith.constant 1 : index
    %c0_92 = arith.constant 0 : index
    %c0_93 = arith.constant 0 : index
    %335 = vector.load %arg12[%c1_91, %c0_92, %c0_93] : memref<2x1x40xf32, #tpu.memory_space<vmem>>, vector<1x1x40xf32>
    %336 = vector.shape_cast %335 : vector<1x1x40xf32> to vector<1x40xf32>
    %c1_94 = arith.constant 1 : index
    %c0_95 = arith.constant 0 : index
    %c0_96 = arith.constant 0 : index
    %337 = vector.load %arg13[%c1_94, %c0_95, %c0_96] : memref<2x1x40xf32, #tpu.memory_space<vmem>>, vector<1x1x40xf32>
    %338 = vector.shape_cast %337 : vector<1x1x40xf32> to vector<1x40xf32>
    %cst_97 = arith.constant dense<0.000000e+00> : vector<16xf32>
    %339 = vector.multi_reduction <add>, %334, %cst_97 [1] : vector<16x40xf32> to vector<16xf32>
    %340 = vector.shape_cast %339 : vector<16xf32> to vector<16x1xf32>
    %cst_98 = arith.constant 4.000000e+01 : f32
    %341 = vector.broadcast %cst_98 : f32 to vector<16x1xf32>
    %342 = arith.divf %340, %341 : vector<16x1xf32>
    %343 = vector.broadcast %342 : vector<16x1xf32> to vector<16x40xf32>
    %344 = arith.subf %334, %343 : vector<16x40xf32>
    %345 = arith.mulf %344, %344 : vector<16x40xf32>
    %cst_99 = arith.constant dense<0.000000e+00> : vector<16xf32>
    %346 = vector.multi_reduction <add>, %345, %cst_99 [1] : vector<16x40xf32> to vector<16xf32>
    %347 = vector.shape_cast %346 : vector<16xf32> to vector<16x1xf32>
    %cst_100 = arith.constant 4.000000e+01 : f32
    %348 = vector.broadcast %cst_100 : f32 to vector<16x1xf32>
    %349 = arith.divf %347, %348 : vector<16x1xf32>
    %cst_101 = arith.constant 9.99999974E-6 : f32
    %350 = vector.broadcast %cst_101 : f32 to vector<16x1xf32>
    %351 = arith.addf %349, %350 : vector<16x1xf32>
    %352 = math.rsqrt %351 : vector<16x1xf32>
    %353 = vector.broadcast %352 : vector<16x1xf32> to vector<16x40xf32>
    %354 = arith.mulf %344, %353 : vector<16x40xf32>
    %355 = vector.broadcast %336 : vector<1x40xf32> to vector<16x40xf32>
    %356 = arith.mulf %354, %355 : vector<16x40xf32>
    %357 = vector.broadcast %338 : vector<1x40xf32> to vector<16x40xf32>
    %358 = arith.addf %356, %357 : vector<16x40xf32>
    %c1_102 = arith.constant 1 : index
    %c0_103 = arith.constant 0 : index
    %c0_104 = arith.constant 0 : index
    %359 = vector.load %arg6[%c1_102, %c0_103, %c0_104] : memref<2x40x160xf32, #tpu.memory_space<vmem>>, vector<1x40x160xf32>
    %360 = vector.shape_cast %359 : vector<1x40x160xf32> to vector<40x160xf32>
    %cst_105 = arith.constant dense<0.000000e+00> : vector<16x160xf32>
    %361 = tpu.matmul %358, %360, %cst_105 {dimension_numbers = #tpu.dot_dimension_numbers<[1], [0], [0], [1], [0, 0, 1, 1], [], []>} : vector<16x40xf32>, vector<40x160xf32>, vector<16x160xf32> -> vector<16x160xf32>
    %c1_106 = arith.constant 1 : index
    %c0_107 = arith.constant 0 : index
    %c0_108 = arith.constant 0 : index
    %362 = vector.load %arg7[%c1_106, %c0_107, %c0_108] : memref<2x1x160xf32, #tpu.memory_space<vmem>>, vector<1x1x160xf32>
    %363 = vector.shape_cast %362 : vector<1x1x160xf32> to vector<1x160xf32>
    %364 = vector.broadcast %363 : vector<1x160xf32> to vector<16x160xf32>
    %365 = arith.addf %361, %364 : vector<16x160xf32>
    %cst_109 = arith.constant 0.000000e+00 : f32
    %366 = vector.broadcast %cst_109 : f32 to vector<16x160xf32>
    %367 = arith.maximumf %365, %366 : vector<16x160xf32>
    %c1_110 = arith.constant 1 : index
    %c0_111 = arith.constant 0 : index
    %c0_112 = arith.constant 0 : index
    %368 = vector.load %arg8[%c1_110, %c0_111, %c0_112] : memref<2x160x40xf32, #tpu.memory_space<vmem>>, vector<1x160x40xf32>
    %369 = vector.shape_cast %368 : vector<1x160x40xf32> to vector<160x40xf32>
    %cst_113 = arith.constant dense<0.000000e+00> : vector<16x40xf32>
    %370 = tpu.matmul %367, %369, %cst_113 {dimension_numbers = #tpu.dot_dimension_numbers<[1], [0], [0], [1], [0, 0, 1, 1], [], []>} : vector<16x160xf32>, vector<160x40xf32>, vector<16x40xf32> -> vector<16x40xf32>
    %c1_114 = arith.constant 1 : index
    %c0_115 = arith.constant 0 : index
    %c0_116 = arith.constant 0 : index
    %371 = vector.load %arg9[%c1_114, %c0_115, %c0_116] : memref<2x1x40xf32, #tpu.memory_space<vmem>>, vector<1x1x40xf32>
    %372 = vector.shape_cast %371 : vector<1x1x40xf32> to vector<1x40xf32>
    %373 = vector.broadcast %372 : vector<1x40xf32> to vector<16x40xf32>
    %374 = arith.addf %370, %373 : vector<16x40xf32>
    %375 = arith.addf %374, %334 : vector<16x40xf32>
    %c0_117 = arith.constant 0 : index
    %c0_118 = arith.constant 0 : index
    %376 = vector.load %arg14[%c0_117, %c0_118] : memref<1x40xf32, #tpu.memory_space<vmem>>, vector<1x40xf32>
    %c0_119 = arith.constant 0 : index
    %c0_120 = arith.constant 0 : index
    %377 = vector.load %arg15[%c0_119, %c0_120] : memref<1x40xf32, #tpu.memory_space<vmem>>, vector<1x40xf32>
    %cst_121 = arith.constant dense<0.000000e+00> : vector<16xf32>
    %378 = vector.multi_reduction <add>, %375, %cst_121 [1] : vector<16x40xf32> to vector<16xf32>
    %379 = vector.shape_cast %378 : vector<16xf32> to vector<16x1xf32>
    %cst_122 = arith.constant 4.000000e+01 : f32
    %380 = vector.broadcast %cst_122 : f32 to vector<16x1xf32>
    %381 = arith.divf %379, %380 : vector<16x1xf32>
    %382 = vector.broadcast %381 : vector<16x1xf32> to vector<16x40xf32>
    %383 = arith.subf %375, %382 : vector<16x40xf32>
    %384 = arith.mulf %383, %383 : vector<16x40xf32>
    %cst_123 = arith.constant dense<0.000000e+00> : vector<16xf32>
    %385 = vector.multi_reduction <add>, %384, %cst_123 [1] : vector<16x40xf32> to vector<16xf32>
    %386 = vector.shape_cast %385 : vector<16xf32> to vector<16x1xf32>
    %cst_124 = arith.constant 4.000000e+01 : f32
    %387 = vector.broadcast %cst_124 : f32 to vector<16x1xf32>
    %388 = arith.divf %386, %387 : vector<16x1xf32>
    %cst_125 = arith.constant 9.99999974E-6 : f32
    %389 = vector.broadcast %cst_125 : f32 to vector<16x1xf32>
    %390 = arith.addf %388, %389 : vector<16x1xf32>
    %391 = math.rsqrt %390 : vector<16x1xf32>
    %392 = vector.broadcast %391 : vector<16x1xf32> to vector<16x40xf32>
    %393 = arith.mulf %383, %392 : vector<16x40xf32>
    %394 = vector.broadcast %376 : vector<1x40xf32> to vector<16x40xf32>
    %395 = arith.mulf %393, %394 : vector<16x40xf32>
    %396 = vector.broadcast %377 : vector<1x40xf32> to vector<16x40xf32>
    %397 = arith.addf %395, %396 : vector<16x40xf32>
    %398 = vector.extract_strided_slice %397 {offsets = [0, 0], sizes = [8, 40], strides = [1, 1]} : vector<16x40xf32> to vector<8x40xf32>
    %c0_126 = arith.constant 0 : index
    %c0_127 = arith.constant 0 : index
    %c0_128 = arith.constant 0 : index
    %399 = vector.load %arg16[%c0_126, %c0_127, %c0_128] : memref<8x2x40xf32, #tpu.memory_space<vmem>>, vector<8x1x40xf32>
    %400 = vector.shape_cast %399 : vector<8x1x40xf32> to vector<8x40xf32>
    %401 = vector.shape_cast %398 : vector<8x40xf32> to vector<8x1x40xf32>
    tpu.vector_store %arg16[%c0_126, %c0_127, %c0_128], %401 {strides = array<i32>} : memref<8x2x40xf32, #tpu.memory_space<vmem>>, vector<8x1x40xf32>,
    %402 = vector.extract_strided_slice %397 {offsets = [8, 0], sizes = [8, 40], strides = [1, 1]} : vector<16x40xf32> to vector<8x40xf32>
    %c0_129 = arith.constant 0 : index
    %c1_130 = arith.constant 1 : index
    %c0_131 = arith.constant 0 : index
    %403 = vector.load %arg16[%c0_129, %c1_130, %c0_131] : memref<8x2x40xf32, #tpu.memory_space<vmem>>, vector<8x1x40xf32>
    %404 = vector.shape_cast %403 : vector<8x1x40xf32> to vector<8x40xf32>
    %405 = vector.shape_cast %402 : vector<8x40xf32> to vector<8x1x40xf32>
    tpu.vector_store %arg16[%c0_129, %c1_130, %c0_131], %405 {strides = array<i32>} : memref<8x2x40xf32, #tpu.memory_space<vmem>>, vector<8x1x40xf32>,
    return
  }
}

</mosaic_0001>

<bundles_post_ra>
// kernel: transformer_encoder.1
= control target key start
LH: loop header
LB: loop body
LE: loop exit
PB: predicated region body
PF: predicated region fallthrough
CT: control target
= control target key end

     0   :  { %s5829_s0 = inlined_call_operand.vmem [shape: f32[8,2,40], index: 0, kind: input, shape index: {}]   ;;  %s5830_s1 = inlined_call_operand.vmem [shape: f32[8,40], index: 1, kind: input, shape index: {}]   ;;  %s5831_s2 = inlined_call_operand.vmem [shape: f32[2,40,120], index: 2, kind: input, shape index: {}]   ;;  %s5832_s3 = inlined_call_operand.vmem [shape: f32[2,1,120], index: 3, kind: input, shape index: {}]   ;;  %s5833_s4 = inlined_call_operand.vmem [shape: f32[2,40,40], index: 4, kind: input, shape index: {}]   ;;  %s5834_s5 = inlined_call_operand.vmem [shape: f32[2,1,40], index: 5, kind: input, shape index: {}]   ;;  %s5835_s6 = inlined_call_operand.vmem [shape: f32[2,40,160], index: 6, kind: input, shape index: {}]   ;;  %s5836_s7 = inlined_call_operand.vmem [shape: f32[2,1,160], index: 7, kind: input, shape index: {}]   ;;  %s5837_s8 = inlined_call_operand.vmem [shape: f32[2,160,40], index: 8, kind: input, shape index: {}]   ;;  %s5838_s9 = inlined_call_operand.vmem [shape: f32[2,1,40], index: 9, kind: input, shape index: {}]   ;;  %s5839_s10 = inlined_call_operand.vmem [shape: f32[2,1,40], index: 10, kind: input, shape index: {}]   ;;  %s5840_s11 = inlined_call_operand.vmem [shape: f32[2,1,40], index: 11, kind: input, shape index: {}]   ;;  %s5841_s12 = inlined_call_operand.vmem [shape: f32[2,1,40], index: 12, kind: input, shape index: {}]   ;;  %s5842_s13 = inlined_call_operand.vmem [shape: f32[2,1,40], index: 13, kind: input, shape index: {}]   ;;  %s5843_s14 = inlined_call_operand.vmem [shape: f32[1,40], index: 14, kind: input, shape index: {}]   ;;  %s5844_s15 = inlined_call_operand.vmem [shape: f32[1,40], index: 15, kind: input, shape index: {}]   ;;  %s5845_s16 = inlined_call_operand.hbm [shape: f32[8,2,40], index: 16, kind: output, shape index: {}]  }
   0x1   :  { %5875 = sst [smem:[#allocation5_spill]] %s5829_s0 }
   0x2   :  { %v4424_v0 = vld [vmem:[%s5830_s1] sm:$0xff]  ;;  %s5876_s25 = sld [smem:[#allocation5_spill]]  ;;  %vm128_vm0 = vcmask 1041409   ;;  %vm131_vm1 = vcmask 1042434   ;;  %vm134_vm2 = vcmask 1043459   ;;  %vm137_vm3 = vcmask 1044484  }
   0x3   :  { %v72_v17 = vrot.slane %v4424_v0, 1  ;;  %v73_v18 = vrot.slane %v4424_v0, 2  ;;  %v74_v19 = vrot.slane %v4424_v0, 3  ;;  %v75_v20 = vrot.slane %v4424_v0, 4 }
   0x4   :  { %v76_v21 = vrot.slane %v4424_v0, 5  ;;  %v77_v22 = vrot.slane %v4424_v0, 6  ;;  %v78_v23 = vrot.slane %v4424_v0, 7  ;;  %vm140_vm4 = vcmask 1045509  }
   0x5   :  { %vm143_vm5 = vcmask 1046534   ;;  %vm146_vm6 = vcmask 1047559   ;;  %vm174_vm7 = vcmask 326656  }
   0x8   :  { %v55_v1 = vld [vmem:[%s5876_s25] sm:$0x1]  ;;  %v56_v2 = vld [vmem:[%s5876_s25 + $0x2] sm:$0x1]  ;;  %v57_v3 = vld [vmem:[%s5876_s25 + $0x4] sm:$0x1] }
   0x9   :  { %v58_v4 = vld [vmem:[%s5876_s25 + $0x6] sm:$0x1]  ;;  %v59_v5 = vld [vmem:[%s5876_s25 + $0x8] sm:$0x1]  ;;  %v60_v6 = vld [vmem:[%s5876_s25 + $0xa] sm:$0x1] }
   0xa   :  { %v61_v7 = vld [vmem:[%s5876_s25 + $0xc] sm:$0x1]  ;;  %v62_v8 = vld [vmem:[%s5876_s25 + $0xe] sm:$0x1]  ;;  %v63_v9 = vmul.f32 6.3245554, %v55_v1 }
   0xb   :  { %v64_v10 = vmul.f32 6.3245554, %v56_v2  ;;  %v65_v11 = vmul.f32 6.3245554, %v57_v3  ;;  %v66_v12 = vmul.f32 6.3245554, %v58_v4 }
   0xc   :  { %v67_v13 = vmul.f32 6.3245554, %v59_v5  ;;  %v68_v14 = vmul.f32 6.3245554, %v60_v6  ;;  %v69_v15 = vmul.f32 6.3245554, %v61_v7  ;;  %v87_v24 = vadd.f32 %v63_v9, %v4424_v0 }
   0xd   :  { %v70_v16 = vmul.f32 6.3245554, %v62_v8  ;;  %v88_v25 = vadd.f32 %v72_v17, %v64_v10  ;;  %v89_v26 = vadd.f32 %v73_v18, %v65_v11  ;;  %v90_v27 = vadd.f32 %v74_v19, %v66_v12  ;;  %v95_v31 = vld [vmem:[%s5876_s25 + $0x1] sm:$0x1]  ;;  %v96_v32 = vld [vmem:[%s5876_s25 + $0x3] sm:$0x1] }
   0xe   :  { %v91_v28 = vadd.f32 %v75_v20, %v67_v13  ;;  %v92_v29 = vadd.f32 %v76_v21, %v68_v14  ;;  %v93_v30 = vadd.f32 %v77_v22, %v69_v15  ;;  %v97_v36 = vld [vmem:[%s5876_s25 + $0x5] sm:$0x1]  ;;  %v98_v37 = vld [vmem:[%s5876_s25 + $0x7] sm:$0x1]  ;;  %v99_v38 = vld [vmem:[%s5876_s25 + $0x9] sm:$0x1] }
   0xf   :  { %v94_v33 = vadd.f32 %v78_v23, %v70_v16  ;;  %v127_v34 = vrot.slane %v88_v25, 7  ;;  %v130_v35 = vrot.slane %v89_v26, 6  ;;  %v133_v39 = vrot.slane %v90_v27, 5  ;;  %v100_v41 = vld [vmem:[%s5876_s25 + $0xb] sm:$0x1] }
  0x10   :  { %v136_v40 = vrot.slane %v91_v28, 4  ;;  %v101_v42 = vld [vmem:[%s5876_s25 + $0xd] sm:$0x1]  ;;  %v102_v43 = vld [vmem:[%s5876_s25 + $0xf] sm:$0x1]  ;;  %v139_v45 = vrot.slane %v92_v29, 3 }
  0x11   :  { %v129_v44 = vsel %vm128_vm0, %v127_v34, %v87_v24  ;;  %v142_v46 = vrot.slane %v93_v30, 2  ;;  %v145_v48 = vrot.slane %v94_v33, 1  ;;  %v103_v50 = vmul.f32 6.3245554, %v95_v31 }
  0x12   :  { %v132_v47 = vsel %vm131_vm1, %v130_v35, %v129_v44  ;;  %v104_v51 = vmul.f32 6.3245554, %v96_v32  ;;  %v105_v53 = vmul.f32 6.3245554, %v97_v36  ;;  %v106_v54 = vmul.f32 6.3245554, %v98_v37 }
  0x13   :  { %v135_v49 = vsel %vm134_vm2, %v133_v39, %v132_v47  ;;  %v107_v55 = vmul.f32 6.3245554, %v99_v38  ;;  %v108_v57 = vmul.f32 6.3245554, %v100_v41  ;;  %v109_v58 = vmul.f32 6.3245554, %v101_v42 }
  0x14   :  { %v138_v52 = vsel %vm137_vm3, %v136_v40, %v135_v49  ;;  %v110_v59 = vmul.f32 6.3245554, %v102_v43  ;;  %v111_v61 = vadd.f32 %v103_v50, %v4424_v0  ;;  %v112_v62 = vadd.f32 %v104_v51, %v72_v17 }
  0x15   :  { %v141_v56 = vsel %vm140_vm4, %v139_v45, %v138_v52  ;;  %v113_v63 = vadd.f32 %v105_v53, %v73_v18  ;;  %v114_v2 = vadd.f32 %v106_v54, %v74_v19  ;;  %v115_v3 = vadd.f32 %v107_v55, %v75_v20 }
  0x16   :  { %v144_v60 = vsel %vm143_vm5, %v142_v46, %v141_v56  ;;  %v116_v4 = vadd.f32 %v108_v57, %v76_v21  ;;  %v117_v6 = vadd.f32 %v109_v58, %v77_v22  ;;  %v118_v7 = vadd.f32 %v110_v59, %v78_v23 }
  0x17   :  { %v4490_v1 = vsel %vm146_vm6, %v145_v48, %v144_v60  ;;  %v157_v8 = vrot.slane %v112_v62, 7  ;;  %v159_v9 = vrot.slane %v113_v63, 6  ;;  %v161_v10 = vrot.slane %v114_v2, 5 }
  0x18   :  { %v175_v5 = vsel %vm174_vm7, %v4490_v1, 0.0  ;;  %v163_v11 = vrot.slane %v115_v3, 4  ;;  %v165_v12 = vrot.slane %v116_v4, 3  ;;  %v167_v13 = vrot.slane %v117_v6, 2 }
  0x19   :  { %176 = vadd.xlane.f32.xlu0 %v175_v5  ;;  %v158_v0 = vsel %vm128_vm0, %v157_v8, %v111_v61  ;;  %v169_v16 = vrot.slane %v118_v7, 1 }
  0x1a   :  { %v160_v14 = vsel %vm131_vm1, %v159_v9, %v158_v0 }
  0x1b   :  { %v162_v15 = vsel %vm134_vm2, %v161_v10, %v160_v14 }
  0x1c   :  { %21 = vsyncpa [#allocation3], 0  ;;  %v164_v17 = vsel %vm137_vm3, %v163_v11, %v162_v15  ;;  %v4313_v22 = vmov 40.0   ;;  %v240_v39 = vld [vmem:[%s5831_s2 + $0x20] sm:$0xff]  ;;  %v239_v40 = vld [vmem:[%s5831_s2 + $0x18] sm:$0xff]  ;;  %s4314_s25 = smov 108  }
  0x1d   :  { %v166_v18 = vsel %vm140_vm4, %v165_v12, %v164_v17  ;;  %4105 = vrcp.f32 %v4313_v22  ;;  %262 = vmatpush.msra.mxu0 %v240_v39  ;;  %v238_v41 = vld [vmem:[%s5831_s2 + $0x10] sm:$0xff]  ;;  %v237_v42 = vld [vmem:[%s5831_s2 + $0x8] sm:$0xff]  ;;  %v236_v43 = vld [vmem:[%s5831_s2] sm:$0xff]  ;;  %s4315_s26 = smov 124   ;;  %s4316_s27 = smov 116   ;;  %vm314_vm15 = vcmask 31744  }
  0x1e   :  { %v168_v19 = vsel %vm143_vm5, %v167_v13, %v166_v18  ;;  %v4089_v58 = vld [vmem:[%s5839_s10] ss:$0 sm:$0xff]  ;;  %s4317_s28 = smov 120   ;;  %s4318_s29 = smov 100   ;;  %vm833_vm0 = vcmask 64512   ;;  %vm1650_vm1 = vcmask 97280  }
  0x1f   :  { %v4501_v20 = vsel %vm146_vm6, %v169_v16, %v168_v19  ;;  %263 = vmatpush.msra.mxu0 %v239_v40  ;;  %v4090_v62 = vld [vmem:[%s5840_s11] ss:$0 sm:$0xff]  ;;  %s4319_s30 = smov 112   ;;  %s5851_s0 = smov 104   ;;  %vm1653_vm2 = vcmask 130048   ;;  %vm1656_vm3 = vcmask 162816  }
  0x20   :  { %v178_v21 = vsel %vm174_vm7, %v4501_v20, 0.0  ;;  %v4091_v10 = vld [vmem:[%s5832_s3] ss:$0 sm:$0xff]  ;;  %s5849_s17 = smov 96   ;;  %s5853_s1 = smov 92   ;;  %vm1659_vm4 = vcmask 195584  }
  0x21   :  { %179 = vadd.xlane.f32.xlu0 %v178_v21  ;;  %264 = vmatpush.msra.mxu0 %v238_v41  ;;  %s5865_s18 = smov 88   ;;  %s5847_s19 = smov 48   ;;  %vm1662_vm5 = vcmask 228352   ;;  %vm1665_vm6 = vcmask 261120  }
  0x22   :  { %s5857_s20 = smov 4   ;;  %s5861_s21 = smov 12  }
  0x23   :  { %v4106_v23 = vpop.eup %4105  ;;  %265 = vmatpush.msra.mxu0 %v237_v42  ;;  %s5855_s22 = smov 16   ;;  %s5859_s23 = smov 28  }
  0x24   :  { %v182_v24 = vmul.f32 40.0, %v4106_v23  ;;  %vm186_vm8 = vweird.f32 %v4106_v23  ;;  %s5869_s24 = smov 8  }
  0x25   :  { %266 = vmatpush.msra.mxu0 %v236_v43 }
  0x26   :  { %v183_v25 = vsub.f32 1.0, %v182_v24 }
  0x28   :  { %v184_v26 = vmul.f32 %v4106_v23, %v183_v25 }
  0x2a   :  { %v185_v27 = vadd.f32 %v4106_v23, %v184_v26 }
  0x2c   :  { %v4505_v28 = vsel %vm186_vm8, %v4106_v23, %v185_v27  ;;  %vm1668_vm8 = vcmask 293888  }
  0x8c   :  { %v177_v29 = vpop.xlane.xlu0 %176 }
  0x8d   :  { %v188_v30 = vmul.f32 %v4505_v28, %v177_v29 }
  0x8f   :  { %v190_v31 = vsub.f32 %v4490_v1, %v188_v30 }
  0x91   :  { %v192_v32 = vmul.f32 %v190_v31, %v190_v31 }
  0x93   :  { %v194_v33 = vsel %vm174_vm7, %v192_v32, 0.0 }
  0x94   :  { %195 = vadd.xlane.f32.xlu1 %v194_v33  ;;  %v180_v34 = vpop.xlane.xlu0 %179 }
  0x95   :  { %v189_v35 = vmul.f32 %v4505_v28, %v180_v34 }
  0x97   :  { %v191_v36 = vsub.f32 %v4501_v20, %v189_v35 }
  0x99   :  { %v193_v37 = vmul.f32 %v191_v36, %v191_v36 }
  0x9b   :  { %v197_v38 = vsel %vm174_vm7, %v193_v37, 0.0 }
  0x9c   :  { %198 = vadd.xlane.f32.xlu1 %v197_v38 }
 0x107   :  { %v196_v44 = vpop.xlane.xlu1 %195 }
 0x108   :  { %v200_v45 = vmul.f32 %v196_v44, %v4505_v28 }
 0x10a   :  { %v202_v46 = vadd.f32 1e-05, %v200_v45 }
 0x10c   :  { %4107 = vrsqrt.f32 %v202_v46  ;;  %vm210_vm10 = vweird.f32 %v202_v46 }
 0x10f   :  { %v199_v47 = vpop.xlane.xlu1 %198 }
 0x110   :  { %v201_v48 = vmul.f32 %v199_v47, %v4505_v28 }
 0x112   :  { %v4108_v49 = vpop.eup %4107  ;;  %v203_v51 = vadd.f32 1e-05, %v201_v48 }
 0x113   :  { %v205_v50 = vmul.f32 %v4108_v49, %v202_v46  ;;  %vm211_vm9 = vweird.f32 %v4108_v49 }
 0x114   :  { %4109 = vrsqrt.f32 %v203_v51  ;;  %vm212_vm11 = vmor %vm210_vm10, %vm211_vm9  ;;  %vm220_vm12 = vweird.f32 %v203_v51 }
 0x115   :  { %v206_v52 = vmul.f32 %v4108_v49, %v205_v50 }
 0x117   :  { %v207_v53 = vmul.f32 0.5, %v206_v52 }
 0x119   :  { %v208_v54 = vsub.f32 1.5, %v207_v53 }
 0x11a   :  { %v4110_v55 = vpop.eup %4109 }
 0x11b   :  { %v209_v56 = vmul.f32 %v4108_v49, %v208_v54  ;;  %v215_v57 = vmul.f32 %v4110_v55, %v203_v51  ;;  %vm221_vm13 = vweird.f32 %v4110_v55 }
 0x11c   :  { %vm222_vm14 = vmor %vm220_vm12, %vm221_vm13 }
 0x11d   :  { %v213_v59 = vsel %vm212_vm11, %v4108_v49, %v209_v56  ;;  %v216_v60 = vmul.f32 %v4110_v55, %v215_v57 }
 0x11e   :  { %v224_v61 = vmul.f32 %v213_v59, %v190_v31 }
 0x11f   :  { %v217_v63 = vmul.f32 0.5, %v216_v60 }
 0x120   :  { %v229_v2 = vmul.f32 %v4089_v58, %v224_v61 }
 0x121   :  { %v218_v3 = vsub.f32 1.5, %v217_v63 }
 0x122   :  { %v234_v4 = vadd.f32 %v4090_v62, %v229_v2 }
 0x123   :  { %v219_v5 = vmul.f32 %v4110_v55, %v218_v3 }
 0x124   :  { %3778 = vmatmul.msk.f32.vlgmr.msra.gmra.mxu0 %vm174_vm7, %v234_v4 }
 0x125   :  { %v223_v6 = vsel %vm222_vm14, %v4110_v55, %v219_v5 }
 0x126   :  { %v225_v7 = vmul.f32 %v223_v6, %v191_v36 }
 0x128   :  { %v230_v8 = vmul.f32 %v4089_v58, %v225_v7 }
 0x12a   :  { %v235_v9 = vadd.f32 %v4090_v62, %v230_v8 }
 0x12c   :  { %3779 = vmatmul.msk.f32.gmra.mxu0 %vm174_vm7, %v235_v9 }
 0x1a1   :  { %v268_v11 = vpop.f32.mrf.mxu0 }
 0x1a2   :  { %v4541_v0 = vadd.f32 %v4091_v10, %v268_v11 }
 0x1a4   :  { %292 = vrot.lane.b32.xlu0 %v4541_v0, %s4314_s25  ;;  %276 = vrot.lane.b32.xlu2 %v4541_v0, %s4315_s26 }
 0x1a5   :  { %284 = vrot.lane.b32.xlu1 %v4541_v0, %s4316_s27 }
 0x1a9   :  { %v271_v12 = vpop.f32.mrf.mxu0 }
 0x1aa   :  { %v4549_v13 = vadd.f32 %v4091_v10, %v271_v12 }
 0x1ac   :  { %280 = vrot.lane.b32.xlu2 %v4541_v0, %s4317_s28  ;;  %278 = vrot.lane.b32.xlu0 %v4549_v13, %s4315_s26 }
 0x1ad   :  { %282 = vrot.lane.b32.xlu1 %v4549_v13, %s4317_s28 }
 0x1b4   :  { %300 = vrot.lane.b32.xlu2 %v4541_v0, %s4318_s29  ;;  %294 = vrot.lane.b32.xlu0 %v4549_v13, %s4314_s25 }
 0x1b5   :  { %286 = vrot.lane.b32.xlu1 %v4549_v13, %s4316_s27 }
 0x1bc   :  { %288 = vrot.lane.b32.xlu2 %v4541_v0, %s4319_s30  ;;  %298 = vrot.lane.b32.xlu0 %v4549_v13, %s5851_s0 }
 0x1c4   :  { %304 = vrot.lane.b32.xlu2 %v4541_v0, %s5849_s17  ;;  %290 = vrot.lane.b32.xlu0 %v4549_v13, %s4319_s30 }
 0x1cc   :  { %296 = vrot.lane.b32.xlu2 %v4541_v0, %s5851_s0  ;;  %302 = vrot.lane.b32.xlu0 %v4549_v13, %s4318_s29  ;;  %s5871_s0 = smov 36  }
 0x1d4   :  { %308 = vrot.lane.b32.xlu2 %v4541_v0, %s5853_s1 }
 0x1dc   :  { %310 = vrot.lane.b32.xlu2 %v4549_v13, %s5853_s1  ;;  %s5873_s1 = smov 32  }
 0x1e4   :  { %306 = vrot.lane.b32.xlu2 %v4549_v13, %s5849_s17  ;;  %s5863_s17 = smov 20  }
 0x1fe   :  { %v277_v14 = vpop.permute.xlu2 %276 }
 0x1ff   :  { %339 = vrot.lane.b32.xlu1 %v277_v14, %s5865_s18 }
 0x206   :  { %v4582_v15 = vpop.permute.xlu2 %280 }
 0x207   :  { %365 = vrot.lane.b32.xlu2 %v4582_v15, %s5865_s18  ;;  %312 = vrot.lane.b32.xlu1 %v4541_v0, %s5865_s18  ;;  %v3994_v35 = vpack.i.bf16 %v4582_v15, %v277_v14 }
 0x20e   :  { %v301_v16 = vpop.permute.xlu2 %300 }
 0x20f   :  { %495 = vrot.lane.b32.xlu2 %v301_v16, %s5865_s18 }
 0x216   :  { %v4589_v17 = vpop.permute.xlu2 %288  ;;  %v4591_v18 = vpop.permute.xlu0 %292 }
 0x217   :  { %v4593_v19 = vpop.permute.xlu1 %284  ;;  %443 = vrot.lane.b32.xlu1 %v4591_v18, %s5865_s18  ;;  %v3999_v33 = vpack.i.bf16 %v301_v16, %v4589_v17 }
 0x218   :  { %391 = vrot.lane.b32.xlu0 %v4593_v19, %s5865_s18  ;;  %v3989_v37 = vpack.i.bf16 %v4593_v19, %v4541_v0 }
 0x21e   :  { %v4599_v21 = vpop.permute.xlu2 %304  ;;  %v279_v22 = vpop.permute.xlu0 %278 }
 0x21f   :  { %417 = vrot.lane.b32.xlu1 %v4589_v17, %s5865_s18  ;;  %599 = vrot.lane.b32.xlu2 %v279_v22, %s5865_s18  ;;  %v4608_v24 = vpop.permute.xlu1 %282  ;;  %v4014_v38 = vpack.i.bf16 %v279_v22, %v4599_v21 }
 0x220   :  { %521 = vrot.lane.b32.xlu0 %v4599_v21, %s5865_s18 }
 0x226   :  { %v4606_v23 = vpop.permute.xlu2 %296  ;;  %v4610_v25 = vpop.permute.xlu0 %294 }
 0x227   :  { %469 = vrot.lane.b32.xlu1 %v4606_v23, %s5865_s18  ;;  %703 = vrot.lane.b32.xlu2 %v4610_v25, %s5865_s18  ;;  %v4630_v30 = vpop.permute.xlu1 %286  ;;  %v4004_v39 = vpack.i.bf16 %v4606_v23, %v4591_v18 }
 0x228   :  { %625 = vrot.lane.b32.xlu0 %v4608_v24, %s5865_s18 }
 0x22e   :  { %v4618_v26 = vpop.permute.xlu2 %308  ;;  %v4620_v27 = vpop.permute.xlu0 %298 }
 0x22f   :  { %547 = vrot.lane.b32.xlu1 %v4618_v26, %s5865_s18  ;;  %729 = vrot.lane.b32.xlu2 %v4620_v27, %s5865_s18  ;;  %v4009_v36 = vpack.i.bf16 %v4549_v13, %v4618_v26 }
 0x230   :  { %573 = vrot.lane.b32.xlu0 %v4549_v13, %s5865_s18 }
 0x236   :  { %v4628_v29 = vpop.permute.xlu2 %310  ;;  %v4632_v31 = vpop.permute.xlu0 %290 }
 0x237   :  { %807 = vrot.lane.b32.xlu1 %v4628_v29, %s5865_s18  ;;  %677 = vrot.lane.b32.xlu2 %v4632_v31, %s5865_s18 }
 0x238   :  { %651 = vrot.lane.b32.xlu0 %v4630_v30, %s5865_s18 }
 0x23e   :  { %v4640_v32 = vpop.permute.xlu2 %306  ;;  %v4643_v34 = vpop.permute.xlu0 %302 }
 0x23f   :  { %4000 = vrot.lane.b32.xlu2 %v3999_v33, %s5847_s19  ;;  %755 = vrot.lane.b32.xlu1 %v4643_v34, %s5865_s18 }
 0x240   :  { %781 = vrot.lane.b32.xlu0 %v4640_v32, %s5865_s18  ;;  %s5878_s18 = smov 92  }
 0x247   :  { %4010 = vrot.lane.b32.xlu2 %v4009_v36, %s5847_s19  ;;  %3990 = vrot.lane.b32.xlu1 %v3989_v37, %s5847_s19 }
 0x248   :  { %3995 = vrot.lane.b32.xlu0 %v3994_v35, %s5847_s19 }
 0x24f   :  { %4005 = vrot.lane.b32.xlu1 %v4004_v39, %s5847_s19 }
 0x250   :  { %4015 = vrot.lane.b32.xlu0 %v4014_v38, %s5847_s19 }
 0x261   :  { %v366_v40 = vpop.permute.xlu2 %365 }
 0x269   :  { %v496_v41 = vpop.permute.xlu2 %495 }
 0x26a   :  { %3794 = vmatpush.xpose.msk.msra.mxu2 %vm314_vm15, %v496_v41 }
 0x26d   :  { %3795 = vmatmul.msk.f32.vlgmr.msra.gmra.mxu2 %vm314_vm15, %v301_v16 }
 0x271   :  { %v340_v42 = vpop.permute.xlu1 %339 }
 0x272   :  { %3782 = vmatpush.xpose.msk.msra.mxu3 %vm314_vm15, %v340_v42 }
 0x275   :  { %3783 = vmatmul.msk.f32.vlgmr.msra.gmra.mxu3 %vm314_vm15, %v277_v14 }
 0x276   :  { %3784 = vmatpush.xpose.msk.msrb.mxu3 %vm314_vm15, %v366_v40 }
 0x279   :  { %v313_v43 = vpop.permute.xlu1 %312  ;;  %v600_v44 = vpop.permute.xlu2 %599 }
 0x27a   :  { %3780 = vmatpush.xpose.msk.msra.mxu1 %vm314_vm15, %v313_v43  ;;  %3802 = vmatpush.xpose.msk.msrb.mxu2 %vm314_vm15, %v600_v44 }
 0x27d   :  { %3781 = vmatmul.msk.f32.vlgmr.msra.gmra.mxu1 %vm314_vm15, %v4541_v0  ;;  %3785 = vmatmul.msk.f32.vlgmr.msrb.gmra.mxu3 %vm314_vm15, %v4582_v15 }
 0x27e   :  { %3803 = vmatmul.msk.f32.vlgmr.msrb.gmra.mxu2 %vm314_vm15, %v279_v22 }
 0x281   :  { %v704_v45 = vpop.permute.xlu2 %703 }
 0x282   :  { %3810 = vmatpush.xpose.msk.msra.mxu2 %vm314_vm15, %v704_v45 }
 0x286   :  { %3811 = vmatmul.msk.f32.vlgmr.msra.gmra.mxu2 %vm314_vm15, %v4610_v25 }
 0x289   :  { %v444_v46 = vpop.permute.xlu1 %443  ;;  %v730_v50 = vpop.permute.xlu2 %729 }
 0x28a   :  { %v392_v47 = vpop.permute.xlu0 %391  ;;  %3790 = vmatpush.xpose.msk.msra.mxu3 %vm314_vm15, %v444_v46 }
 0x28b   :  { %3786 = vmatpush.xpose.msk.msrb.mxu1 %vm314_vm15, %v392_v47 }
 0x28d   :  { %3791 = vmatmul.msk.f32.vlgmr.msra.gmra.mxu3 %vm314_vm15, %v4591_v18 }
 0x28e   :  { %3787 = vmatmul.msk.f32.vlgmr.msrb.gmra.mxu1 %vm314_vm15, %v4593_v19 }
 0x291   :  { %v418_v48 = vpop.permute.xlu1 %417  ;;  %v678_v55 = vpop.permute.xlu2 %677 }
 0x292   :  { %v522_v49 = vpop.permute.xlu0 %521  ;;  %3788 = vmatpush.xpose.msk.msrb.mxu0 %vm314_vm15, %v418_v48 }
 0x293   :  { %3796 = vmatpush.xpose.msk.msrb.mxu3 %vm314_vm15, %v522_v49 }
 0x295   :  { %3789 = vmatmul.msk.f32.vlgmr.msrb.gmra.mxu0 %vm314_vm15, %v4589_v17 }
 0x296   :  { %3797 = vmatmul.msk.f32.vlgmr.msrb.gmra.mxu3 %vm314_vm15, %v4599_v21 }
 0x299   :  { %v470_v51 = vpop.permute.xlu1 %469  ;;  %v4001_v60 = vpop.permute.xlu2 %4000 }
 0x29a   :  { %v626_v52 = vpop.permute.xlu0 %625  ;;  %3792 = vmatpush.xpose.msk.msra.mxu1 %vm314_vm15, %v470_v51  ;;  %v4003_v5 = vunpack.i.h.bf16 %v4001_v60  ;;  %v4002_v6 = vunpack.i.l.bf16 %v4001_v60 }
 0x29b   :  { %3804 = vmatpush.xpose.msk.msra.mxu3 %vm314_vm15, %v626_v52 }
 0x29d   :  { %3793 = vmatmul.msk.f32.vlgmr.msra.gmra.mxu1 %vm314_vm15, %v4606_v23 }
 0x29e   :  { %3805 = vmatmul.msk.f32.vlgmr.msra.gmra.mxu3 %vm314_vm15, %v4608_v24 }
 0x29f   :  { %3812 = vmatpush.xpose.msk.msrb.mxu3 %vm314_vm15, %v730_v50 }
 0x2a1   :  { %v548_v53 = vpop.permute.xlu1 %547 }
 0x2a2   :  { %v574_v54 = vpop.permute.xlu0 %573  ;;  %3798 = vmatpush.xpose.msk.msra.mxu0 %vm314_vm15, %v548_v53 }
 0x2a3   :  { %3800 = vmatpush.xpose.msk.msrb.mxu1 %vm314_vm15, %v574_v54 }
 0x2a5   :  { %3799 = vmatmul.msk.f32.vlgmr.msra.gmra.mxu0 %vm314_vm15, %v4618_v26 }
 0x2a6   :  { %3801 = vmatmul.msk.f32.vlgmr.msrb.gmra.mxu1 %vm314_vm15, %v4549_v13  ;;  %3813 = vmatmul.msk.f32.vlgmr.msrb.gmra.mxu3 %vm314_vm15, %v4620_v27 }
 0x2a7   :  { %3808 = vmatpush.xpose.msk.msra.mxu1 %vm314_vm15, %v678_v55  ;;  %v4780_v55 = vpop.permute.xlu2 %4010 }
 0x2a9   :  { %v808_v56 = vpop.permute.xlu1 %807 }
 0x2aa   :  { %v652_v57 = vpop.permute.xlu0 %651  ;;  %3818 = vmatpush.xpose.msk.msrb.mxu2 %vm314_vm15, %v808_v56 }
 0x2ab   :  { %3806 = vmatpush.xpose.msk.msrb.mxu0 %vm314_vm15, %v652_v57 }
 0x2ad   :  { %3819 = vmatmul.msk.f32.vlgmr.msrb.gmra.mxu2 %vm314_vm15, %v4628_v29 }
 0x2ae   :  { %3807 = vmatmul.msk.f32.vlgmr.msrb.gmra.mxu0 %vm314_vm15, %v4630_v30  ;;  %3809 = vmatmul.msk.f32.vlgmr.msra.gmra.mxu1 %vm314_vm15, %v4632_v31 }
 0x2b1   :  { %v756_v59 = vpop.permute.xlu1 %755 }
 0x2b2   :  { %v782_v58 = vpop.permute.xlu0 %781  ;;  %3814 = vmatpush.xpose.msk.msra.mxu0 %vm314_vm15, %v756_v59 }
 0x2b3   :  { %3816 = vmatpush.xpose.msk.msrb.mxu1 %vm314_vm15, %v782_v58 }
 0x2b6   :  { %3817 = vmatmul.msk.f32.vlgmr.msrb.gmra.mxu1 %vm314_vm15, %v4640_v32  ;;  %3815 = vmatmul.msk.f32.vlgmr.msra.gmra.mxu0 %vm314_vm15, %v4643_v34 }
 0x2b9   :  { %v3991_v62 = vpop.permute.xlu1 %3990 }
 0x2ba   :  { %v3996_v61 = vpop.permute.xlu0 %3995  ;;  %v3993_v3 = vunpack.i.h.bf16 %v3991_v62  ;;  %v3992_v4 = vunpack.i.l.bf16 %v3991_v62 }
 0x2bb   :  { %v3998_v63 = vunpack.i.h.bf16 %v3996_v61  ;;  %v3997_v2 = vunpack.i.l.bf16 %v3996_v61 }
 0x2bc   :  { %1075 = vmatpush.msra.mxu3 %v3992_v4  ;;  %1153 = vmatpush.msra.mxu2 %v3993_v3 }
 0x2bd   :  { %1101 = vmatpush.msrb.mxu0 %v3997_v2  ;;  %1127 = vmatpush.msra.mxu1 %v3998_v63 }
 0x2be   :  { %1179 = vmatpush.msrb.mxu3 %v4002_v6  ;;  %1257 = vmatpush.msrb.mxu2 %v4003_v5 }
 0x2c1   :  { %v4006_v7 = vpop.permute.xlu1 %4005 }
 0x2c2   :  { %v4008_v8 = vunpack.i.h.bf16 %v4006_v7  ;;  %v4007_v9 = vunpack.i.l.bf16 %v4006_v7  ;;  %v4778_v54 = vpop.permute.xlu0 %4015 }
 0x2c4   :  { %1205 = vmatpush.msra.mxu0 %v4007_v9  ;;  %1231 = vmatpush.msrb.mxu1 %v4008_v8 }
 0x2f0   :  { %v4722_v13 = vpop.f32.mrf.mxu2 }
 0x2f1   :  { %v855_v15 = vsel %vm833_vm0, %v4722_v13, -inf }
 0x2f8   :  { %v362_v10 = vpop.f32.mrf.mxu3 }
 0x2f9   :  { %v837_v11 = vsel %vm833_vm0, %v362_v10, -inf }
 0x2fa   :  { %v336_v0 = vpop.f32.mrf.mxu1  ;;  %838 = vmax.xlane.f32.xlu0 %v837_v11 }
 0x2fb   :  { %v834_v12 = vsel %vm833_vm0, %v336_v0, -inf }
 0x2fc   :  { %835 = vmax.xlane.f32.xlu2 %v834_v12 }
 0x300   :  { %v4724_v14 = vpop.f32.mrf.mxu3 }
 0x301   :  { %v840_v16 = vsel %vm833_vm0, %v4724_v14, -inf  ;;  %v622_v17 = vpop.f32.mrf.mxu2 }
 0x302   :  { %856 = vmax.xlane.f32.xlu0 %v855_v15  ;;  %v867_v19 = vsel %vm833_vm0, %v622_v17, -inf }
 0x304   :  { %841 = vmax.xlane.f32.xlu2 %v840_v16 }
 0x309   :  { %v4752_v41 = vpop.f32.mrf.mxu2 }
 0x30a   :  { %v879_v44 = vsel %vm833_vm0, %v4752_v41, -inf }
 0x30b   :  { %v414_v18 = vpop.f32.mrf.mxu1 }
 0x30c   :  { %868 = vmax.xlane.f32.xlu2 %v867_v19  ;;  %v843_v21 = vsel %vm833_vm0, %v414_v18, -inf }
 0x30d   :  { %844 = vmax.xlane.f32.xlu1 %v843_v21 }
 0x310   :  { %v4732_v22 = vpop.f32.mrf.mxu3 }
 0x311   :  { %v849_v26 = vsel %vm833_vm0, %v4732_v22, -inf }
 0x312   :  { %v4734_v23 = vpop.f32.mrf.mxu0 }
 0x313   :  { %v846_v33 = vsel %vm833_vm0, %v4734_v23, -inf }
 0x314   :  { %850 = vmax.xlane.f32.xlu2 %v849_v26 }
 0x315   :  { %847 = vmax.xlane.f32.xlu1 %v846_v33 }
 0x319   :  { %v4750_v40 = vpop.f32.mrf.mxu3 }
 0x31a   :  { %v4740_v35 = vpop.f32.mrf.mxu1 }
 0x31b   :  { %v852_v36 = vsel %vm833_vm0, %v4740_v35, -inf }
 0x31d   :  { %853 = vmax.xlane.f32.xlu1 %v852_v36 }
 0x321   :  { %v4762_v46 = vpop.f32.mrf.mxu3 }
 0x322   :  { %v4744_v37 = vpop.f32.mrf.mxu0  ;;  %v870_v53 = vsel %vm833_vm0, %v4762_v46, -inf }
 0x323   :  { %v4746_v38 = vpop.f32.mrf.mxu1  ;;  %v861_v39 = vsel %vm833_vm0, %v4744_v37, -inf }
 0x324   :  { %v864_v11 = vsel %vm833_vm0, %v4746_v38, -inf }
 0x325   :  { %862 = vmax.xlane.f32.xlu1 %v861_v39  ;;  %v858_v39 = vsel %vm833_vm0, %v4750_v40, -inf }
 0x329   :  { %v4772_v51 = vpop.f32.mrf.mxu3 }
 0x32a   :  { %v882_v52 = vsel %vm833_vm0, %v4772_v51, -inf }
 0x32b   :  { %v4754_v42 = vpop.f32.mrf.mxu0  ;;  %v4756_v43 = vpop.f32.mrf.mxu1 }
 0x32c   :  { %v876_v45 = vsel %vm833_vm0, %v4756_v43, -inf }
 0x32d   :  { %880 = vmax.xlane.f32.xlu1 %v879_v44  ;;  %877 = vmax.xlane.f32.xlu2 %v876_v45 }
 0x333   :  { %v4764_v47 = vpop.f32.mrf.mxu1  ;;  %v4766_v48 = vpop.f32.mrf.mxu0 }
 0x334   :  { %v888_v49 = vsel %vm833_vm0, %v4764_v47, -inf  ;;  %v885_v50 = vsel %vm833_vm0, %v4766_v48, -inf }
 0x335   :  { %889 = vmax.xlane.f32.xlu1 %v888_v49  ;;  %886 = vmax.xlane.f32.xlu2 %v885_v50  ;;  %v4812_v49 = vpop.f32.mrf.mxu2 }
 0x33d   :  { %883 = vmax.xlane.f32.xlu1 %v882_v52  ;;  %871 = vmax.xlane.f32.xlu2 %v870_v53 }
 0x36d   :  { %v839_v56 = vpop.xlane.xlu0 %838 }
 0x36e   :  { %v895_v57 = vsub.f32 %v362_v10, %v839_v56 }
 0x36f   :  { %v836_v58 = vpop.xlane.xlu2 %835 }
 0x370   :  { %v916_v59 = vmul.f32 1.442695, %v895_v57  ;;  %v894_v60 = vsub.f32 %v336_v0, %v836_v58 }
 0x372   :  { %4111 = vpow2.f32 %v916_v59  ;;  %v914_v61 = vmul.f32 1.442695, %v894_v60 }
 0x374   :  { %4113 = vpow2.f32 %v914_v61 }
 0x375   :  { %v857_v26 = vpop.xlane.xlu0 %856 }
 0x376   :  { %v901_v33 = vsub.f32 %v4722_v13, %v857_v26  ;;  %v891_v13 = vsel %vm833_vm0, %v4812_v49, -inf }
 0x377   :  { %v4782_v62 = vpop.xlane.xlu2 %841 }
 0x378   :  { %v4784_v63 = vpop.eup %4111  ;;  %v928_v45 = vmul.f32 1.442695, %v901_v33 }
 0x379   :  { %v957_v2 = vsel %vm833_vm0, %v4784_v63, 0.0 }
 0x37a   :  { %v4788_v3 = vpop.eup %4113  ;;  %958 = vadd.xlane.f32.xlu1 %v957_v2 }
 0x37b   :  { %v954_v4 = vsel %vm833_vm0, %v4788_v3, 0.0 }
 0x37c   :  { %955 = vadd.xlane.f32.xlu0 %v954_v4 }
 0x37f   :  { %v869_v5 = vpop.xlane.xlu2 %868 }
 0x380   :  { %v905_v6 = vsub.f32 %v622_v17, %v869_v5  ;;  %v845_v7 = vpop.xlane.xlu1 %844  ;;  %v873_v17 = vsel %vm833_vm0, %v4754_v42, -inf }
 0x381   :  { %v897_v8 = vsub.f32 %v414_v18, %v845_v7  ;;  %v896_v7 = vsub.f32 %v4724_v14, %v4782_v62 }
 0x382   :  { %v936_v9 = vmul.f32 1.442695, %v905_v6 }
 0x383   :  { %v920_v10 = vmul.f32 1.442695, %v897_v8 }
 0x384   :  { %4115 = vpow2.f32 %v936_v9  ;;  %865 = vmax.xlane.f32.xlu0 %v864_v11  ;;  %v918_v11 = vmul.f32 1.442695, %v896_v7 }
 0x385   :  { %4117 = vpow2.f32 %v920_v10 }
 0x387   :  { %v4814_v50 = vpop.xlane.xlu2 %850 }
 0x388   :  { %v848_v0 = vpop.xlane.xlu1 %847 }
 0x389   :  { %v898_v12 = vsub.f32 %v4734_v23, %v848_v0 }
 0x38a   :  { %v4795_v15 = vpop.eup %4115 }
 0x38b   :  { %v4797_v16 = vpop.eup %4117  ;;  %v922_v19 = vmul.f32 1.442695, %v898_v12  ;;  %v987_v18 = vsel %vm833_vm0, %v4795_v15, 0.0 }
 0x38c   :  { %874 = vmax.xlane.f32.xlu0 %v873_v17  ;;  %v963_v21 = vsel %vm833_vm0, %v4797_v16, 0.0  ;;  %988 = vadd.xlane.f32.xlu1 %v987_v18 }
 0x38d   :  { %4119 = vpow2.f32 %v922_v19  ;;  %964 = vadd.xlane.f32.xlu2 %v963_v21 }
 0x38e   :  { %4121 = vpow2.f32 %v928_v45  ;;  %v4024_v45 = vpack.i.bf16 %v4632_v31, %v4630_v30  ;;  %v4012_v30 = vunpack.i.l.bf16 %v4780_v55  ;;  %v4017_v31 = vunpack.i.l.bf16 %v4778_v54 }
 0x390   :  { %v854_v23 = vpop.xlane.xlu1 %853 }
 0x391   :  { %v900_v52 = vsub.f32 %v4740_v35, %v854_v23 }
 0x393   :  { %v4806_v36 = vpop.eup %4119  ;;  %v926_v56 = vmul.f32 1.442695, %v900_v52  ;;  %v4029_v52 = vpack.i.bf16 %v4628_v29, %v4620_v27 }
 0x394   :  { %859 = vmax.xlane.f32.xlu0 %v858_v39  ;;  %v966_v44 = vsel %vm833_vm0, %v4806_v36, 0.0  ;;  %v4819_v57 = vpop.eup %4121 }
 0x395   :  { %967 = vadd.xlane.f32.xlu2 %v966_v44  ;;  %4123 = vpow2.f32 %v926_v56  ;;  %v975_v2 = vsel %vm833_vm0, %v4819_v57, 0.0 }
 0x398   :  { %v863_v53 = vpop.xlane.xlu1 %862 }
 0x399   :  { %v903_v60 = vsub.f32 %v4744_v37, %v863_v53 }
 0x39b   :  { %v932_v4 = vmul.f32 1.442695, %v903_v60  ;;  %v4827_v5 = vpop.eup %4123 }
 0x39c   :  { %892 = vmax.xlane.f32.xlu0 %v891_v13  ;;  %v972_v37 = vsel %vm833_vm0, %v4827_v5, 0.0 }
 0x3a0   :  { %v878_v58 = vpop.xlane.xlu2 %877  ;;  %v4825_v35 = vpop.xlane.xlu1 %880 }
 0x3a1   :  { %v908_v59 = vsub.f32 %v4756_v43, %v878_v58 }
 0x3a3   :  { %v942_v61 = vmul.f32 1.442695, %v908_v59 }
 0x3a4   :  { %976 = vadd.xlane.f32.xlu0 %v975_v2 }
 0x3a5   :  { %4125 = vpow2.f32 %v942_v61 }
 0x3a6   :  { %4127 = vpow2.f32 %v932_v4 }
 0x3a8   :  { %v887_v6 = vpop.xlane.xlu2 %886  ;;  %v890_v0 = vpop.xlane.xlu1 %889 }
 0x3a9   :  { %v911_v43 = vsub.f32 %v4766_v48, %v887_v6  ;;  %v912_v48 = vsub.f32 %v4764_v47, %v890_v0 }
 0x3ab   :  { %v4834_v8 = vpop.eup %4125  ;;  %v948_v9 = vmul.f32 1.442695, %v911_v43  ;;  %v950_v26 = vmul.f32 1.442695, %v912_v48 }
 0x3ac   :  { %973 = vadd.xlane.f32.xlu0 %v972_v37  ;;  %v996_v10 = vsel %vm833_vm0, %v4834_v8, 0.0  ;;  %v4838_v12 = vpop.eup %4127 }
 0x3ad   :  { %4129 = vpow2.f32 %v948_v9  ;;  %997 = vadd.xlane.f32.xlu1 %v996_v10  ;;  %v981_v19 = vsel %vm833_vm0, %v4838_v12, 0.0 }
 0x3ae   :  { %4131 = vpow2.f32 %v918_v11 }
 0x3b0   :  { %v872_v14 = vpop.xlane.xlu2 %871  ;;  %v884_v53 = vpop.xlane.xlu1 %883 }
 0x3b1   :  { %v906_v62 = vsub.f32 %v4762_v46, %v872_v14  ;;  %v910_v58 = vsub.f32 %v4772_v51, %v884_v53 }
 0x3b3   :  { %v4844_v17 = vpop.eup %4129  ;;  %v938_v18 = vmul.f32 1.442695, %v906_v62  ;;  %v946_v60 = vmul.f32 1.442695, %v910_v58  ;;  %v4018_v62 = vunpack.i.h.bf16 %v4778_v54 }
 0x3b4   :  { %982 = vadd.xlane.f32.xlu0 %v981_v19  ;;  %v1005_v21 = vsel %vm833_vm0, %v4844_v17, 0.0  ;;  %v4848_v23 = vpop.eup %4131 }
 0x3b5   :  { %4133 = vpow2.f32 %v938_v18  ;;  %1006 = vadd.xlane.f32.xlu1 %v1005_v21  ;;  %v960_v47 = vsel %vm833_vm0, %v4848_v23, 0.0 }
 0x3b6   :  { %4135 = vpow2.f32 %v950_v26 }
 0x3bb   :  { %v4852_v46 = vpop.eup %4133 }
 0x3bc   :  { %961 = vadd.xlane.f32.xlu0 %v960_v47  ;;  %v990_v33 = vsel %vm833_vm0, %v4852_v46, 0.0  ;;  %v4856_v39 = vpop.eup %4135 }
 0x3bd   :  { %991 = vadd.xlane.f32.xlu1 %v990_v33  ;;  %v1008_v44 = vsel %vm833_vm0, %v4856_v39, 0.0 }
 0x3c4   :  { %1009 = vadd.xlane.f32.xlu0 %v1008_v44 }
 0x3d6   :  { %4025 = vrot.lane.b32.xlu1 %v4024_v45, %s5847_s19 }
 0x3d8   :  { %4030 = vrot.lane.b32.xlu0 %v4029_v52, %s5847_s19 }
 0x3ed   :  { %v959_v13 = vpop.xlane.xlu1 %958 }
 0x3ee   :  { %4137 = vrcp.f32 %v959_v13 }
 0x3ef   :  { %v956_v56 = vpop.xlane.xlu0 %955 }
 0x3f0   :  { %4139 = vrcp.f32 %v956_v56 }
 0x3f1   :  { %4141 = vpow2.f32 %v946_v60 }
 0x3f4   :  { %v4138_v59 = vpop.eup %4137 }
 0x3f5   :  { %v1035_v61 = vmul.f32 %v4138_v59, %v4784_v63 }
 0x3f6   :  { %v4140_v2 = vpop.eup %4139 }
 0x3f7   :  { %v1034_v27 = vmul.f32 %v4140_v2, %v4788_v3  ;;  %v866_v29 = vpop.xlane.xlu0 %865  ;;  %3821 = vmatmul.msk.f32.vlgmr.msrb.gmra.mxu0 %vm833_vm0, %v1035_v61  ;;  %v4874_v63 = vpop.eup %4141 }
 0x3f8   :  { %v904_v4 = vsub.f32 %v4746_v38, %v866_v29  ;;  %1309 = vmatpush.msrb.mxu0 %v4012_v30  ;;  %v1002_v43 = vsel %vm833_vm0, %v4874_v63, 0.0  ;;  %v899_v38 = vsub.f32 %v4732_v22, %v4814_v50  ;;  %v909_v22 = vsub.f32 %v4752_v41, %v4825_v35 }
 0x3f9   :  { %3820 = vmatmul.msk.f32.vlgmr.msra.gmra.mxu3 %vm833_vm0, %v1034_v27  ;;  %v4034_v35 = vpack.i.bf16 %v4640_v32, %v4643_v34  ;;  %v4013_v27 = vunpack.i.h.bf16 %v4780_v55 }
 0x3fa   :  { %v934_v51 = vmul.f32 1.442695, %v904_v4  ;;  %1283 = vmatpush.msra.mxu3 %v4017_v31  ;;  %v924_v11 = vmul.f32 1.442695, %v899_v38  ;;  %v944_v18 = vmul.f32 1.442695, %v909_v22 }
 0x3fc   :  { %4143 = vpow2.f32 %v934_v51 }
 0x3ff   :  { %v875_v6 = vpop.xlane.xlu0 %874 }
 0x400   :  { %v965_v7 = vpop.xlane.xlu2 %964  ;;  %v907_v3 = vsub.f32 %v4754_v42, %v875_v6 }
 0x401   :  { %4145 = vrcp.f32 %v965_v7 }
 0x402   :  { %v4879_v37 = vpop.eup %4143  ;;  %v940_v9 = vmul.f32 1.442695, %v907_v3  ;;  %1003 = vadd.xlane.f32.xlu0 %v1002_v43 }
 0x403   :  { %v984_v10 = vsel %vm833_vm0, %v4879_v37, 0.0 }
 0x404   :  { %4147 = vpow2.f32 %v940_v9  ;;  %985 = vadd.xlane.f32.xlu2 %v984_v10 }
 0x407   :  { %v4146_v0 = vpop.eup %4145  ;;  %v860_v14 = vpop.xlane.xlu0 %859 }
 0x408   :  { %v1037_v42 = vmul.f32 %v4146_v0, %v4797_v16  ;;  %v968_v48 = vpop.xlane.xlu2 %967  ;;  %v902_v47 = vsub.f32 %v4750_v40, %v860_v14 }
 0x409   :  { %4149 = vrcp.f32 %v968_v48 }
 0x40a   :  { %v4887_v19 = vpop.eup %4147  ;;  %4151 = vpow2.f32 %v924_v11  ;;  %3823 = vmatmul.msk.f32.vlgmr.msra.gmra.mxu2 %vm833_vm0, %v1037_v42  ;;  %v930_v33 = vmul.f32 1.442695, %v902_v47 }
 0x40b   :  { %1361 = vmatpush.msra.mxu2 %v4018_v62  ;;  %v993_v50 = vsel %vm833_vm0, %v4887_v19, 0.0  ;;  %4153 = vpow2.f32 %v944_v18 }
 0x40c   :  { %994 = vadd.xlane.f32.xlu2 %v993_v50 }
 0x40f   :  { %v4150_v21 = vpop.eup %4149  ;;  %v893_v16 = vpop.xlane.xlu0 %892 }
 0x410   :  { %v4894_v26 = vpop.eup %4151  ;;  %v1038_v54 = vmul.f32 %v4150_v21, %v4806_v36  ;;  %v989_v36 = vpop.xlane.xlu1 %988 }
 0x411   :  { %v969_v41 = vsel %vm833_vm0, %v4894_v26, 0.0  ;;  %v4904_v45 = vpop.eup %4153 }
 0x412   :  { %3824 = vmatmul.msk.f32.vlgmr.msrb.gmra.mxu3 %vm833_vm0, %v1038_v54  ;;  %v999_v40 = vsel %vm833_vm0, %v4904_v45, 0.0 }
 0x414   :  { %970 = vadd.xlane.f32.xlu2 %v969_v41 }
 0x416   :  { %4035 = vrot.lane.b32.xlu0 %v4034_v35, %s5847_s19 }
 0x417   :  { %v977_v44 = vpop.xlane.xlu0 %976 }
 0x418   :  { %4155 = vrcp.f32 %v977_v44 }
 0x419   :  { %4157 = vpow2.f32 %v930_v33 }
 0x41a   :  { %4159 = vrcp.f32 %v989_v36 }
 0x41c   :  { %1000 = vadd.xlane.f32.xlu2 %v999_v40 }
 0x41e   :  { %v4156_v52 = vpop.eup %4155 }
 0x41f   :  { %v1041_v53 = vmul.f32 %v4156_v52, %v4819_v57  ;;  %v974_v13 = vpop.xlane.xlu0 %973  ;;  %v4909_v56 = vpop.eup %4157 }
 0x420   :  { %v978_v32 = vsel %vm833_vm0, %v4909_v56, 0.0  ;;  %v4160_v34 = vpop.eup %4159  ;;  %v998_v60 = vpop.xlane.xlu1 %997 }
 0x421   :  { %3827 = vmatmul.msk.f32.vlgmr.msrb.gmra.mxu2 %vm833_vm0, %v1041_v53  ;;  %v1045_v58 = vmul.f32 %v4160_v34, %v4795_v15  ;;  %v4019_v15 = vpack.i.bf16 %v4610_v25, %v4608_v24 }
 0x424   :  { %979 = vadd.xlane.f32.xlu2 %v978_v32 }
 0x427   :  { %v983_v59 = vpop.xlane.xlu0 %982 }
 0x428   :  { %v4916_v57 = vpop.xlane.xlu1 %1006 }
 0x429   :  { %3831 = vmatmul.msk.f32.vlgmr.msra.gmra.mxu2 %vm833_vm0, %v1045_v58 }
 0x42f   :  { %v962_v61 = vpop.xlane.xlu0 %961 }
 0x430   :  { %4161 = vrcp.f32 %v962_v61  ;;  %v992_v4 = vpop.xlane.xlu1 %991 }
 0x431   :  { %4163 = vrcp.f32 %v974_v13 }
 0x436   :  { %v4162_v2 = vpop.eup %4161 }
 0x437   :  { %v1036_v30 = vmul.f32 %v4162_v2, %v4848_v23  ;;  %v4164_v29 = vpop.eup %4163  ;;  %v913_v23 = vsub.f32 %v4812_v49, %v893_v16  ;;  %v1010_v25 = vpop.xlane.xlu0 %1009 }
 0x438   :  { %v1040_v31 = vmul.f32 %v4164_v29, %v4827_v5 }
 0x439   :  { %3822 = vmatmul.msk.f32.vlgmr.msra.gmra.mxu1 %vm833_vm0, %v1036_v30  ;;  %v952_v55 = vmul.f32 1.442695, %v913_v23 }
 0x43a   :  { %1335 = vmatpush.msra.mxu1 %v4013_v27 }
 0x43b   :  { %4165 = vpow2.f32 %v952_v55 }
 0x43c   :  { %4020 = vrot.lane.b32.xlu2 %v4019_v15, %s5847_s19  ;;  %s5867_s19 = smov 24  }
 0x441   :  { %3826 = vmatmul.msk.f32.vlgmr.msrb.gmra.mxu1 %vm833_vm0, %v1040_v31  ;;  %v4927_v7 = vpop.eup %4165 }
 0x442   :  { %v1011_v24 = vsel %vm833_vm0, %v4927_v7, 0.0 }
 0x448   :  { %v4026_v51 = vpop.permute.xlu1 %4025 }
 0x449   :  { %v4028_v6 = vunpack.i.h.bf16 %v4026_v51  ;;  %v4027_v16 = vunpack.i.l.bf16 %v4026_v51 }
 0x44a   :  { %v4932_v43 = vpop.permute.xlu0 %4030 }
 0x44b   :  { %1439 = vmatpush.msrb.mxu1 %v4028_v6  ;;  %v4032_v13 = vunpack.i.l.bf16 %v4932_v43  ;;  %v4033_v34 = vunpack.i.h.bf16 %v4932_v43  ;;  %v1673_v43 = vld [vmem:[%s5833_s4 + $0x10] sm:$0xff] }
 0x465   :  { %1012 = vadd.xlane.f32.xlu2 %v1011_v24 }
 0x474   :  { %v1103_v3 = vpop.f32.mrf.mxu0 }
 0x475   :  { %1576 = vrot.lane.b32.xlu1 %v1103_v3, %s5857_s20  ;;  %v1004_v10 = vpop.xlane.xlu0 %1003  ;;  %v1675_v3 = vld [vmem:[%s5833_s4 + $0x20] sm:$0xff] }
 0x477   :  { %v986_v5 = vpop.xlane.xlu2 %985 }
 0x478   :  { %4167 = vrcp.f32 %v986_v5  ;;  %v1674_v5 = vld [vmem:[%s5833_s4 + $0x18] sm:$0xff] }
 0x479   :  { %4169 = vrcp.f32 %v998_v60 }
 0x47a   :  { %4171 = vrcp.f32 %v1010_v25 }
 0x47c   :  { %v4938_v22 = vpop.f32.mrf.mxu3 }
 0x47e   :  { %v4168_v38 = vpop.eup %4167 }
 0x47f   :  { %v1044_v49 = vmul.f32 %v4168_v38, %v4879_v37  ;;  %v995_v9 = vpop.xlane.xlu2 %994  ;;  %v4170_v11 = vpop.eup %4169  ;;  %v1672_v38 = vld [vmem:[%s5833_s4 + $0x8] sm:$0xff] }
 0x480   :  { %v1048_v0 = vmul.f32 %v4170_v11, %v4834_v8  ;;  %v4172_v62 = vpop.eup %4171 }
 0x481   :  { %3830 = vmatmul.msk.f32.vlgmr.msra.gmra.mxu1 %vm833_vm0, %v1044_v49  ;;  %v1052_v18 = vmul.f32 %v4172_v62, %v4856_v39  ;;  %v1671_v49 = vld [vmem:[%s5833_s4] sm:$0xff] }
 0x487   :  { %v971_v14 = vpop.xlane.xlu2 %970 }
 0x488   :  { %4173 = vrcp.f32 %v971_v14  ;;  %v4036_v42 = vpop.permute.xlu0 %4035 }
 0x489   :  { %v4038_v48 = vunpack.i.h.bf16 %v4036_v42  ;;  %3834 = vmatmul.msk.f32.vlgmr.msrb.gmra.mxu1 %vm833_vm0, %v1048_v0  ;;  %4175 = vrcp.f32 %v983_v59  ;;  %v4037_v39 = vunpack.i.l.bf16 %v4036_v42 }
 0x48a   :  { %4177 = vrcp.f32 %v995_v9 }
 0x48b   :  { %1543 = vmatpush.msra.mxu1 %v4038_v48 }
 0x48d   :  { %v1155_v50 = vpop.f32.mrf.mxu2 }
 0x48e   :  { %v4174_v37 = vpop.eup %4173  ;;  %1592 = vrot.lane.b32.xlu0 %v1155_v50, %s5861_s21 }
 0x48f   :  { %v1039_v8 = vmul.f32 %v4174_v37, %v4894_v26  ;;  %v1001_v21 = vpop.xlane.xlu2 %1000  ;;  %v4176_v54 = vpop.eup %4175 }
 0x490   :  { %v1043_v41 = vmul.f32 %v4176_v54, %v4838_v12  ;;  %4179 = vrcp.f32 %v1001_v21  ;;  %v4178_v26 = vpop.eup %4177 }
 0x491   :  { %3825 = vmatmul.msk.f32.vlgmr.msra.gmra.mxu0 %vm833_vm0, %v1039_v8  ;;  %3838 = vmatmul.msk.f32.vlgmr.msra.gmra.mxu1 %vm833_vm0, %v1052_v18  ;;  %v1047_v36 = vmul.f32 %v4178_v26, %v4887_v19 }
 0x492   :  { %1413 = vmatpush.msra.mxu0 %v4027_v16 }
 0x495   :  { %v1181_v47 = vpop.f32.mrf.mxu3 }
 0x496   :  { %1600 = vrot.lane.b32.xlu1 %v1181_v47, %s5855_s22  ;;  %v4180_v33 = vpop.eup %4179 }
 0x497   :  { %v980_v35 = vpop.xlane.xlu2 %979  ;;  %v1049_v32 = vmul.f32 %v4180_v33, %v4904_v45 }
 0x498   :  { %4181 = vrcp.f32 %v980_v35 }
 0x499   :  { %3829 = vmatmul.msk.f32.vlgmr.msrb.gmra.mxu0 %vm833_vm0, %v1043_v41  ;;  %4183 = vrcp.f32 %v4916_v57 }
 0x49a   :  { %1517 = vmatpush.msrb.mxu0 %v4037_v39  ;;  %4185 = vrcp.f32 %v992_v4 }
 0x49b   :  { %4187 = vrcp.f32 %v1004_v10 }
 0x49e   :  { %v4182_v44 = vpop.eup %4181 }
 0x49f   :  { %v1042_v40 = vmul.f32 %v4182_v44, %v4909_v56  ;;  %v4021_v52 = vpop.permute.xlu2 %4020  ;;  %v4184_v58 = vpop.eup %4183 }
 0x4a0   :  { %v4023_v53 = vunpack.i.h.bf16 %v4021_v52  ;;  %v4022_v12 = vunpack.i.l.bf16 %v4021_v52  ;;  %v4186_v19 = vpop.eup %4185  ;;  %v1051_v45 = vmul.f32 %v4184_v58, %v4844_v17 }
 0x4a1   :  { %3828 = vmatmul.msk.f32.vlgmr.msra.gmra.mxu3 %vm833_vm0, %v1042_v40  ;;  %3833 = vmatmul.msk.f32.vlgmr.msra.gmra.mxu0 %vm833_vm0, %v1047_v36  ;;  %v1046_v59 = vmul.f32 %v4186_v19, %v4852_v46  ;;  %v4188_v60 = vpop.eup %4187 }
 0x4a2   :  { %1387 = vmatpush.msrb.mxu3 %v4022_v12  ;;  %1465 = vmatpush.msrb.mxu2 %v4023_v53  ;;  %v1050_v61 = vmul.f32 %v4188_v60, %v4874_v63  ;;  %v4092_v60 = vld [vmem:[%s5834_s5] ss:$0 sm:$0xff] }
 0x4a3   :  { %3835 = vmatmul.msk.f32.vlgmr.msrb.gmra.mxu2 %vm833_vm0, %v1049_v32 }
 0x4a4   :  { %1491 = vmatpush.msra.mxu3 %v4032_v13  ;;  %1569 = vmatpush.msra.mxu2 %v4033_v34  ;;  %v1259_v56 = vpop.f32.mrf.mxu2 }
 0x4a5   :  { %1624 = vrot.lane.b32.xlu0 %v1259_v56, %s5859_s23 }
 0x4a9   :  { %3832 = vmatmul.msk.f32.vlgmr.msrb.gmra.mxu3 %vm833_vm0, %v1046_v59  ;;  %3837 = vmatmul.msk.f32.vlgmr.msrb.gmra.mxu0 %vm833_vm0, %v1051_v45 }
 0x4aa   :  { %1697 = vmatpush.msrb.mxu3 %v1675_v3  ;;  %v1774_v3 = vld [vmem:[%s5835_s6 + $0x38] sm:$0xff] }
 0x4ac   :  { %v1363_v15 = vpop.f32.mrf.mxu2  ;;  %1698 = vmatpush.msrb.mxu3 %v1674_v5  ;;  %v1771_v5 = vld [vmem:[%s5835_s6 + $0x20] sm:$0xff] }
 0x4ae   :  { %1699 = vmatpush.msrb.mxu3 %v1673_v43  ;;  %v1772_v43 = vld [vmem:[%s5835_s6 + $0x28] sm:$0xff] }
 0x4b0   :  { %1700 = vmatpush.msrb.mxu3 %v1672_v38  ;;  %v1769_v38 = vld [vmem:[%s5835_s6 + $0x10] sm:$0xff] }
 0x4b1   :  { %3836 = vmatmul.msk.f32.vlgmr.msra.gmra.mxu3 %vm833_vm0, %v1050_v61 }
 0x4b2   :  { %1701 = vmatpush.msrb.mxu3 %v1671_v49  ;;  %v1770_v49 = vld [vmem:[%s5835_s6 + $0x18] sm:$0xff] }
 0x4b6   :  { %v1129_v2 = vpop.f32.mrf.mxu1 }
 0x4b7   :  { %1584 = vrot.lane.b32.xlu2 %v1129_v2, %s5869_s24 }
 0x4be   :  { %v1233_v57 = vpop.f32.mrf.mxu1 }
 0x4bf   :  { %1616 = vrot.lane.b32.xlu1 %v1233_v57, %s5867_s19 }
 0x4d8   :  { %v1013_v17 = vpop.xlane.xlu2 %1012 }
 0x4d9   :  { %4189 = vrcp.f32 %v1013_v17 }
 0x4df   :  { %v4190_v46 = vpop.eup %4189 }
 0x4e0   :  { %v1053_v30 = vmul.f32 %v4190_v46, %v4927_v7 }
 0x4e2   :  { %3839 = vmatmul.msk.f32.vlgmr.msra.gmra.mxu2 %vm833_vm0, %v1053_v30 }
 0x4e7   :  { %v1577_v10 = vpop.permute.xlu1 %1576 }
 0x4e8   :  { %v1646_v42 = vsel %vm314_vm15, %v4938_v22, %v1577_v10  ;;  %v1768_v10 = vld [vmem:[%s5835_s6 + $0x8] sm:$0xff] }
 0x4fe   :  { %v4969_v63 = vpop.f32.mrf.mxu1 }
 0x500   :  { %v1593_v9 = vpop.permute.xlu0 %1592 }
 0x506   :  { %v1441_v31 = vpop.f32.mrf.mxu1 }
 0x508   :  { %v1601_v0 = vpop.permute.xlu1 %1600 }
 0x50e   :  { %v1207_v27 = vpop.f32.mrf.mxu0  ;;  %v1545_v24 = vpop.f32.mrf.mxu1 }
 0x50f   :  { %1608 = vrot.lane.b32.xlu0 %v1207_v27, %s5863_s17 }
 0x511   :  { %v1585_v14 = vpop.permute.xlu2 %1584 }
 0x512   :  { %v1648_v48 = vsel %vm833_vm0, %v1646_v42, %v1585_v14 }
 0x513   :  { %v1651_v62 = vsel %vm1650_vm1, %v1648_v48, %v1593_v9  ;;  %v1767_v9 = vld [vmem:[%s5835_s6] sm:$0xff] }
 0x514   :  { %v1654_v18 = vsel %vm1653_vm2, %v1651_v62, %v1601_v0 }
 0x516   :  { %v1311_v29 = vpop.f32.mrf.mxu0 }
 0x517   :  { %1578 = vrot.lane.b32.xlu0 %v1363_v15, %s5857_s20  ;;  %1640 = vrot.lane.b32.xlu2 %v1311_v29, %s5871_s0  ;;  %v1625_v11 = vpop.permute.xlu0 %1624  ;;  %s5880_s20 = smov 96  }
 0x51e   :  { %v1415_v4 = vpop.f32.mrf.mxu0 }
 0x51f   :  { %1602 = vrot.lane.b32.xlu0 %v1441_v31, %s5855_s22  ;;  %1594 = vrot.lane.b32.xlu2 %v1415_v4, %s5861_s21  ;;  %s5887_s21 = smov 24   ;;  %s5888_s22 = smov 20  }
 0x524   :  { %v1285_v51 = vpop.f32.mrf.mxu3 }
 0x525   :  { %1632 = vrot.lane.b32.xlu1 %v1285_v51, %s5873_s1 }
 0x526   :  { %v1519_v6 = vpop.f32.mrf.mxu0  ;;  %v1467_v23 = vpop.f32.mrf.mxu2 }
 0x527   :  { %1626 = vrot.lane.b32.xlu0 %v1519_v6, %s5859_s23  ;;  %s5889_s23 = smov 32  }
 0x52c   :  { %v1389_v55 = vpop.f32.mrf.mxu3 }
 0x52d   :  { %1610 = vrot.lane.b32.xlu1 %v1467_v23, %s5863_s17 }
 0x531   :  { %v1617_v37 = vpop.permute.xlu1 %1616 }
 0x534   :  { %v1493_v7 = vpop.f32.mrf.mxu3 }
 0x535   :  { %1586 = vrot.lane.b32.xlu1 %v1389_v55, %s5869_s24  ;;  %1618 = vrot.lane.b32.xlu2 %v1493_v7, %s5867_s19  ;;  %v1775_v7 = vld [vmem:[%s5835_s6 + $0x40] sm:$0xff]  ;;  %s5879_s19 = smov 104   ;;  %s5890_s24 = smov 36  }
 0x536   :  { %1800 = vmatpush.msra.mxu0 %v1775_v7 }
 0x53d   :  { %1634 = vrot.lane.b32.xlu1 %v1545_v24, %s5873_s1  ;;  %v1776_v24 = vld [vmem:[%s5835_s6 + $0x48] sm:$0xff] }
 0x53e   :  { %1823 = vmatpush.msrb.mxu1 %v1776_v24 }
 0x540   :  { %1824 = vmatpush.msrb.mxu1 %v1774_v3 }
 0x542   :  { %1825 = vmatpush.msrb.mxu1 %v1772_v43 }
 0x544   :  { %1826 = vmatpush.msrb.mxu1 %v1770_v49 }
 0x546   :  { %1827 = vmatpush.msrb.mxu1 %v1768_v10 }
 0x565   :  { %v1571_v25 = vpop.f32.mrf.mxu2 }
 0x566   :  { %1642 = vrot.lane.b32.xlu2 %v1571_v25, %s5871_s0  ;;  %v1773_v25 = vld [vmem:[%s5835_s6 + $0x30] sm:$0xff] }
 0x567   :  { %1801 = vmatpush.msra.mxu0 %v1773_v25 }
 0x569   :  { %1802 = vmatpush.msra.mxu0 %v1771_v5 }
 0x56b   :  { %1803 = vmatpush.msra.mxu0 %v1769_v38 }
 0x56d   :  { %1804 = vmatpush.msra.mxu0 %v1767_v9 }
 0x571   :  { %v1641_v54 = vpop.permute.xlu2 %1640 }
 0x579   :  { %v1595_v44 = vpop.permute.xlu2 %1594 }
 0x581   :  { %v1609_v50 = vpop.permute.xlu0 %1608 }
 0x582   :  { %v1657_v8 = vsel %vm1656_vm3, %v1654_v18, %v1609_v50 }
 0x583   :  { %v1660_v21 = vsel %vm1659_vm4, %v1657_v8, %v1617_v37  ;;  %v4093_v8 = vld [vmem:[%s5841_s12] ss:$0 sm:$0xff] }
 0x584   :  { %v1663_v16 = vsel %vm1662_vm5, %v1660_v21, %v1625_v11 }
 0x589   :  { %v1579_v39 = vpop.permute.xlu0 %1578 }
 0x58a   :  { %v1647_v33 = vsel %vm314_vm15, %v4969_v63, %v1579_v39  ;;  %v1852_v39 = vld [vmem:[%s5837_s8 + $0x68] sm:$0xff] }
 0x58f   :  { %v1619_v12 = vpop.permute.xlu2 %1618 }
 0x591   :  { %v1603_v52 = vpop.permute.xlu0 %1602 }
 0x597   :  { %v1633_v22 = vpop.permute.xlu1 %1632 }
 0x598   :  { %v1666_v47 = vsel %vm1665_vm6, %v1663_v16, %v1633_v22  ;;  %v4094_v16 = vld [vmem:[%s5842_s13] ss:$0 sm:$0xff] }
 0x599   :  { %v1669_v41 = vsel %vm1668_vm8, %v1666_v47, %v1641_v54  ;;  %v1627_v58 = vpop.permute.xlu0 %1626 }
 0x59a   :  { %3840 = vmatmul.msk.f32.vlgmr.msrb.gmra.mxu3 %vm174_vm7, %v1669_v41  ;;  %v1854_v41 = vld [vmem:[%s5837_s8 + $0x78] sm:$0xff] }
 0x59b   :  { %1869 = vmatpush.msrb.mxu2 %v1854_v41 }
 0x59f   :  { %v1611_v35 = vpop.permute.xlu1 %1610 }
 0x5a7   :  { %v1587_v26 = vpop.permute.xlu1 %1586 }
 0x5a8   :  { %v1649_v36 = vsel %vm833_vm0, %v1647_v33, %v1587_v26 }
 0x5a9   :  { %v1652_v40 = vsel %vm1650_vm1, %v1649_v36, %v1595_v44  ;;  %v1851_v44 = vld [vmem:[%s5837_s8 + $0x60] sm:$0xff]  ;;  %v1858_v36 = vld [vmem:[%s5837_s8 + $0x98] sm:$0xff] }
 0x5aa   :  { %v1655_v53 = vsel %vm1653_vm2, %v1652_v40, %v1603_v52  ;;  %1904 = vmatpush.msra.mxu3 %v1858_v36  ;;  %v1850_v52 = vld [vmem:[%s5837_s8 + $0x58] sm:$0xff] }
 0x5ab   :  { %v1658_v13 = vsel %vm1656_vm3, %v1655_v53, %v1611_v35  ;;  %v1853_v35 = vld [vmem:[%s5837_s8 + $0x70] sm:$0xff] }
 0x5ac   :  { %v1661_v32 = vsel %vm1659_vm4, %v1658_v13, %v1619_v12  ;;  %1870 = vmatpush.msrb.mxu2 %v1853_v35  ;;  %v1849_v53 = vld [vmem:[%s5837_s8 + $0x50] sm:$0xff]  ;;  %v1848_v12 = vld [vmem:[%s5837_s8 + $0x48] sm:$0xff]  ;;  %v1847_v13 = vld [vmem:[%s5837_s8 + $0x40] sm:$0xff] }
 0x5ad   :  { %v1664_v19 = vsel %vm1662_vm5, %v1661_v32, %v1627_v58 }
 0x5ae   :  { %1871 = vmatpush.msrb.mxu2 %v1852_v39 }
 0x5af   :  { %v1635_v34 = vpop.permute.xlu1 %1634 }
 0x5b0   :  { %v1667_v56 = vsel %vm1665_vm6, %v1664_v19, %v1635_v34  ;;  %1872 = vmatpush.msrb.mxu2 %v1851_v44  ;;  %v1846_v34 = vld [vmem:[%s5837_s8 + $0x38] sm:$0xff]  ;;  %v1845_v19 = vld [vmem:[%s5837_s8 + $0x30] sm:$0xff] }
 0x5b2   :  { %1873 = vmatpush.msrb.mxu2 %v1850_v52  ;;  %v3854_v52 = vld [vmem:[%s5831_s2 + $0x48] sm:$0xff] }
 0x5b3   :  { %2003 = vmatpush.msrb.mxu0 %v3854_v52 }
 0x5b4   :  { %1874 = vmatpush.msrb.mxu2 %v1849_v53  ;;  %v3853_v53 = vld [vmem:[%s5831_s2 + $0x40] sm:$0xff] }
 0x5b5   :  { %2004 = vmatpush.msrb.mxu0 %v3853_v53 }
 0x5b6   :  { %1875 = vmatpush.msrb.mxu2 %v1848_v12  ;;  %v3852_v12 = vld [vmem:[%s5831_s2 + $0x38] sm:$0xff] }
 0x5b7   :  { %2005 = vmatpush.msrb.mxu0 %v3852_v12 }
 0x5b8   :  { %1876 = vmatpush.msrb.mxu2 %v1847_v13  ;;  %v3851_v13 = vld [vmem:[%s5831_s2 + $0x30] sm:$0xff] }
 0x5b9   :  { %2006 = vmatpush.msrb.mxu0 %v3851_v13 }
 0x5ba   :  { %1877 = vmatpush.msrb.mxu2 %v1846_v34 }
 0x5bc   :  { %1878 = vmatpush.msrb.mxu2 %v1845_v19 }
 0x5c0   :  { %v1643_v45 = vpop.permute.xlu2 %1642 }
 0x5c1   :  { %v1670_v59 = vsel %vm1668_vm8, %v1667_v56, %v1643_v45  ;;  %v1844_v45 = vld [vmem:[%s5837_s8 + $0x28] sm:$0xff] }
 0x5c2   :  { %3841 = vmatmul.msk.f32.gmra.mxu3 %vm174_vm7, %v1670_v59  ;;  %1879 = vmatpush.msrb.mxu2 %v1844_v45 }
 0x61d   :  { %v1703_v61 = vpop.f32.mrf.mxu3 }
 0x61e   :  { %v1704_v2 = vadd.f32 %v4092_v60, %v1703_v61 }
 0x620   :  { %v5023_v57 = vadd.f32 %v1704_v2, %v4490_v1  ;;  %v1842_v2 = vld [vmem:[%s5837_s8 + $0x18] sm:$0xff] }
 0x622   :  { %v1713_v17 = vsel %vm174_vm7, %v5023_v57, 0.0 }
 0x623   :  { %1714 = vadd.xlane.f32.xlu0 %v1713_v17 }
 0x645   :  { %v1706_v46 = vpop.f32.mrf.mxu3 }
 0x646   :  { %v1707_v30 = vadd.f32 %v4092_v60, %v1706_v46  ;;  %v1843_v60 = vld [vmem:[%s5837_s8 + $0x20] sm:$0xff] }
 0x647   :  { %1880 = vmatpush.msrb.mxu2 %v1843_v60 }
 0x648   :  { %v5028_v27 = vadd.f32 %v1707_v30, %v4501_v20 }
 0x649   :  { %1881 = vmatpush.msrb.mxu2 %v1842_v2 }
 0x64a   :  { %v1716_v63 = vsel %vm174_vm7, %v5028_v27, 0.0 }
 0x64b   :  { %1717 = vadd.xlane.f32.xlu1 %v1716_v63 }
 0x696   :  { %v1715_v15 = vpop.xlane.xlu0 %1714 }
 0x697   :  { %v1719_v29 = vmul.f32 %v1715_v15, %v4505_v28 }
 0x699   :  { %v1721_v31 = vsub.f32 %v5023_v57, %v1719_v29  ;;  %v1841_v29 = vld [vmem:[%s5837_s8 + $0x10] sm:$0xff] }
 0x69a   :  { %1882 = vmatpush.msrb.mxu2 %v1841_v29 }
 0x69b   :  { %v1723_v1 = vmul.f32 %v1721_v31, %v1721_v31 }
 0x69d   :  { %v1725_v4 = vsel %vm174_vm7, %v1723_v1, 0.0  ;;  %v1840_v1 = vld [vmem:[%s5837_s8 + $0x8] sm:$0xff] }
 0x69e   :  { %1726 = vadd.xlane.f32.xlu2 %v1725_v4  ;;  %v1856_v4 = vld [vmem:[%s5837_s8 + $0x88] sm:$0xff]  ;;  %1883 = vmatpush.msrb.mxu2 %v1840_v1 }
 0x6be   :  { %v1718_v51 = vpop.xlane.xlu1 %1717 }
 0x6bf   :  { %v1720_v6 = vmul.f32 %v1718_v51, %v4505_v28  ;;  %v1839_v51 = vld [vmem:[%s5837_s8] sm:$0xff] }
 0x6c0   :  { %1884 = vmatpush.msrb.mxu2 %v1839_v51 }
 0x6c1   :  { %v5037_v23 = vsub.f32 %v5028_v27, %v1720_v6  ;;  %v1855_v6 = vld [vmem:[%s5837_s8 + $0x80] sm:$0xff] }
 0x6c3   :  { %v1724_v20 = vmul.f32 %v5037_v23, %v5037_v23 }
 0x6c5   :  { %v1728_v55 = vsel %vm174_vm7, %v1724_v20, 0.0 }
 0x6c6   :  { %1729 = vadd.xlane.f32.xlu0 %v1728_v55 }
 0x711   :  { %v1727_v11 = vpop.xlane.xlu2 %1726 }
 0x712   :  { %v1731_v0 = vmul.f32 %v1727_v11, %v4505_v28 }
 0x714   :  { %v1733_v14 = vadd.f32 1e-05, %v1731_v0 }
 0x716   :  { %4191 = vrsqrt.f32 %v1733_v14  ;;  %vm1741_vm10 = vweird.f32 %v1733_v14 }
 0x71c   :  { %v4192_v42 = vpop.eup %4191 }
 0x71d   :  { %v1736_v48 = vmul.f32 %v4192_v42, %v1733_v14  ;;  %vm1742_vm9 = vweird.f32 %v4192_v42  ;;  %v4095_v14 = vld [vmem:[%s5838_s9] ss:$0 sm:$0xff] }
 0x71e   :  { %vm1743_vm11 = vmor %vm1741_vm10, %vm1742_vm9 }
 0x71f   :  { %v1737_v62 = vmul.f32 %v4192_v42, %v1736_v48 }
 0x721   :  { %v1738_v50 = vmul.f32 0.5, %v1737_v62 }
 0x723   :  { %v1739_v37 = vsub.f32 1.5, %v1738_v50 }
 0x725   :  { %v1740_v18 = vmul.f32 %v4192_v42, %v1739_v37 }
 0x727   :  { %v1744_v21 = vsel %vm1743_vm11, %v4192_v42, %v1740_v18 }
 0x728   :  { %v1755_v22 = vmul.f32 %v1744_v21, %v1721_v31  ;;  %v1857_v31 = vld [vmem:[%s5837_s8 + $0x90] sm:$0xff] }
 0x729   :  { %1905 = vmatpush.msra.mxu3 %v1857_v31 }
 0x72a   :  { %v1760_v54 = vmul.f32 %v4093_v8, %v1755_v22 }
 0x72b   :  { %1906 = vmatpush.msra.mxu3 %v1856_v4 }
 0x72c   :  { %v1765_v47 = vadd.f32 %v4094_v16, %v1760_v54 }
 0x72d   :  { %1907 = vmatpush.msra.mxu3 %v1855_v6 }
 0x72e   :  { %3842 = vmatmul.msk.f32.vlgmr.msra.gmra.mxu0 %vm174_vm7, %v1765_v47  ;;  %3844 = vmatmul.msk.f32.vlgmr.msrb.gmra.mxu1 %vm174_vm7, %v1765_v47 }
 0x739   :  { %v1730_v26 = vpop.xlane.xlu0 %1729 }
 0x73a   :  { %v1732_v33 = vmul.f32 %v1730_v26, %v4505_v28 }
 0x73c   :  { %v1734_v40 = vadd.f32 1e-05, %v1732_v33 }
 0x73e   :  { %4193 = vrsqrt.f32 %v1734_v40  ;;  %vm1751_vm13 = vweird.f32 %v1734_v40 }
 0x744   :  { %v4194_v32 = vpop.eup %4193 }
 0x745   :  { %v1746_v58 = vmul.f32 %v4194_v32, %v1734_v40  ;;  %vm1752_vm12 = vweird.f32 %v4194_v32 }
 0x746   :  { %vm1753_vm14 = vmor %vm1751_vm13, %vm1752_vm12 }
 0x747   :  { %v1747_v56 = vmul.f32 %v4194_v32, %v1746_v58 }
 0x749   :  { %v1748_v59 = vmul.f32 0.5, %v1747_v56 }
 0x74b   :  { %v1749_v61 = vsub.f32 1.5, %v1748_v59 }
 0x74d   :  { %v1750_v17 = vmul.f32 %v4194_v32, %v1749_v61 }
 0x74f   :  { %v1754_v46 = vsel %vm1753_vm14, %v4194_v32, %v1750_v17  ;;  %v3850_v32 = vld [vmem:[%s5831_s2 + $0x28] sm:$0xff]  ;;  %v4096_v17 = vld [vmem:[%s5839_s10 + $0x1] ss:$0 sm:$0xff] }
 0x750   :  { %v1756_v30 = vmul.f32 %v1754_v46, %v5037_v23  ;;  %v1777_v23 = vld [vmem:[%s5836_s7] sm:$0x3]  ;;  %2007 = vmatpush.msrb.mxu0 %v3850_v32 }
 0x751   :  { %v1779_v20 = vperm.slane %v1777_v23, 0  ;;  %v1780_v55 = vperm.slane %v1777_v23, 1 }
 0x752   :  { %v1761_v63 = vmul.f32 %v4093_v8, %v1756_v30 }
 0x754   :  { %v1766_v15 = vadd.f32 %v4094_v16, %v1761_v63  ;;  %v4097_v63 = vld [vmem:[%s5840_s11 + $0x1] ss:$0 sm:$0xff] }
 0x756   :  { %3843 = vmatmul.msk.f32.gmra.mxu0 %vm174_vm7, %v1766_v15  ;;  %3845 = vmatmul.msk.f32.gmra.mxu1 %vm174_vm7, %v1766_v15 }
 0x7ab   :  { %v1806_v7 = vpop.f32.mrf.mxu0  ;;  %v1829_v24 = vpop.f32.mrf.mxu1 }
 0x7ac   :  { %v1807_v25 = vadd.f32 %v1806_v7, %v1779_v20  ;;  %v1830_v3 = vadd.f32 %v1829_v24, %v1780_v55 }
 0x7ae   :  { %v1835_v5 = vmax.f32 %v1807_v25, 0.0  ;;  %v1836_v43 = vmax.f32 %v1830_v3, 0.0 }
 0x7b0   :  { %1885 = vmatmul.f32.vlgmr.msrb.gmra.mxu2 %v1835_v5  ;;  %3846 = vmatmul.msk.f32.vlgmr.msra.gmra.mxu3 %vm1665_vm6, %v1836_v43  ;;  %v4098_v43 = vld [vmem:[%s5832_s3 + $0x1] ss:$0 sm:$0xff]  ;;  %s5877_s3 = smov 88  }
 0x7d3   :  { %v1809_v38 = vpop.f32.mrf.mxu0  ;;  %v1832_v49 = vpop.f32.mrf.mxu1 }
 0x7d4   :  { %v1810_v9 = vadd.f32 %v1809_v38, %v1779_v20  ;;  %v1833_v10 = vadd.f32 %v1832_v49, %v1780_v55 }
 0x7d6   :  { %v1837_v11 = vmax.f32 %v1810_v9, 0.0  ;;  %v1838_v0 = vmax.f32 %v1833_v10, 0.0 }
 0x7d8   :  { %1888 = vmatmul.f32.gmra.mxu2 %v1837_v11  ;;  %3847 = vmatmul.msk.f32.gmra.mxu3 %vm1665_vm6, %v1838_v0 }
 0x833   :  { %v1886_v42 = vpop.f32.mrf.mxu2  ;;  %v1909_v62 = vpop.f32.mrf.mxu3 }
 0x834   :  { %v1887_v48 = vadd.f32 %v4095_v14, %v1886_v42 }
 0x836   :  { %v1910_v50 = vadd.f32 %v1909_v62, %v1887_v48 }
 0x838   :  { %v5154_v37 = vadd.f32 %v1910_v50, %v5023_v57 }
 0x83a   :  { %v1921_v18 = vsel %vm174_vm7, %v5154_v37, 0.0 }
 0x83b   :  { %1922 = vadd.xlane.f32.xlu1 %v1921_v18 }
 0x85b   :  { %v1889_v8 = vpop.f32.mrf.mxu2  ;;  %v1912_v22 = vpop.f32.mrf.mxu3 }
 0x85c   :  { %v1890_v21 = vadd.f32 %v4095_v14, %v1889_v8 }
 0x85e   :  { %v1913_v16 = vadd.f32 %v1912_v22, %v1890_v21 }
 0x860   :  { %v5159_v54 = vadd.f32 %v1913_v16, %v5028_v27 }
 0x862   :  { %v1924_v47 = vsel %vm174_vm7, %v5159_v54, 0.0 }
 0x863   :  { %1925 = vadd.xlane.f32.xlu2 %v1924_v47 }
 0x8ae   :  { %v1923_v41 = vpop.xlane.xlu1 %1922 }
 0x8af   :  { %v1927_v35 = vmul.f32 %v1923_v41, %v4505_v28 }
 0x8b1   :  { %v1929_v57 = vsub.f32 %v5154_v37, %v1927_v35 }
 0x8b3   :  { %v1931_v39 = vmul.f32 %v1929_v57, %v1929_v57 }
 0x8b5   :  { %v1933_v26 = vsel %vm174_vm7, %v1931_v39, 0.0 }
 0x8b6   :  { %1934 = vadd.xlane.f32.xlu0 %v1933_v26 }
 0x8d6   :  { %v1926_v33 = vpop.xlane.xlu2 %1925 }
 0x8d7   :  { %v1928_v44 = vmul.f32 %v1926_v33, %v4505_v28 }
 0x8d9   :  { %v1930_v36 = vsub.f32 %v5159_v54, %v1928_v44 }
 0x8db   :  { %v1932_v27 = vmul.f32 %v1930_v36, %v1930_v36 }
 0x8dd   :  { %v1936_v40 = vsel %vm174_vm7, %v1932_v27, 0.0 }
 0x8de   :  { %1937 = vadd.xlane.f32.xlu1 %v1936_v40 }
 0x929   :  { %v1935_v34 = vpop.xlane.xlu0 %1934 }
 0x92a   :  { %v1939_v58 = vmul.f32 %v1935_v34, %v4505_v28 }
 0x92c   :  { %v1941_v19 = vadd.f32 1e-05, %v1939_v58 }
 0x92e   :  { %4195 = vrsqrt.f32 %v1941_v19  ;;  %vm1949_vm10 = vweird.f32 %v1941_v19 }
 0x934   :  { %v4196_v56 = vpop.eup %4195 }
 0x935   :  { %v1944_v45 = vmul.f32 %v4196_v56, %v1941_v19  ;;  %vm1950_vm9 = vweird.f32 %v4196_v56 }
 0x936   :  { %vm1951_vm11 = vmor %vm1949_vm10, %vm1950_vm9 }
 0x937   :  { %v1945_v59 = vmul.f32 %v4196_v56, %v1944_v45 }
 0x939   :  { %v1946_v60 = vmul.f32 0.5, %v1945_v59 }
 0x93b   :  { %v1947_v61 = vsub.f32 1.5, %v1946_v60 }
 0x93d   :  { %v1948_v2 = vmul.f32 %v4196_v56, %v1947_v61 }
 0x93f   :  { %v1952_v46 = vsel %vm1951_vm11, %v4196_v56, %v1948_v2 }
 0x940   :  { %v1963_v30 = vmul.f32 %v1952_v46, %v1929_v57 }
 0x942   :  { %v1968_v15 = vmul.f32 %v4096_v17, %v1963_v30 }
 0x944   :  { %v1973_v29 = vadd.f32 %v4097_v63, %v1968_v15 }
 0x946   :  { %3856 = vmatmul.msk.f32.vlgmr.msrb.gmra.mxu0 %vm174_vm7, %v1973_v29 }
 0x951   :  { %v1938_v31 = vpop.xlane.xlu1 %1937 }
 0x952   :  { %v1940_v1 = vmul.f32 %v1938_v31, %v4505_v28 }
 0x954   :  { %v1942_v4 = vadd.f32 1e-05, %v1940_v1 }
 0x956   :  { %4197 = vrsqrt.f32 %v1942_v4  ;;  %vm1959_vm13 = vweird.f32 %v1942_v4 }
 0x95c   :  { %v4198_v51 = vpop.eup %4197 }
 0x95d   :  { %v1954_v6 = vmul.f32 %v4198_v51, %v1942_v4  ;;  %vm1960_vm12 = vweird.f32 %v4198_v51 }
 0x95e   :  { %vm1961_vm14 = vmor %vm1959_vm13, %vm1960_vm12 }
 0x95f   :  { %v1955_v23 = vmul.f32 %v4198_v51, %v1954_v6 }
 0x961   :  { %v1956_v20 = vmul.f32 0.5, %v1955_v23 }
 0x963   :  { %v1957_v55 = vsub.f32 1.5, %v1956_v20 }
 0x965   :  { %v1958_v7 = vmul.f32 %v4198_v51, %v1957_v55 }
 0x967   :  { %v1962_v24 = vsel %vm1961_vm14, %v4198_v51, %v1958_v7 }
 0x968   :  { %v1964_v25 = vmul.f32 %v1962_v24, %v1930_v36 }
 0x96a   :  { %v1969_v3 = vmul.f32 %v4096_v17, %v1964_v25 }
 0x96c   :  { %v1974_v5 = vadd.f32 %v4097_v63, %v1969_v3 }
 0x96e   :  { %3857 = vmatmul.msk.f32.gmra.mxu0 %vm174_vm7, %v1974_v5 }
 0x9c3   :  { %v2009_v38 = vpop.f32.mrf.mxu0 }
 0x9c4   :  { %v5197_v49 = vadd.f32 %v4098_v43, %v2009_v38 }
 0x9c6   :  { %2025 = vrot.lane.b32.xlu1 %v5197_v49, %s4316_s27  ;;  %2017 = vrot.lane.b32.xlu0 %v5197_v49, %s4315_s26 }
 0x9c7   :  { %2021 = vrot.lane.b32.xlu2 %v5197_v49, %s4317_s28 }
 0x9ce   :  { %2029 = vrot.lane.b32.xlu1 %v5197_v49, %s4319_s30  ;;  %2033 = vrot.lane.b32.xlu0 %v5197_v49, %s4314_s25 }
 0x9cf   :  { %2041 = vrot.lane.b32.xlu2 %v5197_v49, %s4318_s29 }
 0x9d6   :  { %2053 = vrot.lane.b32.xlu1 %v5197_v49, %s5877_s3  ;;  %2049 = vrot.lane.b32.xlu0 %v5197_v49, %s5878_s18 }
 0x9de   :  { %2037 = vrot.lane.b32.xlu0 %v5197_v49, %s5879_s19 }
 0x9e6   :  { %2045 = vrot.lane.b32.xlu0 %v5197_v49, %s5880_s20 }
 0x9eb   :  { %v2012_v9 = vpop.f32.mrf.mxu0 }
 0x9ec   :  { %v5219_v10 = vadd.f32 %v4098_v43, %v2012_v9 }
 0x9ee   :  { %2035 = vrot.lane.b32.xlu1 %v5219_v10, %s4314_s25  ;;  %2023 = vrot.lane.b32.xlu0 %v5219_v10, %s4317_s28  ;;  %s5881_s25 = smov 48   ;;  %s5884_s28 = smov 8  }
 0x9ef   :  { %2019 = vrot.lane.b32.xlu2 %v5219_v10, %s4315_s26  ;;  %s5882_s26 = smov 12  }
 0x9f6   :  { %2051 = vrot.lane.b32.xlu1 %v5219_v10, %s5878_s18 }
 0x9f7   :  { %2027 = vrot.lane.b32.xlu2 %v5219_v10, %s4316_s27  ;;  %s5883_s27 = smov 4  }
 0x9fe   :  { %2047 = vrot.lane.b32.xlu1 %v5219_v10, %s5880_s20 }
 0x9ff   :  { %2043 = vrot.lane.b32.xlu2 %v5219_v10, %s4318_s29  ;;  %s5885_s29 = smov 16  }
 0xa07   :  { %2031 = vrot.lane.b32.xlu2 %v5219_v10, %s4319_s30  ;;  %s5886_s30 = smov 28  }
 0xa0f   :  { %2039 = vrot.lane.b32.xlu2 %v5219_v10, %s5879_s19 }
 0xa21   :  { %v2022_v11 = vpop.permute.xlu2 %2021 }
 0xa22   :  { %2105 = vrot.lane.b32.xlu0 %v2022_v11, %s5877_s3  ;;  %v4044_v44 = vpack.i.bf16 %v2022_v11, %v5197_v49 }
 0xa29   :  { %v5242_v42 = vpop.permute.xlu2 %2041 }
 0xa38   :  { %v2026_v0 = vpop.permute.xlu1 %2025  ;;  %v2018_v14 = vpop.permute.xlu0 %2017 }
 0xa39   :  { %2131 = vrot.lane.b32.xlu2 %v2026_v0, %s5877_s3  ;;  %2079 = vrot.lane.b32.xlu0 %v2018_v14, %s5877_s3  ;;  %v4039_v36 = vpack.i.bf16 %v2026_v0, %v2018_v14 }
 0xa40   :  { %v5244_v48 = vpop.permute.xlu1 %2029  ;;  %v2034_v62 = vpop.permute.xlu0 %2033 }
 0xa41   :  { %2183 = vrot.lane.b32.xlu1 %v2034_v62, %s5877_s3  ;;  %2235 = vrot.lane.b32.xlu0 %v5242_v42, %s5877_s3  ;;  %v4049_v27 = vpack.i.bf16 %v5242_v42, %v2034_v62 }
 0xa48   :  { %v2054_v50 = vpop.permute.xlu1 %2053  ;;  %v5249_v18 = vpop.permute.xlu0 %2049 }
 0xa49   :  { %v5251_v8 = vpop.permute.xlu2 %2019  ;;  %3858 = vmatpush.xpose.msk.msra.mxu1 %vm314_vm15, %v2054_v50  ;;  %2287 = vrot.lane.b32.xlu2 %v5249_v18, %s5877_s3 }
 0xa4a   :  { %2157 = vrot.lane.b32.xlu0 %v5244_v48, %s5877_s3  ;;  %2339 = vrot.lane.b32.xlu1 %v5251_v8, %s5877_s3  ;;  %v4064_v40 = vpack.i.bf16 %v5251_v8, %v5249_v18 }
 0xa4c   :  { %3859 = vmatmul.msk.f32.vlgmr.msra.gmra.mxu1 %vm314_vm15, %v5197_v49 }
 0xa50   :  { %v2038_v21 = vpop.permute.xlu0 %2037 }
 0xa51   :  { %v5262_v22 = vpop.permute.xlu2 %2027  ;;  %2209 = vrot.lane.b32.xlu2 %v2038_v21, %s5877_s3  ;;  %v4054_v52 = vpack.i.bf16 %v2038_v21, %v5244_v48 }
 0xa52   :  { %2391 = vrot.lane.b32.xlu1 %v5262_v22, %s5877_s3 }
 0xa58   :  { %v2046_v16 = vpop.permute.xlu0 %2045 }
 0xa59   :  { %2261 = vrot.lane.b32.xlu2 %v2046_v16, %s5877_s3  ;;  %v5270_v47 = vpop.permute.xlu2 %2043  ;;  %v4059_v53 = vpack.i.bf16 %v5219_v10, %v2046_v16 }
 0xa5a   :  { %2313 = vrot.lane.b32.xlu1 %v5219_v10, %s5877_s3 }
 0xa60   :  { %v5272_v41 = vpop.permute.xlu1 %2035  ;;  %v5274_v35 = vpop.permute.xlu0 %2023 }
 0xa61   :  { %2443 = vrot.lane.b32.xlu0 %v5272_v41, %s5877_s3  ;;  %v5280_v57 = vpop.permute.xlu2 %2031 }
 0xa62   :  { %2365 = vrot.lane.b32.xlu1 %v5274_v35, %s5877_s3 }
 0xa68   :  { %v5282_v39 = vpop.permute.xlu1 %2051 }
 0xa69   :  { %2547 = vrot.lane.b32.xlu2 %v5282_v39, %s5877_s3  ;;  %2495 = vrot.lane.b32.xlu0 %v5270_v47, %s5877_s3  ;;  %v5290_v33 = vpop.permute.xlu2 %2039 }
 0xa70   :  { %v5288_v26 = vpop.permute.xlu1 %2047 }
 0xa71   :  { %2521 = vrot.lane.b32.xlu1 %v5288_v26, %s5877_s3  ;;  %2417 = vrot.lane.b32.xlu0 %v5280_v57, %s5877_s3 }
 0xa72   :  { %2469 = vrot.lane.b32.xlu2 %v5290_v33, %s5877_s3 }
 0xa79   :  { %4045 = vrot.lane.b32.xlu1 %v4044_v44, %s5881_s25  ;;  %4040 = vrot.lane.b32.xlu0 %v4039_v36, %s5881_s25 }
 0xa7a   :  { %4050 = vrot.lane.b32.xlu2 %v4049_v27, %s5881_s25 }
 0xa81   :  { %4065 = vrot.lane.b32.xlu1 %v4064_v40, %s5881_s25  ;;  %4055 = vrot.lane.b32.xlu0 %v4054_v52, %s5881_s25 }
 0xa82   :  { %4060 = vrot.lane.b32.xlu2 %v4059_v53, %s5881_s25 }
 0xa93   :  { %v2132_v12 = vpop.permute.xlu2 %2131 }
 0xa94   :  { %v2106_v13 = vpop.permute.xlu0 %2105  ;;  %3864 = vmatpush.xpose.msk.msra.mxu0 %vm314_vm15, %v2132_v12 }
 0xa95   :  { %3862 = vmatpush.xpose.msk.msrb.mxu3 %vm314_vm15, %v2106_v13 }
 0xa97   :  { %3865 = vmatmul.msk.f32.vlgmr.msra.gmra.mxu0 %vm314_vm15, %v2026_v0 }
 0xa98   :  { %3863 = vmatmul.msk.f32.vlgmr.msrb.gmra.mxu3 %vm314_vm15, %v2022_v11 }
 0xaa3   :  { %v2288_v32 = vpop.permute.xlu2 %2287 }
 0xaab   :  { %v2080_v34 = vpop.permute.xlu0 %2079  ;;  %v2210_v58 = vpop.permute.xlu2 %2209 }
 0xaac   :  { %3860 = vmatpush.xpose.msk.msrb.mxu1 %vm314_vm15, %v2080_v34  ;;  %3870 = vmatpush.xpose.msk.msrb.mxu0 %vm314_vm15, %v2210_v58 }
 0xaaf   :  { %3861 = vmatmul.msk.f32.vlgmr.msrb.gmra.mxu1 %vm314_vm15, %v2018_v14  ;;  %3871 = vmatmul.msk.f32.vlgmr.msrb.gmra.mxu0 %vm314_vm15, %v2038_v21 }
 0xab3   :  { %v2184_v19 = vpop.permute.xlu1 %2183  ;;  %v2236_v56 = vpop.permute.xlu0 %2235 }
 0xab4   :  { %3868 = vmatpush.xpose.msk.msra.mxu3 %vm314_vm15, %v2184_v19  ;;  %3872 = vmatpush.xpose.msk.msra.mxu2 %vm314_vm15, %v2236_v56  ;;  %v2262_v60 = vpop.permute.xlu2 %2261 }
 0xab7   :  { %3869 = vmatmul.msk.f32.vlgmr.msra.gmra.mxu3 %vm314_vm15, %v2034_v62  ;;  %3873 = vmatmul.msk.f32.vlgmr.msra.gmra.mxu2 %vm314_vm15, %v5242_v42 }
 0xab8   :  { %3876 = vmatpush.xpose.msk.msrb.mxu3 %vm314_vm15, %v2288_v32 }
 0xabc   :  { %v2158_v45 = vpop.permute.xlu0 %2157  ;;  %v2340_v59 = vpop.permute.xlu1 %2339 }
 0xabd   :  { %3866 = vmatpush.xpose.msk.msra.mxu1 %vm314_vm15, %v2158_v45  ;;  %3880 = vmatpush.xpose.msk.msrb.mxu2 %vm314_vm15, %v2340_v59 }
 0xabf   :  { %3877 = vmatmul.msk.f32.vlgmr.msrb.gmra.mxu3 %vm314_vm15, %v5249_v18 }
 0xac0   :  { %3867 = vmatmul.msk.f32.vlgmr.msra.gmra.mxu1 %vm314_vm15, %v5244_v48  ;;  %3881 = vmatmul.msk.f32.vlgmr.msrb.gmra.mxu2 %vm314_vm15, %v5251_v8 }
 0xac1   :  { %3874 = vmatpush.xpose.msk.msrb.mxu1 %vm314_vm15, %v2262_v60 }
 0xac3   :  { %v2548_v46 = vpop.permute.xlu2 %2547 }
 0xac4   :  { %v2392_v61 = vpop.permute.xlu1 %2391 }
 0xac5   :  { %3884 = vmatpush.xpose.msk.msra.mxu3 %vm314_vm15, %v2392_v61 }
 0xac8   :  { %3875 = vmatmul.msk.f32.vlgmr.msrb.gmra.mxu1 %vm314_vm15, %v2046_v16  ;;  %3885 = vmatmul.msk.f32.vlgmr.msra.gmra.mxu3 %vm314_vm15, %v5262_v22 }
 0xac9   :  { %v5337_v2 = vpop.f32.mrf.mxu1 }
 0xaca   :  { %v2573_v17 = vsel %vm833_vm0, %v5337_v2, -inf }
 0xacb   :  { %2574 = vmax.xlane.f32.xlu1 %v2573_v17 }
 0xacc   :  { %v2314_v30 = vpop.permute.xlu1 %2313  ;;  %v2470_v29 = vpop.permute.xlu2 %2469 }
 0xacd   :  { %3878 = vmatpush.xpose.msk.msra.mxu0 %vm314_vm15, %v2314_v30 }
 0xad0   :  { %3879 = vmatmul.msk.f32.vlgmr.msra.gmra.mxu0 %vm314_vm15, %v5219_v10 }
 0xad3   :  { %v2444_v63 = vpop.permute.xlu0 %2443 }
 0xad4   :  { %v2366_v15 = vpop.permute.xlu1 %2365  ;;  %3888 = vmatpush.xpose.msk.msra.mxu2 %vm314_vm15, %v2444_v63  ;;  %v4051_v51 = vpop.permute.xlu2 %4050 }
 0xad5   :  { %3882 = vmatpush.xpose.msk.msra.mxu1 %vm314_vm15, %v2366_v15  ;;  %v4052_v25 = vunpack.i.l.bf16 %v4051_v51  ;;  %v4053_v3 = vunpack.i.h.bf16 %v4051_v51 }
 0xad7   :  { %3889 = vmatmul.msk.f32.vlgmr.msra.gmra.mxu2 %vm314_vm15, %v5272_v41 }
 0xad8   :  { %3896 = vmatpush.xpose.msk.msrb.mxu2 %vm314_vm15, %v2548_v46  ;;  %3883 = vmatmul.msk.f32.vlgmr.msra.gmra.mxu1 %vm314_vm15, %v5274_v35 }
 0xad9   :  { %3890 = vmatpush.xpose.msk.msrb.mxu1 %vm314_vm15, %v2470_v29 }
 0xadb   :  { %v2496_v31 = vpop.permute.xlu0 %2495 }
 0xadc   :  { %3892 = vmatpush.xpose.msk.msrb.mxu3 %vm314_vm15, %v2496_v31 }
 0xadf   :  { %3893 = vmatmul.msk.f32.vlgmr.msrb.gmra.mxu3 %vm314_vm15, %v5270_v47  ;;  %3897 = vmatmul.msk.f32.vlgmr.msrb.gmra.mxu2 %vm314_vm15, %v5282_v39 }
 0xae0   :  { %3891 = vmatmul.msk.f32.vlgmr.msrb.gmra.mxu1 %vm314_vm15, %v5290_v33 }
 0xae3   :  { %v2522_v1 = vpop.permute.xlu1 %2521  ;;  %v2418_v4 = vpop.permute.xlu0 %2417 }
 0xae4   :  { %3886 = vmatpush.xpose.msk.msrb.mxu0 %vm314_vm15, %v2418_v4 }
 0xae7   :  { %3887 = vmatmul.msk.f32.vlgmr.msrb.gmra.mxu0 %vm314_vm15, %v5280_v57 }
 0xae8   :  { %3894 = vmatpush.xpose.msk.msra.mxu0 %vm314_vm15, %v2522_v1 }
 0xaeb   :  { %v4046_v6 = vpop.permute.xlu1 %4045  ;;  %v4041_v23 = vpop.permute.xlu0 %4040 }
 0xaec   :  { %v4048_v20 = vunpack.i.h.bf16 %v4046_v6  ;;  %v4047_v55 = vunpack.i.l.bf16 %v4046_v6  ;;  %v4043_v7 = vunpack.i.h.bf16 %v4041_v23  ;;  %v4042_v24 = vunpack.i.l.bf16 %v4041_v23 }
 0xaee   :  { %2814 = vmatpush.msra.mxu1 %v4047_v55  ;;  %2840 = vmatpush.msra.mxu3 %v4042_v24 }
 0xaef   :  { %2866 = vmatpush.msrb.mxu0 %v4048_v20  ;;  %2892 = vmatpush.msra.mxu2 %v4043_v7  ;;  %v5448_v20 = vpop.permute.xlu2 %4060 }
 0xaf0   :  { %3895 = vmatmul.msk.f32.vlgmr.msra.gmra.mxu0 %vm314_vm15, %v5288_v26  ;;  %2944 = vmatpush.msrb.mxu3 %v4052_v25 }
 0xaf1   :  { %2996 = vmatpush.msrb.mxu2 %v4053_v3 }
 0xaf3   :  { %v4056_v5 = vpop.permute.xlu0 %4055  ;;  %v5381_v62 = vpop.permute.xlu1 %4065 }
 0xaf4   :  { %v4058_v43 = vunpack.i.h.bf16 %v4056_v5  ;;  %v4057_v38 = vunpack.i.l.bf16 %v4056_v5 }
 0xaf6   :  { %2918 = vmatpush.msrb.mxu1 %v4057_v38  ;;  %2970 = vmatpush.msra.mxu0 %v4058_v43 }
 0xb14   :  { %v5365_v49 = vpop.f32.mrf.mxu0 }
 0xb15   :  { %v2582_v9 = vsel %vm833_vm0, %v5365_v49, -inf }
 0xb16   :  { %2583 = vmax.xlane.f32.xlu2 %v2582_v9 }
 0xb1b   :  { %v5369_v10 = vpop.f32.mrf.mxu3 }
 0xb1c   :  { %v2579_v11 = vsel %vm833_vm0, %v5369_v10, -inf }
 0xb1e   :  { %2580 = vmax.xlane.f32.xlu2 %v2579_v11 }
 0xb2c   :  { %v5373_v0 = vpop.f32.mrf.mxu1  ;;  %v5377_v42 = vpop.f32.mrf.mxu0 }
 0xb2d   :  { %v2576_v14 = vsel %vm833_vm0, %v5373_v0, -inf  ;;  %v2591_v48 = vsel %vm833_vm0, %v5377_v42, -inf }
 0xb2e   :  { %2577 = vmax.xlane.f32.xlu0 %v2576_v14 }
 0xb36   :  { %2592 = vmax.xlane.f32.xlu0 %v2591_v48 }
 0xb3a   :  { %v5383_v50 = vpop.f32.mrf.mxu2  ;;  %v5398_v53 = vpop.f32.mrf.mxu3 }
 0xb3b   :  { %v2594_v18 = vsel %vm833_vm0, %v5383_v50, -inf  ;;  %v2588_v34 = vsel %vm833_vm0, %v5398_v53, -inf }
 0xb3c   :  { %2595 = vmax.xlane.f32.xlu1 %v2594_v18 }
 0xb3d   :  { %v5387_v8 = vpop.f32.mrf.mxu1 }
 0xb3e   :  { %v2575_v21 = vpop.xlane.xlu1 %2574  ;;  %v2585_v16 = vsel %vm833_vm0, %v5387_v8, -inf }
 0xb3f   :  { %v2633_v44 = vsub.f32 %v5337_v2, %v2575_v21  ;;  %2586 = vmax.xlane.f32.xlu2 %v2585_v16 }
 0xb41   :  { %v2653_v36 = vmul.f32 1.442695, %v2633_v44 }
 0xb42   :  { %v5408_v58 = vpop.f32.mrf.mxu3 }
 0xb43   :  { %4199 = vpow2.f32 %v2653_v36  ;;  %v5392_v27 = vpop.f32.mrf.mxu2  ;;  %v2600_v56 = vsel %vm833_vm0, %v5408_v58, -inf }
 0xb44   :  { %v2606_v40 = vsel %vm833_vm0, %v5392_v27, -inf }
 0xb45   :  { %v5410_v19 = vpop.f32.mrf.mxu1 }
 0xb46   :  { %v2597_v59 = vsel %vm833_vm0, %v5410_v19, -inf }
 0xb47   :  { %2607 = vmax.xlane.f32.xlu2 %v2606_v40 }
 0xb49   :  { %v5396_v52 = vpop.eup %4199 }
 0xb4a   :  { %v2693_v12 = vsel %vm833_vm0, %v5396_v52, 0.0 }
 0xb4b   :  { %2694 = vadd.xlane.f32.xlu0 %v2693_v12  ;;  %v5432_v15 = vpop.f32.mrf.mxu3 }
 0xb4c   :  { %v2612_v31 = vsel %vm833_vm0, %v5432_v15, -inf }
 0xb4d   :  { %v5402_v13 = vpop.f32.mrf.mxu0 }
 0xb4e   :  { %v2603_v32 = vsel %vm833_vm0, %v5402_v13, -inf }
 0xb4f   :  { %2604 = vmax.xlane.f32.xlu1 %v2603_v32 }
 0xb53   :  { %2589 = vmax.xlane.f32.xlu0 %v2588_v34 }
 0xb55   :  { %v5418_v60 = vpop.f32.mrf.mxu1 }
 0xb56   :  { %v2609_v61 = vsel %vm833_vm0, %v5418_v60, -inf }
 0xb57   :  { %2601 = vmax.xlane.f32.xlu1 %v2600_v56 }
 0xb5a   :  { %v5414_v45 = vpop.f32.mrf.mxu2 }
 0xb5b   :  { %2598 = vmax.xlane.f32.xlu0 %v2597_v59  ;;  %v2618_v2 = vsel %vm833_vm0, %v5414_v45, -inf }
 0xb5d   :  { %v5440_v4 = vpop.f32.mrf.mxu1 }
 0xb5e   :  { %v2621_v6 = vsel %vm833_vm0, %v5440_v4, -inf }
 0xb5f   :  { %2610 = vmax.xlane.f32.xlu1 %v2609_v61 }
 0xb62   :  { %v5424_v17 = vpop.f32.mrf.mxu2  ;;  %v5442_v51 = vpop.f32.mrf.mxu3 }
 0xb63   :  { %2619 = vmax.xlane.f32.xlu0 %v2618_v2  ;;  %v2630_v63 = vsel %vm833_vm0, %v5424_v17, -inf  ;;  %v2624_v23 = vsel %vm833_vm0, %v5442_v51, -inf }
 0xb64   :  { %v5426_v46 = vpop.f32.mrf.mxu0 }
 0xb65   :  { %v2615_v30 = vsel %vm833_vm0, %v5426_v46, -inf }
 0xb66   :  { %2616 = vmax.xlane.f32.xlu2 %v2615_v30 }
 0xb67   :  { %2631 = vmax.xlane.f32.xlu1 %v2630_v63 }
 0xb6d   :  { %v5434_v29 = vpop.f32.mrf.mxu0 }
 0xb6e   :  { %2613 = vmax.xlane.f32.xlu2 %v2612_v31  ;;  %v2627_v1 = vsel %vm833_vm0, %v5434_v29, -inf }
 0xb6f   :  { %2628 = vmax.xlane.f32.xlu0 %v2627_v1 }
 0xb76   :  { %2622 = vmax.xlane.f32.xlu2 %v2621_v6 }
 0xb77   :  { %2625 = vmax.xlane.f32.xlu0 %v2624_v23 }
 0xb89   :  { %v2584_v55 = vpop.xlane.xlu2 %2583 }
 0xb8a   :  { %v2636_v7 = vsub.f32 %v5365_v49, %v2584_v55 }
 0xb8c   :  { %v2659_v24 = vmul.f32 1.442695, %v2636_v7 }
 0xb8e   :  { %4201 = vpow2.f32 %v2659_v24 }
 0xb91   :  { %v2581_v5 = vpop.xlane.xlu2 %2580 }
 0xb92   :  { %v2635_v9 = vsub.f32 %v5369_v10, %v2581_v5 }
 0xb94   :  { %v5451_v25 = vpop.eup %4201  ;;  %v2657_v14 = vmul.f32 1.442695, %v2635_v9 }
 0xb95   :  { %v2702_v3 = vsel %vm833_vm0, %v5451_v25, 0.0 }
 0xb96   :  { %2703 = vadd.xlane.f32.xlu2 %v2702_v3  ;;  %v4062_v3 = vunpack.i.l.bf16 %v5448_v20 }
 0xba1   :  { %v2578_v43 = vpop.xlane.xlu0 %2577 }
 0xba2   :  { %v2634_v38 = vsub.f32 %v5373_v0, %v2578_v43 }
 0xba4   :  { %v2655_v11 = vmul.f32 1.442695, %v2634_v38 }
 0xba6   :  { %4203 = vpow2.f32 %v2655_v11 }
 0xba7   :  { %4205 = vpow2.f32 %v2657_v14 }
 0xba9   :  { %v2593_v44 = vpop.xlane.xlu0 %2592 }
 0xbaa   :  { %v2639_v40 = vsub.f32 %v5377_v42, %v2593_v44 }
 0xbac   :  { %v5457_v48 = vpop.eup %4203  ;;  %v2665_v34 = vmul.f32 1.442695, %v2639_v40 }
 0xbad   :  { %v2696_v49 = vsel %vm833_vm0, %v5457_v48, 0.0  ;;  %v5462_v16 = vpop.eup %4205 }
 0xbae   :  { %2697 = vadd.xlane.f32.xlu1 %v2696_v49  ;;  %v2699_v32 = vsel %vm833_vm0, %v5462_v16, 0.0 }
 0xbaf   :  { %v2596_v18 = vpop.xlane.xlu1 %2595 }
 0xbb0   :  { %v2640_v21 = vsub.f32 %v5383_v50, %v2596_v18 }
 0xbb2   :  { %v2667_v36 = vmul.f32 1.442695, %v2640_v21  ;;  %v2587_v0 = vpop.xlane.xlu2 %2586 }
 0xbb3   :  { %v2637_v10 = vsub.f32 %v5387_v8, %v2587_v0 }
 0xbb4   :  { %4207 = vpow2.f32 %v2667_v36 }
 0xbb5   :  { %v2661_v12 = vmul.f32 1.442695, %v2637_v10 }
 0xbb6   :  { %2700 = vadd.xlane.f32.xlu1 %v2699_v32 }
 0xbb7   :  { %4209 = vpow2.f32 %v2661_v12 }
 0xbb8   :  { %4211 = vpow2.f32 %v2665_v34 }
 0xbba   :  { %v5468_v56 = vpop.eup %4207  ;;  %v2608_v8 = vpop.xlane.xlu2 %2607 }
 0xbbb   :  { %v2714_v59 = vsel %vm833_vm0, %v5468_v56, 0.0  ;;  %v2644_v31 = vsub.f32 %v5392_v27, %v2608_v8 }
 0xbbd   :  { %v5470_v50 = vpop.eup %4209  ;;  %v2675_v5 = vmul.f32 1.442695, %v2644_v31 }
 0xbbe   :  { %v2695_v61 = vpop.xlane.xlu0 %2694  ;;  %2715 = vadd.xlane.f32.xlu1 %v2714_v59  ;;  %v2705_v42 = vsel %vm833_vm0, %v5470_v50, 0.0  ;;  %v5476_v30 = vpop.eup %4211 }
 0xbbf   :  { %2706 = vadd.xlane.f32.xlu2 %v2705_v42  ;;  %4213 = vrcp.f32 %v2695_v61  ;;  %v2711_v55 = vsel %vm833_vm0, %v5476_v30, 0.0 }
 0xbc2   :  { %v2605_v2 = vpop.xlane.xlu1 %2604 }
 0xbc3   :  { %v2643_v63 = vsub.f32 %v5402_v13, %v2605_v2 }
 0xbc5   :  { %v2673_v1 = vmul.f32 1.442695, %v2643_v63  ;;  %v4214_v6 = vpop.eup %4213 }
 0xbc6   :  { %v2590_v23 = vpop.xlane.xlu0 %2589  ;;  %v2773_v7 = vmul.f32 %v4214_v6, %v5396_v52 }
 0xbc7   :  { %4215 = vpow2.f32 %v2673_v1  ;;  %v2638_v24 = vsub.f32 %v5398_v53, %v2590_v23  ;;  %2712 = vadd.xlane.f32.xlu2 %v2711_v55 }
 0xbc8   :  { %3898 = vmatmul.msk.f32.vlgmr.msra.gmra.mxu1 %vm833_vm0, %v2773_v7 }
 0xbc9   :  { %v2663_v43 = vmul.f32 1.442695, %v2638_v24  ;;  %3022 = vmatpush.msra.mxu1 %v4062_v3 }
 0xbca   :  { %v2602_v27 = vpop.xlane.xlu1 %2601 }
 0xbcb   :  { %4217 = vpow2.f32 %v2663_v43  ;;  %v2642_v13 = vsub.f32 %v5408_v58, %v2602_v27  ;;  %v4074_v43 = vpack.i.bf16 %v5280_v57, %v5274_v35  ;;  %v4069_v27 = vpack.i.bf16 %v5272_v41, %v5262_v22 }
 0xbcc   :  { %4219 = vpow2.f32 %v2675_v5  ;;  %v4068_v35 = vunpack.i.h.bf16 %v5381_v62 }
 0xbcd   :  { %v5487_v38 = vpop.eup %4215  ;;  %v2671_v9 = vmul.f32 1.442695, %v2642_v13 }
 0xbce   :  { %v2599_v52 = vpop.xlane.xlu0 %2598  ;;  %v2723_v53 = vsel %vm833_vm0, %v5487_v38, 0.0 }
 0xbcf   :  { %4221 = vpow2.f32 %v2671_v9  ;;  %v2641_v11 = vsub.f32 %v5410_v19, %v2599_v52  ;;  %2724 = vadd.xlane.f32.xlu1 %v2723_v53  ;;  %v4079_v9 = vpack.i.bf16 %v5282_v39, %v5270_v47 }
 0xbd1   :  { %v5492_v14 = vpop.eup %4217  ;;  %v2669_v49 = vmul.f32 1.442695, %v2641_v11 }
 0xbd2   :  { %v2611_v18 = vpop.xlane.xlu1 %2610  ;;  %v2708_v21 = vsel %vm833_vm0, %v5492_v14, 0.0  ;;  %v5496_v58 = vpop.eup %4219 }
 0xbd3   :  { %4223 = vpow2.f32 %v2669_v49  ;;  %v2645_v44 = vsub.f32 %v5418_v60, %v2611_v18  ;;  %2709 = vadd.xlane.f32.xlu2 %v2708_v21  ;;  %v2726_v40 = vsel %vm833_vm0, %v5496_v58, 0.0 }
 0xbd5   :  { %v5499_v36 = vpop.eup %4221  ;;  %v2677_v0 = vmul.f32 1.442695, %v2645_v44 }
 0xbd6   :  { %v2720_v19 = vsel %vm833_vm0, %v5499_v36, 0.0  ;;  %v2620_v10 = vpop.xlane.xlu0 %2619 }
 0xbd7   :  { %2721 = vadd.xlane.f32.xlu0 %v2720_v19  ;;  %2727 = vadd.xlane.f32.xlu1 %v2726_v40  ;;  %4225 = vpow2.f32 %v2677_v0  ;;  %v2648_v32 = vsub.f32 %v5414_v45, %v2620_v10 }
 0xbd9   :  { %v5505_v12 = vpop.eup %4223  ;;  %v2617_v34 = vpop.xlane.xlu2 %2616  ;;  %v2683_v42 = vmul.f32 1.442695, %v2648_v32 }
 0xbda   :  { %v2647_v60 = vsub.f32 %v5426_v46, %v2617_v34  ;;  %v2717_v59 = vsel %vm833_vm0, %v5505_v12, 0.0  ;;  %v2632_v41 = vpop.xlane.xlu1 %2631 }
 0xbdb   :  { %2718 = vadd.xlane.f32.xlu2 %v2717_v59  ;;  %v2652_v39 = vsub.f32 %v5424_v17, %v2632_v41 }
 0xbdc   :  { %v2681_v61 = vmul.f32 1.442695, %v2647_v60 }
 0xbdd   :  { %v5511_v8 = vpop.eup %4225 }
 0xbde   :  { %4227 = vpow2.f32 %v2681_v61  ;;  %v2729_v45 = vsel %vm833_vm0, %v5511_v8, 0.0 }
 0xbdf   :  { %4229 = vpow2.f32 %v2683_v42 }
 0xbe1   :  { %v2614_v2 = vpop.xlane.xlu2 %2613 }
 0xbe2   :  { %v2629_v63 = vpop.xlane.xlu0 %2628  ;;  %v2646_v31 = vsub.f32 %v5432_v15, %v2614_v2 }
 0xbe3   :  { %v2651_v1 = vsub.f32 %v5434_v29, %v2629_v63  ;;  %2730 = vadd.xlane.f32.xlu2 %v2729_v45 }
 0xbe4   :  { %v5517_v46 = vpop.eup %4227  ;;  %v2679_v6 = vmul.f32 1.442695, %v2646_v31 }
 0xbe5   :  { %v2689_v23 = vmul.f32 1.442695, %v2651_v1  ;;  %v2735_v55 = vsel %vm833_vm0, %v5517_v46, 0.0  ;;  %v5521_v7 = vpop.eup %4229 }
 0xbe6   :  { %4231 = vpow2.f32 %v2679_v6  ;;  %2736 = vadd.xlane.f32.xlu1 %v2735_v55  ;;  %v2738_v15 = vsel %vm833_vm0, %v5521_v7, 0.0  ;;  %v4084_v6 = vpack.i.bf16 %v5288_v26, %v5290_v33 }
 0xbe7   :  { %4233 = vpow2.f32 %v2689_v23 }
 0xbe9   :  { %v2623_v13 = vpop.xlane.xlu2 %2622 }
 0xbea   :  { %v2626_v22 = vpop.xlane.xlu0 %2625  ;;  %v2649_v49 = vsub.f32 %v5440_v4, %v2623_v13  ;;  %v4067_v4 = vunpack.i.l.bf16 %v5381_v62  ;;  %v4063_v62 = vunpack.i.h.bf16 %v5448_v20 }
 0xbeb   :  { %2739 = vadd.xlane.f32.xlu2 %v2738_v15  ;;  %v2650_v57 = vsub.f32 %v5442_v51, %v2626_v22 }
 0xbec   :  { %v5525_v24 = vpop.eup %4231  ;;  %v2685_v47 = vmul.f32 1.442695, %v2649_v49 }
 0xbed   :  { %v5527_v29 = vpop.eup %4233  ;;  %v2732_v3 = vsel %vm833_vm0, %v5525_v24, 0.0  ;;  %v2687_v18 = vmul.f32 1.442695, %v2650_v57 }
 0xbee   :  { %v2747_v5 = vsel %vm833_vm0, %v5527_v29, 0.0  ;;  %2733 = vadd.xlane.f32.xlu0 %v2732_v3 }
 0xbef   :  { %2748 = vadd.xlane.f32.xlu1 %v2747_v5 }
 0xc02   :  { %4075 = vrot.lane.b32.xlu0 %v4074_v43, %s5881_s25 }
 0xc03   :  { %4070 = vrot.lane.b32.xlu2 %v4069_v27, %s5881_s25 }
 0xc08   :  { %4080 = vrot.lane.b32.xlu1 %v4079_v9, %s5881_s25 }
 0xc09   :  { %v2704_v52 = vpop.xlane.xlu2 %2703 }
 0xc0a   :  { %4235 = vrcp.f32 %v2704_v52 }
 0xc0b   :  { %4237 = vpow2.f32 %v2687_v18 }
 0xc10   :  { %v4236_v53 = vpop.eup %4235 }
 0xc11   :  { %v2776_v11 = vmul.f32 %v4236_v53, %v5451_v25  ;;  %v2691_v25 = vmul.f32 1.442695, %v2652_v39  ;;  %v5548_v44 = vpop.eup %4237 }
 0xc12   :  { %v2744_v17 = vsel %vm833_vm0, %v5548_v44, 0.0 }
 0xc13   :  { %3901 = vmatmul.msk.f32.vlgmr.msra.gmra.mxu2 %vm833_vm0, %v2776_v11 }
 0xc14   :  { %3100 = vmatpush.msra.mxu2 %v4068_v35 }
 0xc21   :  { %v2698_v21 = vpop.xlane.xlu1 %2697 }
 0xc22   :  { %4239 = vrcp.f32 %v2698_v21 }
 0xc23   :  { %4241 = vpow2.f32 %v2685_v47 }
 0xc24   :  { %4243 = vpow2.f32 %v2691_v25 }
 0xc28   :  { %v4240_v0 = vpop.eup %4239 }
 0xc29   :  { %v5550_v19 = vpop.eup %4241  ;;  %v2774_v10 = vmul.f32 %v4240_v0, %v5457_v48  ;;  %v2701_v51 = vpop.xlane.xlu1 %2700 }
 0xc2a   :  { %4245 = vrcp.f32 %v2701_v51  ;;  %v2741_v40 = vsel %vm833_vm0, %v5550_v19, 0.0  ;;  %v5559_v32 = vpop.eup %4243 }
 0xc2b   :  { %3899 = vmatmul.msk.f32.vlgmr.msra.gmra.mxu3 %vm833_vm0, %v2774_v10  ;;  %v2750_v61 = vsel %vm833_vm0, %v5559_v32, 0.0 }
 0xc2c   :  { %3048 = vmatpush.msra.mxu3 %v4067_v4  ;;  %2745 = vadd.xlane.f32.xlu0 %v2744_v17 }
 0xc2d   :  { %2742 = vadd.xlane.f32.xlu2 %v2741_v40 }
 0xc30   :  { %v4246_v34 = vpop.eup %4245 }
 0xc31   :  { %v2775_v48 = vmul.f32 %v4246_v34, %v5462_v16  ;;  %v2716_v60 = vpop.xlane.xlu1 %2715 }
 0xc32   :  { %4247 = vrcp.f32 %v2716_v60  ;;  %v2707_v59 = vpop.xlane.xlu2 %2706 }
 0xc33   :  { %4249 = vrcp.f32 %v2707_v59  ;;  %3900 = vmatmul.msk.f32.vlgmr.msrb.gmra.mxu0 %vm833_vm0, %v2775_v48 }
 0xc34   :  { %3074 = vmatpush.msrb.mxu0 %v4063_v62  ;;  %2751 = vadd.xlane.f32.xlu0 %v2750_v61 }
 0xc38   :  { %v4248_v42 = vpop.eup %4247 }
 0xc39   :  { %v4250_v2 = vpop.eup %4249  ;;  %v2780_v63 = vmul.f32 %v4248_v42, %v5468_v56 }
 0xc3a   :  { %v2777_v31 = vmul.f32 %v4250_v2, %v5470_v50  ;;  %v2713_v16 = vpop.xlane.xlu2 %2712 }
 0xc3b   :  { %4251 = vrcp.f32 %v2713_v16  ;;  %3905 = vmatmul.msk.f32.vlgmr.msrb.gmra.mxu2 %vm833_vm0, %v2780_v63 }
 0xc3c   :  { %3902 = vmatmul.msk.f32.vlgmr.msrb.gmra.mxu1 %vm833_vm0, %v2777_v31 }
 0xc41   :  { %v4252_v20 = vpop.eup %4251 }
 0xc42   :  { %v2779_v45 = vmul.f32 %v4252_v20, %v5476_v30  ;;  %v2725_v1 = vpop.xlane.xlu1 %2724 }
 0xc43   :  { %4253 = vrcp.f32 %v2725_v1 }
 0xc44   :  { %3904 = vmatmul.msk.f32.vlgmr.msra.gmra.mxu0 %vm833_vm0, %v2779_v45 }
 0xc45   :  { %v2816_v62 = vpop.f32.mrf.mxu1 }
 0xc46   :  { %v2710_v23 = vpop.xlane.xlu2 %2709 }
 0xc47   :  { %4255 = vrcp.f32 %v2710_v23 }
 0xc48   :  { %4085 = vrot.lane.b32.xlu0 %v4084_v6, %s5881_s25 }
 0xc49   :  { %v4254_v56 = vpop.eup %4253 }
 0xc4a   :  { %v2783_v50 = vmul.f32 %v4254_v56, %v5487_v38  ;;  %v2722_v55 = vpop.xlane.xlu0 %2721  ;;  %v2728_v15 = vpop.xlane.xlu1 %2727 }
 0xc4b   :  { %4257 = vrcp.f32 %v2728_v15  ;;  %v3922_v15 = vld [vmem:[%s5833_s4 + $0x48] sm:$0xff] }
 0xc4c   :  { %3908 = vmatmul.msk.f32.vlgmr.msrb.gmra.mxu0 %vm833_vm0, %v2783_v50  ;;  %4259 = vrcp.f32 %v2722_v55 }
 0xc4d   :  { %v4256_v30 = vpop.eup %4255 }
 0xc4e   :  { %v2778_v3 = vmul.f32 %v4256_v30, %v5492_v14  ;;  %v2719_v5 = vpop.xlane.xlu2 %2718 }
 0xc4f   :  { %4261 = vrcp.f32 %v2719_v5  ;;  %v3921_v5 = vld [vmem:[%s5833_s4 + $0x40] sm:$0xff] }
 0xc50   :  { %3903 = vmatmul.msk.f32.vlgmr.msrb.gmra.mxu3 %vm833_vm0, %v2778_v3 }
 0xc51   :  { %v4258_v26 = vpop.eup %4257 }
 0xc52   :  { %v4260_v33 = vpop.eup %4259  ;;  %v2784_v43 = vmul.f32 %v4258_v26, %v5496_v58  ;;  %v3920_v26 = vld [vmem:[%s5833_s4 + $0x38] sm:$0xff] }
 0xc53   :  { %v2782_v38 = vmul.f32 %v4260_v33, %v5499_v36  ;;  %v3919_v33 = vld [vmem:[%s5833_s4 + $0x30] sm:$0xff] }
 0xc54   :  { %3909 = vmatmul.msk.f32.vlgmr.msra.gmra.mxu2 %vm833_vm0, %v2784_v43  ;;  %v3918_v43 = vld [vmem:[%s5833_s4 + $0x28] sm:$0xff] }
 0xc55   :  { %v4262_v27 = vpop.eup %4261 }
 0xc56   :  { %v2781_v13 = vmul.f32 %v4262_v27, %v5505_v12  ;;  %v2731_v9 = vpop.xlane.xlu2 %2730 }
 0xc58   :  { %3906 = vmatmul.msk.f32.vlgmr.msra.gmra.mxu1 %vm833_vm0, %v2781_v13  ;;  %3907 = vmatmul.msk.f32.vlgmr.msra.gmra.mxu3 %vm833_vm0, %v2782_v38 }
 0xc59   :  { %v2737_v41 = vpop.xlane.xlu1 %2736 }
 0xc5e   :  { %v2740_v14 = vpop.xlane.xlu2 %2739 }
 0xc5f   :  { %4263 = vrcp.f32 %v2740_v14 }
 0xc61   :  { %v2734_v52 = vpop.xlane.xlu0 %2733 }
 0xc62   :  { %4265 = vrcp.f32 %v2734_v52  ;;  %v2749_v49 = vpop.xlane.xlu1 %2748 }
 0xc63   :  { %4267 = vrcp.f32 %v2731_v9 }
 0xc64   :  { %4269 = vrcp.f32 %v2737_v41 }
 0xc65   :  { %v4264_v53 = vpop.eup %4263 }
 0xc66   :  { %v4071_v11 = vpop.permute.xlu2 %4070  ;;  %v2788_v57 = vmul.f32 %v4264_v53, %v5521_v7 }
 0xc67   :  { %v4073_v35 = vunpack.i.h.bf16 %v4071_v11  ;;  %v4072_v58 = vunpack.i.l.bf16 %v4071_v11 }
 0xc68   :  { %v4266_v22 = vpop.eup %4265 }
 0xc69   :  { %v2786_v36 = vmul.f32 %v4266_v22, %v5525_v24  ;;  %3152 = vmatpush.msrb.mxu3 %v4072_v58  ;;  %3204 = vmatpush.msrb.mxu2 %v4073_v35  ;;  %v4268_v12 = vpop.eup %4267 }
 0xc6a   :  { %3913 = vmatmul.msk.f32.vlgmr.msrb.gmra.mxu2 %vm833_vm0, %v2788_v57  ;;  %v4270_v18 = vpop.eup %4269  ;;  %v2785_v25 = vmul.f32 %v4268_v12, %v5511_v8 }
 0xc6b   :  { %3911 = vmatmul.msk.f32.vlgmr.msrb.gmra.mxu3 %vm833_vm0, %v2786_v36  ;;  %v2787_v7 = vmul.f32 %v4270_v18, %v5517_v46 }
 0xc74   :  { %v4076_v47 = vpop.permute.xlu0 %4075 }
 0xc75   :  { %v4078_v39 = vunpack.i.h.bf16 %v4076_v47  ;;  %v4077_v21 = vunpack.i.l.bf16 %v4076_v47 }
 0xc77   :  { %3126 = vmatpush.msrb.mxu1 %v4077_v21  ;;  %3178 = vmatpush.msra.mxu0 %v4078_v39 }
 0xc78   :  { %3910 = vmatmul.msk.f32.vlgmr.msrb.gmra.mxu1 %vm833_vm0, %v2785_v25  ;;  %3912 = vmatmul.msk.f32.vlgmr.msra.gmra.mxu0 %vm833_vm0, %v2787_v7 }
 0xc7a   :  { %v4081_v24 = vpop.permute.xlu1 %4080 }
 0xc7b   :  { %v4083_v0 = vunpack.i.h.bf16 %v4081_v24  ;;  %v4082_v10 = vunpack.i.l.bf16 %v4081_v24 }
 0xc7d   :  { %3256 = vmatpush.msra.mxu3 %v4082_v10  ;;  %3308 = vmatpush.msra.mxu2 %v4083_v0 }
 0xc96   :  { %v2894_v51 = vpop.f32.mrf.mxu2 }
 0xc97   :  { %3331 = vrot.lane.b32.xlu2 %v2894_v51, %s5882_s26 }
 0xc9f   :  { %v2746_v4 = vpop.xlane.xlu0 %2745 }
 0xca0   :  { %4271 = vrcp.f32 %v2746_v4  ;;  %v2743_v60 = vpop.xlane.xlu2 %2742 }
 0xca6   :  { %v4272_v17 = vpop.eup %4271 }
 0xca7   :  { %v2790_v8 = vmul.f32 %v4272_v17, %v5548_v44  ;;  %v2752_v46 = vpop.xlane.xlu0 %2751 }
 0xca8   :  { %4273 = vrcp.f32 %v2752_v46 }
 0xca9   :  { %3915 = vmatmul.msk.f32.vlgmr.msra.gmra.mxu3 %vm833_vm0, %v2790_v8  ;;  %4275 = vrcp.f32 %v2749_v49 }
 0xcaa   :  { %4277 = vrcp.f32 %v2743_v60 }
 0xcae   :  { %v4274_v40 = vpop.eup %4273  ;;  %v2842_v34 = vpop.f32.mrf.mxu3 }
 0xcaf   :  { %v2792_v48 = vmul.f32 %v4274_v40, %v5559_v32  ;;  %3315 = vrot.lane.b32.xlu0 %v2842_v34, %s5883_s27  ;;  %v4276_v44 = vpop.eup %4275 }
 0xcb0   :  { %v2868_v59 = vpop.f32.mrf.mxu0  ;;  %v4278_v61 = vpop.eup %4277  ;;  %v2791_v31 = vmul.f32 %v4276_v44, %v5527_v29 }
 0xcb1   :  { %3917 = vmatmul.msk.f32.vlgmr.msra.gmra.mxu2 %vm833_vm0, %v2792_v48  ;;  %v2789_v32 = vmul.f32 %v4278_v61, %v5550_v19 }
 0xcb7   :  { %3323 = vrot.lane.b32.xlu0 %v2868_v59, %s5884_s28 }
 0xcb9   :  { %v2920_v16 = vpop.f32.mrf.mxu1 }
 0xcba   :  { %v4086_v42 = vpop.permute.xlu0 %4085 }
 0xcbb   :  { %v4088_v2 = vunpack.i.h.bf16 %v4086_v42  ;;  %v4087_v63 = vunpack.i.l.bf16 %v4086_v42 }
 0xcbd   :  { %3230 = vmatpush.msra.mxu1 %v4087_v63  ;;  %3282 = vmatpush.msrb.mxu0 %v4088_v2  ;;  %v4099_v2 = vld [vmem:[%s5834_s5 + $0x1] ss:$0 sm:$0xff] }
 0xcbe   :  { %v2998_v20 = vpop.f32.mrf.mxu2  ;;  %3914 = vmatmul.msk.f32.vlgmr.msra.gmra.mxu1 %vm833_vm0, %v2789_v32  ;;  %3916 = vmatmul.msk.f32.vlgmr.msrb.gmra.mxu0 %vm833_vm0, %v2791_v31 }
 0xcbf   :  { %3339 = vrot.lane.b32.xlu0 %v2920_v16, %s5885_s29  ;;  %3363 = vrot.lane.b32.xlu1 %v2998_v20, %s5886_s30 }
 0xcc0   :  { %3431 = vmatpush.msrb.mxu1 %v3922_v15  ;;  %v3935_v15 = vld [vmem:[%s5835_s6 + $0x88] sm:$0xff] }
 0xcc1   :  { %v2972_v45 = vpop.f32.mrf.mxu0 }
 0xcc2   :  { %3432 = vmatpush.msrb.mxu1 %v3921_v5  ;;  %v3933_v5 = vld [vmem:[%s5835_s6 + $0x78] sm:$0xff] }
 0xcc4   :  { %3433 = vmatpush.msrb.mxu1 %v3920_v26 }
 0xcc6   :  { %3434 = vmatpush.msrb.mxu1 %v3919_v33  ;;  %v3930_v33 = vld [vmem:[%s5835_s6 + $0x60] sm:$0xff] }
 0xcc7   :  { %3355 = vrot.lane.b32.xlu0 %v2972_v45, %s5887_s21 }
 0xcc8   :  { %3435 = vmatpush.msrb.mxu1 %v3918_v43  ;;  %v3931_v43 = vld [vmem:[%s5835_s6 + $0x68] sm:$0xff] }
 0xcc9   :  { %v3076_v23 = vpop.f32.mrf.mxu0 }
 0xcd3   :  { %v2946_v1 = vpop.f32.mrf.mxu3 }
 0xcd4   :  { %3347 = vrot.lane.b32.xlu1 %v2946_v1, %s5888_s22 }
 0xcd5   :  { %v3024_v29 = vpop.f32.mrf.mxu1 }
 0xcd6   :  { %3371 = vrot.lane.b32.xlu0 %v3024_v29, %s5889_s23 }
 0xcd7   :  { %v3102_v19 = vpop.f32.mrf.mxu2 }
 0xcdb   :  { %v3050_v6 = vpop.f32.mrf.mxu3 }
 0xcdc   :  { %3317 = vrot.lane.b32.xlu1 %v3102_v19, %s5883_s27  ;;  %3379 = vrot.lane.b32.xlu2 %v3050_v6, %s5890_s24  ;;  %s4335_s27 = smov 2  }
 0xced   :  { %v3206_v55 = vpop.f32.mrf.mxu2 }
 0xcee   :  { %v3154_v3 = vpop.f32.mrf.mxu3 }
 0xcf1   :  { %v3332_v35 = vpop.permute.xlu2 %3331 }
 0xcf5   :  { %v3128_v56 = vpop.f32.mrf.mxu1  ;;  %v3180_v50 = vpop.f32.mrf.mxu0 }
 0xcf6   :  { %3325 = vrot.lane.b32.xlu0 %v3128_v56, %s5884_s28  ;;  %3341 = vrot.lane.b32.xlu2 %v3180_v50, %s5885_s29  ;;  %v3936_v50 = vld [vmem:[%s5835_s6 + $0x90] sm:$0xff] }
 0xcf7   :  { %3538 = vmatpush.msrb.mxu3 %v3936_v50 }
 0xcfe   :  { %3349 = vrot.lane.b32.xlu0 %v3206_v55, %s5888_s22  ;;  %v3934_v55 = vld [vmem:[%s5835_s6 + $0x80] sm:$0xff] }
 0xcff   :  { %3539 = vmatpush.msrb.mxu3 %v3934_v55  ;;  %v3938_v55 = vld [vmem:[%s5836_s7 + $0x2] sm:$0x3] }
 0xd21   :  { %v3316_v30 = vpop.permute.xlu0 %3315 }
 0xd22   :  { %v3385_v11 = vsel %vm314_vm15, %v2816_v62, %v3316_v30 }
 0xd29   :  { %v3324_v27 = vpop.permute.xlu0 %3323 }
 0xd2a   :  { %v3387_v58 = vsel %vm833_vm0, %v3385_v11, %v3324_v27  ;;  %v3928_v27 = vld [vmem:[%s5835_s6 + $0x50] sm:$0xff] }
 0xd2b   :  { %v3389_v22 = vsel %vm1650_vm1, %v3387_v58, %v3332_v35 }
 0xd2c   :  { %v3258_v38 = vpop.f32.mrf.mxu3 }
 0xd2d   :  { %3365 = vrot.lane.b32.xlu2 %v3258_v38, %s5886_s30 }
 0xd31   :  { %v3340_v13 = vpop.permute.xlu0 %3339  ;;  %v3364_v52 = vpop.permute.xlu1 %3363 }
 0xd32   :  { %v3391_v41 = vsel %vm1653_vm2, %v3389_v22, %v3340_v13  ;;  %v3929_v13 = vld [vmem:[%s5835_s6 + $0x58] sm:$0xff] }
 0xd34   :  { %v3310_v21 = vpop.f32.mrf.mxu2 }
 0xd36   :  { %v3380_v47 = vpop.permute.xlu2 %3379 }
 0xd39   :  { %v3356_v53 = vpop.permute.xlu0 %3355 }
 0xd3b   :  { %v3232_v9 = vpop.f32.mrf.mxu1  ;;  %v3284_v14 = vpop.f32.mrf.mxu0 }
 0xd3c   :  { %3373 = vrot.lane.b32.xlu0 %v3284_v14, %s5889_s23  ;;  %3357 = vrot.lane.b32.xlu1 %v3232_v9, %s5887_s21 }
 0xd44   :  { %3333 = vrot.lane.b32.xlu1 %v3154_v3, %s5882_s26  ;;  %v3932_v3 = vld [vmem:[%s5835_s6 + $0x70] sm:$0xff]  ;;  %s3766_s26 = sshll.u32 %s5845_s16, 4  ;;  %s3767_s26 = int_to_ptr.hbm [resolvable:$true] %s3766_s26 }
 0xd45   :  { %3540 = vmatpush.msrb.mxu3 %v3932_v3 }
 0xd46   :  { %v3348_v57 = vpop.permute.xlu1 %3347 }
 0xd47   :  { %v3393_v36 = vsel %vm1656_vm3, %v3391_v41, %v3348_v57  ;;  %3541 = vmatpush.msrb.mxu3 %v3930_v33 }
 0xd48   :  { %v3395_v12 = vsel %vm1659_vm4, %v3393_v36, %v3356_v53  ;;  %v3372_v49 = vpop.permute.xlu0 %3371 }
 0xd49   :  { %v3397_v18 = vsel %vm1662_vm5, %v3395_v12, %v3364_v52  ;;  %3542 = vmatpush.msrb.mxu3 %v3928_v27  ;;  %v5711_v12 = vld [vmem:[%s5841_s12 + $0x1] ss:$0 sm:$0xff] }
 0xd4a   :  { %v3399_v39 = vsel %vm1665_vm6, %v3397_v18, %v3372_v49  ;;  %v4101_v18 = vld [vmem:[%s5842_s13 + $0x1] ss:$0 sm:$0xff] }
 0xd4b   :  { %v3401_v25 = vsel %vm1668_vm8, %v3399_v39, %v3380_v47 }
 0xd4c   :  { %3924 = vmatmul.msk.f32.vlgmr.msrb.gmra.mxu1 %vm174_vm7, %v3401_v25  ;;  %3381 = vrot.lane.b32.xlu1 %v3310_v21, %s5890_s24  ;;  %v3958_v25 = vld [vmem:[%s5837_s8 + $0x118] sm:$0xff] }
 0xd4d   :  { %3609 = vmatpush.msrb.mxu2 %v3958_v25 }
 0xd4e   :  { %v3318_v7 = vpop.permute.xlu1 %3317 }
 0xd4f   :  { %v3386_v51 = vsel %vm314_vm15, %v3076_v23, %v3318_v7  ;;  %v3957_v7 = vld [vmem:[%s5837_s8 + $0x110] sm:$0xff] }
 0xd50   :  { %v3342_v10 = vpop.permute.xlu2 %3341  ;;  %3610 = vmatpush.msrb.mxu2 %v3957_v7 }
 0xd68   :  { %v3326_v24 = vpop.permute.xlu0 %3325 }
 0xd69   :  { %v3388_v17 = vsel %vm833_vm0, %v3386_v51, %v3326_v24  ;;  %v3956_v24 = vld [vmem:[%s5837_s8 + $0x108] sm:$0xff]  ;;  %v3953_v51 = vld [vmem:[%s5837_s8 + $0xf0] sm:$0xff] }
 0xd6a   :  { %3611 = vmatpush.msrb.mxu2 %v3956_v24 }
 0xd70   :  { %v3350_v4 = vpop.permute.xlu0 %3349 }
 0xd87   :  { %v3366_v48 = vpop.permute.xlu2 %3365 }
 0xdae   :  { %v3358_v0 = vpop.permute.xlu1 %3357  ;;  %v3374_v59 = vpop.permute.xlu0 %3373 }
 0xdb6   :  { %v3334_v8 = vpop.permute.xlu1 %3333 }
 0xdb7   :  { %v3390_v46 = vsel %vm1650_vm1, %v3388_v17, %v3334_v8  ;;  %v3962_v17 = vld [vmem:[%s5837_s8 + $0x138] sm:$0xff]  ;;  %v3951_v8 = vld [vmem:[%s5837_s8 + $0xe0] sm:$0xff] }
 0xdb8   :  { %v3392_v40 = vsel %vm1653_vm2, %v3390_v46, %v3342_v10  ;;  %v3954_v10 = vld [vmem:[%s5837_s8 + $0xf8] sm:$0xff]  ;;  %3644 = vmatpush.msra.mxu1 %v3962_v17 }
 0xdb9   :  { %v3394_v34 = vsel %vm1656_vm3, %v3392_v40, %v3350_v4  ;;  %v3952_v4 = vld [vmem:[%s5837_s8 + $0xe8] sm:$0xff] }
 0xdba   :  { %v3396_v60 = vsel %vm1659_vm4, %v3394_v34, %v3358_v0  ;;  %v3955_v0 = vld [vmem:[%s5837_s8 + $0x100] sm:$0xff]  ;;  %v3950_v34 = vld [vmem:[%s5837_s8 + $0xd8] sm:$0xff] }
 0xdbb   :  { %v3398_v62 = vsel %vm1662_vm5, %v3396_v60, %v3366_v48  ;;  %3612 = vmatpush.msrb.mxu2 %v3955_v0  ;;  %v3949_v60 = vld [vmem:[%s5837_s8 + $0xd0] sm:$0xff] }
 0xdbc   :  { %v3400_v61 = vsel %vm1665_vm6, %v3398_v62, %v3374_v59  ;;  %v3948_v62 = vld [vmem:[%s5837_s8 + $0xc8] sm:$0xff]  ;;  %v3961_v59 = vld [vmem:[%s5837_s8 + $0x130] sm:$0xff] }
 0xdbd   :  { %3613 = vmatpush.msrb.mxu2 %v3954_v10  ;;  %3645 = vmatpush.msra.mxu1 %v3961_v59 }
 0xdbe   :  { %v3382_v44 = vpop.permute.xlu1 %3381 }
 0xdbf   :  { %v3402_v42 = vsel %vm1668_vm8, %v3400_v61, %v3382_v44  ;;  %3614 = vmatpush.msrb.mxu2 %v3953_v51  ;;  %v3947_v44 = vld [vmem:[%s5837_s8 + $0xc0] sm:$0xff]  ;;  %v3960_v61 = vld [vmem:[%s5837_s8 + $0x128] sm:$0xff] }
 0xdc0   :  { %3925 = vmatmul.msk.f32.gmra.mxu1 %vm174_vm7, %v3402_v42  ;;  %v3946_v42 = vld [vmem:[%s5837_s8 + $0xb8] sm:$0xff] }
 0xdc1   :  { %3615 = vmatpush.msrb.mxu2 %v3952_v4  ;;  %3646 = vmatpush.msra.mxu1 %v3960_v61  ;;  %v4103_v61 = vld [vmem:[%s5843_s14] ss:$0 sm:$0xff]  ;;  %s4334_s14 = smov [#allocation2]  }
 0xdc3   :  { %3616 = vmatpush.msrb.mxu2 %v3951_v8 }
 0xdc5   :  { %3617 = vmatpush.msrb.mxu2 %v3950_v34 }
 0xdc7   :  { %3618 = vmatpush.msrb.mxu2 %v3949_v60 }
 0xdc9   :  { %v3437_v63 = vpop.f32.mrf.mxu1  ;;  %3619 = vmatpush.msrb.mxu2 %v3948_v62 }
 0xdca   :  { %v3438_v31 = vadd.f32 %v4099_v2, %v3437_v63 }
 0xdcb   :  { %3620 = vmatpush.msrb.mxu2 %v3947_v44 }
 0xdcc   :  { %v5658_v32 = vadd.f32 %v3438_v31, %v5154_v37 }
 0xdcd   :  { %3621 = vmatpush.msrb.mxu2 %v3946_v42 }
 0xdce   :  { %v3449_v16 = vsel %vm174_vm7, %v5658_v32, 0.0 }
 0xdcf   :  { %3450 = vadd.xlane.f32.xlu2 %v3449_v16  ;;  %v3945_v16 = vld [vmem:[%s5837_s8 + $0xb0] sm:$0xff] }
 0xdd0   :  { %3622 = vmatpush.msrb.mxu2 %v3945_v16 }
 0xe3d   :  { %v3440_v20 = vpop.f32.mrf.mxu1 }
 0xe3e   :  { %v3441_v45 = vadd.f32 %v4099_v2, %v3440_v20  ;;  %v3959_v2 = vld [vmem:[%s5837_s8 + $0x120] sm:$0xff] }
 0xe3f   :  { %3647 = vmatpush.msra.mxu1 %v3959_v2  ;;  %v4104_v2 = vld [vmem:[%s5844_s15] ss:$0 sm:$0xff]  ;;  %s3764_s15 = sshll.u32 %s4334_s14, 4  ;;  %s3765_s15 = int_to_ptr.vmem [resolvable:$true] %s3764_s15 }
 0xe40   :  { %v5663_v1 = vadd.f32 %v3441_v45, %v5159_v54  ;;  %v3937_v54 = vld [vmem:[%s5835_s6 + $0x98] sm:$0xff]  ;;  %v3944_v45 = vld [vmem:[%s5837_s8 + $0xa8] sm:$0xff] }
 0xe41   :  { %3561 = vmatpush.msra.mxu0 %v3937_v54  ;;  %3623 = vmatpush.msrb.mxu2 %v3944_v45 }
 0xe42   :  { %v3451_v29 = vpop.xlane.xlu2 %3450  ;;  %v3452_v19 = vsel %vm174_vm7, %v5663_v1, 0.0 }
 0xe43   :  { %v3455_v6 = vmul.f32 %v3451_v29, %v4505_v28  ;;  %3453 = vadd.xlane.f32.xlu0 %v3452_v19  ;;  %3562 = vmatpush.msra.mxu0 %v3935_v15  ;;  %v3943_v29 = vld [vmem:[%s5837_s8 + $0xa0] sm:$0xff]  ;;  %v3518_v15 = vperm.slane %v3938_v55, 1 }
 0xe44   :  { %3624 = vmatpush.msrb.mxu2 %v3943_v29 }
 0xe45   :  { %v3457_v23 = vsub.f32 %v5658_v32, %v3455_v6  ;;  %3563 = vmatpush.msra.mxu0 %v3933_v5 }
 0xe47   :  { %v3459_v37 = vmul.f32 %v3457_v23, %v3457_v23  ;;  %3564 = vmatpush.msra.mxu0 %v3931_v43 }
 0xe49   :  { %v3461_v56 = vsel %vm174_vm7, %v3459_v37, 0.0  ;;  %3565 = vmatpush.msra.mxu0 %v3929_v13 }
 0xe4a   :  { %3462 = vadd.xlane.f32.xlu1 %v3461_v56 }
 0xeb6   :  { %v3454_v30 = vpop.xlane.xlu0 %3453 }
 0xeb7   :  { %v3456_v26 = vmul.f32 %v3454_v30, %v4505_v28 }
 0xeb9   :  { %v5699_v38 = vsub.f32 %v5663_v1, %v3456_v26  ;;  %v3517_v26 = vperm.slane %v3938_v55, 0 }
 0xebb   :  { %v3460_v9 = vmul.f32 %v5699_v38, %v5699_v38 }
 0xebd   :  { %v3463_v14 = vpop.xlane.xlu1 %3462  ;;  %v3464_v52 = vsel %vm174_vm7, %v3460_v9, 0.0 }
 0xebe   :  { %v3467_v53 = vmul.f32 %v3463_v14, %v4505_v28  ;;  %3465 = vadd.xlane.f32.xlu2 %v3464_v52 }
 0xec0   :  { %v3469_v11 = vadd.f32 1e-05, %v3467_v53 }
 0xec2   :  { %4279 = vrsqrt.f32 %v3469_v11  ;;  %vm3477_vm0 = vweird.f32 %v3469_v11 }
 0xec8   :  { %v4280_v35 = vpop.eup %4279 }
 0xec9   :  { %v3472_v58 = vmul.f32 %v4280_v35, %v3469_v11  ;;  %vm3478_vm15 = vweird.f32 %v4280_v35  ;;  %v4102_v11 = vld [vmem:[%s5838_s9 + $0x1] ss:$0 sm:$0xff] }
 0xeca   :  { %vm3479_vm1 = vmor %vm3477_vm0, %vm3478_vm15 }
 0xecb   :  { %v3473_v22 = vmul.f32 %v4280_v35, %v3472_v58 }
 0xecd   :  { %v3474_v41 = vmul.f32 0.5, %v3473_v22 }
 0xecf   :  { %v3475_v57 = vsub.f32 1.5, %v3474_v41 }
 0xed1   :  { %v3476_v36 = vmul.f32 %v4280_v35, %v3475_v57 }
 0xed3   :  { %v3480_v49 = vsel %vm3479_vm1, %v4280_v35, %v3476_v36 }
 0xed4   :  { %v3491_v47 = vmul.f32 %v3480_v49, %v3457_v23 }
 0xed6   :  { %v3496_v39 = vmul.f32 %v5711_v12, %v3491_v47 }
 0xed8   :  { %v3501_v21 = vadd.f32 %v4101_v18, %v3496_v39 }
 0xeda   :  { %3939 = vmatmul.msk.f32.vlgmr.msrb.gmra.mxu3 %vm174_vm7, %v3501_v21  ;;  %3941 = vmatmul.msk.f32.vlgmr.msra.gmra.mxu0 %vm174_vm7, %v3501_v21 }
 0xf31   :  { %v3466_v46 = vpop.xlane.xlu2 %3465 }
 0xf32   :  { %v3468_v40 = vmul.f32 %v3466_v46, %v4505_v28 }
 0xf34   :  { %v3470_v48 = vadd.f32 1e-05, %v3468_v40 }
 0xf36   :  { %4281 = vrsqrt.f32 %v3470_v48  ;;  %vm3487_vm3 = vweird.f32 %v3470_v48 }
 0xf3c   :  { %v4282_v63 = vpop.eup %4281 }
 0xf3d   :  { %v3482_v31 = vmul.f32 %v4282_v63, %v3470_v48  ;;  %vm3488_vm2 = vweird.f32 %v4282_v63 }
 0xf3e   :  { %vm3489_vm4 = vmor %vm3487_vm3, %vm3488_vm2 }
 0xf3f   :  { %v3483_v20 = vmul.f32 %v4282_v63, %v3482_v31 }
 0xf41   :  { %v3484_v19 = vmul.f32 0.5, %v3483_v20 }
 0xf43   :  { %v3485_v6 = vsub.f32 1.5, %v3484_v19 }
 0xf45   :  { %v3486_v23 = vmul.f32 %v4282_v63, %v3485_v6 }
 0xf47   :  { %v3490_v37 = vsel %vm3489_vm4, %v4282_v63, %v3486_v23 }
 0xf48   :  { %v3492_v56 = vmul.f32 %v3490_v37, %v5699_v38 }
 0xf4a   :  { %v3497_v50 = vmul.f32 %v5711_v12, %v3492_v56 }
 0xf4c   :  { %v3502_v54 = vadd.f32 %v4101_v18, %v3497_v50 }
 0xf4e   :  { %3940 = vmatmul.msk.f32.gmra.mxu3 %vm174_vm7, %v3502_v54  ;;  %3942 = vmatmul.msk.f32.gmra.mxu0 %vm174_vm7, %v3502_v54 }
 0xf57   :  { %v3567_v30 = vpop.f32.mrf.mxu0 }
 0xf58   :  { %v3568_v3 = vadd.f32 %v3567_v30, %v3518_v15 }
 0xf5a   :  { %v3574_v5 = vmax.f32 %v3568_v3, 0.0 }
 0xf5c   :  { %3964 = vmatmul.msk.f32.vlgmr.msra.gmra.mxu1 %vm1665_vm6, %v3574_v5 }
 0xf5d   :  { %v3544_v33 = vpop.f32.mrf.mxu3 }
 0xf5e   :  { %v3545_v43 = vadd.f32 %v3544_v33, %v3517_v26 }
 0xf60   :  { %v3573_v27 = vmax.f32 %v3545_v43, 0.0 }
 0xf62   :  { %3625 = vmatmul.f32.vlgmr.msrb.gmra.mxu2 %v3573_v27 }
 0xfcb   :  { %v3570_v38 = vpop.f32.mrf.mxu0 }
 0xfcc   :  { %v3571_v13 = vadd.f32 %v3570_v38, %v3518_v15 }
 0xfce   :  { %v3576_v9 = vmax.f32 %v3571_v13, 0.0 }
 0xfd0   :  { %3965 = vmatmul.msk.f32.gmra.mxu1 %vm1665_vm6, %v3576_v9 }
 0xfd1   :  { %v3547_v14 = vpop.f32.mrf.mxu3 }
 0xfd2   :  { %v3548_v52 = vadd.f32 %v3547_v14, %v3517_v26 }
 0xfd4   :  { %v3575_v53 = vmax.f32 %v3548_v52, 0.0 }
 0xfd6   :  { %3628 = vmatmul.f32.gmra.mxu2 %v3575_v53 }
 0xfd9   :  { %v3649_v22 = vpop.f32.mrf.mxu1 }
 0xfe5   :  { %v3626_v35 = vpop.f32.mrf.mxu2 }
 0xfe6   :  { %v3627_v58 = vadd.f32 %v4102_v11, %v3626_v35 }
 0xfe8   :  { %v3650_v41 = vadd.f32 %v3649_v22, %v3627_v58 }
 0xfea   :  { %v3655_v57 = vadd.f32 %v3650_v41, %v5658_v32 }
 0xfec   :  { %v3659_v36 = vsel %vm174_vm7, %v3655_v57, 0.0 }
 0xfed   :  { %3660 = vadd.xlane.f32.xlu0 %v3659_v36 }
0x104d   :  { %v3652_v18 = vpop.f32.mrf.mxu1 }
0x1059   :  { %v3629_v12 = vpop.f32.mrf.mxu2 }
0x105a   :  { %v3630_v49 = vadd.f32 %v4102_v11, %v3629_v12 }
0x105c   :  { %v3653_v47 = vadd.f32 %v3652_v18, %v3630_v49 }
0x105e   :  { %v3656_v39 = vadd.f32 %v3653_v47, %v5663_v1 }
0x1060   :  { %v3661_v21 = vpop.xlane.xlu0 %3660  ;;  %v3662_v25 = vsel %vm174_vm7, %v3656_v39, 0.0 }
0x1061   :  { %v3665_v7 = vmul.f32 %v3661_v21, %v4505_v28  ;;  %3663 = vadd.xlane.f32.xlu1 %v3662_v25 }
0x1063   :  { %v3667_v24 = vsub.f32 %v3655_v57, %v3665_v7 }
0x1065   :  { %v3669_v0 = vmul.f32 %v3667_v24, %v3667_v24 }
0x1067   :  { %v3671_v10 = vsel %vm174_vm7, %v3669_v0, 0.0 }
0x1068   :  { %3672 = vadd.xlane.f32.xlu2 %v3671_v10 }
0x10d4   :  { %v3664_v32 = vpop.xlane.xlu1 %3663 }
0x10d5   :  { %v3666_v51 = vmul.f32 %v3664_v32, %v4505_v28 }
0x10d7   :  { %v3668_v4 = vsub.f32 %v3656_v39, %v3666_v51 }
0x10d9   :  { %v3670_v17 = vmul.f32 %v3668_v4, %v3668_v4 }
0x10db   :  { %v3673_v8 = vpop.xlane.xlu2 %3672  ;;  %v3674_v46 = vsel %vm174_vm7, %v3670_v17, 0.0  ;;  %vm3728_vm7 = vcmask 319488  }
0x10dc   :  { %v3677_v1 = vmul.f32 %v3673_v8, %v4505_v28  ;;  %3675 = vadd.xlane.f32.xlu0 %v3674_v46 }
0x10de   :  { %v3679_v40 = vadd.f32 1e-05, %v3677_v1 }
0x10e0   :  { %4283 = vrsqrt.f32 %v3679_v40  ;;  %vm3687_vm6 = vweird.f32 %v3679_v40 }
0x10e6   :  { %v4284_v34 = vpop.eup %4283 }
0x10e7   :  { %v3682_v48 = vmul.f32 %v4284_v34, %v3679_v40  ;;  %vm3688_vm5 = vweird.f32 %v4284_v34 }
0x10e8   :  { %vm3689_vm8 = vmor %vm3687_vm6, %vm3688_vm5 }
0x10e9   :  { %v3683_v60 = vmul.f32 %v4284_v34, %v3682_v48 }
0x10eb   :  { %v3684_v62 = vmul.f32 0.5, %v3683_v60 }
0x10ed   :  { %v3685_v59 = vsub.f32 1.5, %v3684_v62 }
0x10ef   :  { %v3686_v44 = vmul.f32 %v4284_v34, %v3685_v59 }
0x10f1   :  { %v3690_v42 = vsel %vm3689_vm8, %v4284_v34, %v3686_v44 }
0x10f2   :  { %v3701_v63 = vmul.f32 %v3690_v42, %v3667_v24 }
0x10f4   :  { %v3706_v31 = vmul.f32 %v4103_v61, %v3701_v63 }
0x10f6   :  { %v3711_v16 = vadd.f32 %v4104_v2, %v3706_v31 }
0x10f8   :  { %v3714_v20 = vrot.slane %v3711_v16, 1  ;;  %v3715_v45 = vrot.slane %v3711_v16, 2  ;;  %v3716_v29 = vrot.slane %v3711_v16, 3  ;;  %3729 = vst.msk [vmem:[#allocation2] sm:$0x1] %vm3728_vm7, %v3711_v16  ;;  %v3717_v19 = vrot.slane %v3711_v16, 4 }
0x10f9   :  { %v3718_v6 = vrot.slane %v3711_v16, 5  ;;  %v3719_v23 = vrot.slane %v3711_v16, 6  ;;  %v3720_v37 = vrot.slane %v3711_v16, 7 }
0x10fa   :  { %3730 = vst.msk [vmem:[#allocation2 + $0x2] sm:$0x1] %vm3728_vm7, %v3714_v20 }
0x10fb   :  { %3731 = vst.msk [vmem:[#allocation2 + $0x4] sm:$0x1] %vm3728_vm7, %v3715_v45 }
0x10fc   :  { %3732 = vst.msk [vmem:[#allocation2 + $0x6] sm:$0x1] %vm3728_vm7, %v3716_v29 }
0x10fd   :  { %3733 = vst.msk [vmem:[#allocation2 + $0x8] sm:$0x1] %vm3728_vm7, %v3717_v19 }
0x10fe   :  { %3734 = vst.msk [vmem:[#allocation2 + $0xa] sm:$0x1] %vm3728_vm7, %v3718_v6 }
0x10ff   :  { %3735 = vst.msk [vmem:[#allocation2 + $0xc] sm:$0x1] %vm3728_vm7, %v3719_v23 }
0x1100   :  { %3736 = vst.msk [vmem:[#allocation2 + $0xe] sm:$0x1] %vm3728_vm7, %v3720_v37 }
0x114f   :  { %v3676_v56 = vpop.xlane.xlu0 %3675 }
0x1150   :  { %v3678_v50 = vmul.f32 %v3676_v56, %v4505_v28 }
0x1152   :  { %v3680_v54 = vadd.f32 1e-05, %v3678_v50 }
0x1154   :  { %4285 = vrsqrt.f32 %v3680_v54  ;;  %vm3697_vm10 = vweird.f32 %v3680_v54 }
0x115a   :  { %v4286_v55 = vpop.eup %4285 }
0x115b   :  { %v3692_v15 = vmul.f32 %v4286_v55, %v3680_v54  ;;  %vm3698_vm9 = vweird.f32 %v4286_v55 }
0x115c   :  { %vm3699_vm11 = vmor %vm3697_vm10, %vm3698_vm9 }
0x115d   :  { %v3693_v30 = vmul.f32 %v4286_v55, %v3692_v15 }
0x115f   :  { %v3694_v3 = vmul.f32 0.5, %v3693_v30 }
0x1161   :  { %v3695_v5 = vsub.f32 1.5, %v3694_v3 }
0x1163   :  { %v3696_v26 = vmul.f32 %v4286_v55, %v3695_v5 }
0x1165   :  { %v3700_v33 = vsel %vm3699_vm11, %v4286_v55, %v3696_v26 }
0x1166   :  { %v3702_v43 = vmul.f32 %v3700_v33, %v3668_v4 }
0x1168   :  { %v3707_v27 = vmul.f32 %v4103_v61, %v3702_v43 }
0x116a   :  { %v3712_v38 = vadd.f32 %v4104_v2, %v3707_v27 }
0x116c   :  { %v3738_v13 = vrot.slane %v3712_v38, 1  ;;  %v3739_v9 = vrot.slane %v3712_v38, 2  ;;  %v3740_v14 = vrot.slane %v3712_v38, 3  ;;  %3752 = vst.msk [vmem:[#allocation2 + $0x1] sm:$0x1] %vm3728_vm7, %v3712_v38  ;;  %v3741_v28 = vrot.slane %v3712_v38, 4 }
0x116d   :  { %v3742_v52 = vrot.slane %v3712_v38, 5  ;;  %v3743_v53 = vrot.slane %v3712_v38, 6  ;;  %v3744_v11 = vrot.slane %v3712_v38, 7 }
0x116e   :  { %3753 = vst.msk [vmem:[#allocation2 + $0x3] sm:$0x1] %vm3728_vm7, %v3738_v13 }
0x116f   :  { %3754 = vst.msk [vmem:[#allocation2 + $0x5] sm:$0x1] %vm3728_vm7, %v3739_v9 }
0x1170   :  { %3755 = vst.msk [vmem:[#allocation2 + $0x7] sm:$0x1] %vm3728_vm7, %v3740_v14 }
0x1171   :  { %3756 = vst.msk [vmem:[#allocation2 + $0x9] sm:$0x1] %vm3728_vm7, %v3741_v28 }
0x1172   :  { %3757 = vst.msk [vmem:[#allocation2 + $0xb] sm:$0x1] %vm3728_vm7, %v3742_v52 }
0x1173   :  { %3758 = vst.msk [vmem:[#allocation2 + $0xd] sm:$0x1] %vm3728_vm7, %v3743_v53 }
0x1174   :  { %3759 = vst.msk [vmem:[#allocation2 + $0xf] sm:$0x1] %vm3728_vm7, %v3744_v11 }
0x1175   :  { %3772 = dma.vmem_to_hbm [thread:$0]  %s3765_s15, 256, %s3767_s26, [#allocation3], %s5889_s23, %s5889_s23, %s4335_s27  }
0x1176   :  { %4311 = dma.done.wait [#allocation3], 256  }
0x1177   :  { %4312 = vsyncadd [#allocation3], 4294967040 }
0x1178   :  { %3777 = vsyncpa [#allocation3], 1 }

</bundles_post_ra>
